<compile_context>
chip_gen: v7x
topology: tpu7x:2x2x1
jax: 0.10.0
libtpu: 0.0.40
codegen_flags: <defaults>
</compile_context>

<pallas_src>
import jax
import jax.numpy as jnp
from jax import lax
from jax.experimental import pallas as pl
from jax.experimental.pallas import tpu as pltpu


def _round_up(x, m):
    return (x + m - 1) // m * m


def _vmem_limit_bytes():
    # ~100 MiB on 128-MiB parts (v5e/v6e), ~48 MiB on v7x (64 MiB VMEM).
    cap = 64 * 1024 * 1024
    try:
        cap = int(getattr(pltpu.get_tpu_info(), "vmem_capacity_bytes", cap))
    except Exception:
        pass
    return int(min(max(cap - 16 * 1024 * 1024, 32 * 1024 * 1024), 100 * 1024 * 1024))


# ----------------------------------------------------------------------------
# Fused Pallas kernel: wavefront-interleaved 2-layer LSTM over S-chunks
# + fc/sigmoid epilogue on the final timestep.
# ----------------------------------------------------------------------------
def wavefront_lstm2_fc_kernel(x_ref, wih0_ref, whh0_ref, b0_ref,
                              wih1_ref, whh1_ref, b1_ref,
                              h_init_ref, c_init_ref, fcw_ref, fcb_ref,
                              hN_ref, cN_ref, sig_ref,
                              gx_ref, h0_s, c0_s, h1_s, c1_s):
    """
    Grid: one step per S-chunk ("arbitrary" — sequential carry).
    x_ref    : (Ts*Bp, Ep)  bf16   this chunk's time-major embedded inputs
    wih*_ref : (Dp, 4Hp)    bf16   input->gates weights (gate order i, f, o, g)
    whh*_ref : (Hp, 4Hp)    bf16   hidden->gates weights
    b*_ref   : (1, 4Hp)     f32    combined bias (b_ih + b_hh)
    h_init_ref/c_init_ref : (2, Bp, Hp) f32  initial states (per layer)
    fcw_ref  : (1, Hp) f32 ; fcb_ref : (1, 1) f32
    hN_ref/cN_ref : (2, Bp, Hp) f32 final states (written on last chunk)
    sig_ref  : (Bp, 1) f32  sigmoid(fc(h_top_layer_last_step)) (written on last chunk)
    gx_ref   : (Ts*Bp, 4Hp) f32 scratch: hoisted layer-0 input projection (this chunk)
    h0_s/c0_s/h1_s/c1_s : (Bp, Hp) f32 scratch: carried LSTM state across chunks
    """
    Bp = h_init_ref.shape[1]
    Hp = h_init_ref.shape[2]
    Ts = x_ref.shape[0] // Bp
    c_idx = pl.program_id(0)

    @pl.when(c_idx == 0)
    def _init():
        h0_s[...] = h_init_ref[0]
        c0_s[...] = c_init_ref[0]
        h1_s[...] = h_init_ref[1]
        c1_s[...] = c_init_ref[1]

    # Hoisted layer-0 input projection for this chunk: one big MXU matmul, bias folded in.
    gx_ref[...] = (jnp.dot(x_ref[...], wih0_ref[...],
                           preferred_element_type=jnp.float32) + b0_ref[...])

    b1 = b1_ref[...]

    def lstm_cell(gates, c):
        # gate order (i, f, o, g): one contiguous sigmoid slice, one tanh slice
        s = jax.nn.sigmoid(gates[:, :3 * Hp])
        g = jnp.tanh(gates[:, 3 * Hp:])
        c_new = s[:, Hp:2 * Hp] * c + s[:, :Hp] * g
        h_new = s[:, 2 * Hp:3 * Hp] * jnp.tanh(c_new)
        return h_new, c_new

    def step(j, carry):
        h0, c0, h1, c1 = carry
        h0_b = h0.astype(jnp.bfloat16)

        # ---- layer 1, global step (c_idx*Ts + j - 1): consumes previous layer-0 output.
        # Independent of this iteration's layer-0 update -> MXU/EUP latency hiding.
        g1 = (jnp.dot(h0_b, wih1_ref[...], preferred_element_type=jnp.float32)
              + jnp.dot(h1.astype(jnp.bfloat16), whh1_ref[...],
                        preferred_element_type=jnp.float32) + b1)
        h1_new, c1_new = lstm_cell(g1, c1)
        valid = (c_idx * Ts + j) > 0          # discard the single spurious step at t == -1
        h1 = jnp.where(valid, h1_new, h1)
        c1 = jnp.where(valid, c1_new, c1)

        # ---- layer 0, global step (c_idx*Ts + j): hoisted input proj + h @ Whh
        row = pl.multiple_of(j * Bp, Bp)
        g0 = gx_ref[pl.ds(row, Bp), :] + jnp.dot(
            h0_b, whh0_ref[...], preferred_element_type=jnp.float32)
        h0, c0 = lstm_cell(g0, c0)
        return h0, c0, h1, c1

    h0, c0, h1, c1 = lax.fori_loop(
        0, Ts, step, (h0_s[...], c0_s[...], h1_s[...], c1_s[...]), unroll=4)

    # carry state to the next chunk
    h0_s[...] = h0
    c0_s[...] = c0
    h1_s[...] = h1
    c1_s[...] = c1

    @pl.when(c_idx == pl.num_programs(0) - 1)
    def _finalize():
        # Drain the wavefront: final layer-1 step consumes the final layer-0 output.
        g1 = (jnp.dot(h0.astype(jnp.bfloat16), wih1_ref[...],
                      preferred_element_type=jnp.float32)
              + jnp.dot(h1.astype(jnp.bfloat16), whh1_ref[...],
                        preferred_element_type=jnp.float32) + b1)
        h1f, c1f = lstm_cell(g1, c1)
        hN_ref[0] = h0
        cN_ref[0] = c0
        hN_ref[1] = h1f
        cN_ref[1] = c1f
        # fc + sigmoid on the last timestep only (dropout is identity in eval mode):
        # VPU multiply + lane reduce instead of a lane-sparse (Bp,1) MXU matmul.
        logit = jnp.sum(h1f * fcw_ref[...], axis=-1, keepdims=True) + fcb_ref[...]
        sig_ref[...] = jax.nn.sigmoid(logit)


# ----------------------------------------------------------------------------
# Parameter preparation: pad once to (8,128)-aligned shapes, pre-cast to bf16
# ----------------------------------------------------------------------------
def prepare_params(params):
    E = params["embedding"].shape[1]
    H = params["hidden_dim"]
    Ep = _round_up(E, 128)
    Hp = _round_up(H, 128)

    # source gate order (PyTorch / reference) is (i, f, g, o); kernel uses (i, f, o, g)
    GATE_SRC = (0, 1, 3, 2)

    def pad_gate_cols(w, rows_p):
        # w: (rows, 4H) -> (rows_p, 4Hp); each gate block re-based at k*Hp with
        # zero padding so padded hidden lanes stay identically zero.
        rows = w.shape[0]
        out = jnp.zeros((rows_p, 4 * Hp), jnp.float32)
        for k, src in enumerate(GATE_SRC):
            out = out.at[:rows, k * Hp:k * Hp + H].set(w[:, src * H:(src + 1) * H])
        return out

    wih, whh, b = [], [], []
    for l in range(params["n_layers"]):
        d_in_p = Ep if l == 0 else Hp
        wih.append(pad_gate_cols(params["wih"][l], d_in_p).astype(jnp.bfloat16))
        whh.append(pad_gate_cols(params["whh"][l], Hp).astype(jnp.bfloat16))
        b.append(pad_gate_cols(params["b"][l], 1))            # bias stays f32

    # bf16 embedding table: gather produces the MXU operand dtype directly.
    emb = jnp.pad(params["embedding"], ((0, 0), (0, Ep - E))).astype(jnp.bfloat16)
    fcw = jnp.zeros((1, Hp), jnp.float32).at[0, :H].set(params["fc_w"][:, 0])
    fcb = params["fc_b"].reshape(1, 1).astype(jnp.float32)

    return {"n_layers": params["n_layers"], "E": E, "H": H, "Ep": Ep, "Hp": Hp,
            "embedding": emb, "wih": wih, "whh": whh, "b": b,
            "fc_w": fcw, "fc_b": fcb}


# ----------------------------------------------------------------------------
# Forward wrapper (mirrors RNN.forward(x, hidden))
# ----------------------------------------------------------------------------
def rnn_forward(prepped, x_ids, hidden, chunk_steps=None):
    assert prepped["n_layers"] == 2, "fused kernel is specialized for n_layers=2"
    B, S = x_ids.shape
    H, Hp, Ep = prepped["H"], prepped["Hp"], prepped["Ep"]
    Bp = _round_up(B, 8)

    # S-chunking: chunk length must divide S (no padded timesteps -> state stays exact).
    if chunk_steps is None or chunk_steps <= 0 or (S % chunk_steps) != 0:
        chunk_steps = S
    num_chunks = S // chunk_steps
    Tb = chunk_steps * Bp

    # Embedding gather directly into time-major bf16 layout (no transposes, no cast pass).
    ids_t = jnp.pad(x_ids.T, ((0, 0), (0, Bp - B)))            # (S, Bp)
    x = jnp.take(prepped["embedding"], ids_t, axis=0)          # (S, Bp, Ep) bf16
    x_flat = x.reshape(S * Bp, Ep)

    h0, c0 = hidden                                            # (2, B, H) each
    pad_state = ((0, 0), (0, Bp - B), (0, Hp - H))
    h0_p = jnp.pad(h0.astype(jnp.float32), pad_state)
    c0_p = jnp.pad(c0.astype(jnp.float32), pad_state)

    full2 = lambda c: (0, 0)
    full3 = lambda c: (0, 0, 0)

    hN, cN, sig = pl.pallas_call(
        wavefront_lstm2_fc_kernel,
        out_shape=(jax.ShapeDtypeStruct((2, Bp, Hp), jnp.float32),
                   jax.ShapeDtypeStruct((2, Bp, Hp), jnp.float32),
                   jax.ShapeDtypeStruct((Bp, 1), jnp.float32)),
        grid=(num_chunks,),
        in_specs=[pl.BlockSpec((Tb, Ep), lambda c: (c, 0)),    # x: streamed per chunk
                  pl.BlockSpec((Ep, 4 * Hp), full2),           # wih0
                  pl.BlockSpec((Hp, 4 * Hp), full2),           # whh0
                  pl.BlockSpec((1, 4 * Hp), full2),            # b0
                  pl.BlockSpec((Hp, 4 * Hp), full2),           # wih1
                  pl.BlockSpec((Hp, 4 * Hp), full2),           # whh1
                  pl.BlockSpec((1, 4 * Hp), full2),            # b1
                  pl.BlockSpec((2, Bp, Hp), full3),            # h_init
                  pl.BlockSpec((2, Bp, Hp), full3),            # c_init
                  pl.BlockSpec((1, Hp), full2),                # fc_w
                  pl.BlockSpec((1, 1), full2)],                # fc_b
        out_specs=(pl.BlockSpec((2, Bp, Hp), full3),
                   pl.BlockSpec((2, Bp, Hp), full3),
                   pl.BlockSpec((Bp, 1), full2)),
        scratch_shapes=[pltpu.VMEM((Tb, 4 * Hp), jnp.float32),   # per-chunk gates_x
                        pltpu.VMEM((Bp, Hp), jnp.float32),       # h0 carry
                        pltpu.VMEM((Bp, Hp), jnp.float32),       # c0 carry
                        pltpu.VMEM((Bp, Hp), jnp.float32),       # h1 carry
                        pltpu.VMEM((Bp, Hp), jnp.float32)],      # c1 carry
        compiler_params=pltpu.CompilerParams(
            dimension_semantics=("arbitrary",),
            vmem_limit_bytes=_vmem_limit_bytes()),
    )(x_flat,
      prepped["wih"][0], prepped["whh"][0], prepped["b"][0],
      prepped["wih"][1], prepped["whh"][1], prepped["b"][1],
      h0_p, c0_p, prepped["fc_w"], prepped["fc_b"])

    sig_out = sig[:B, 0]                                       # (B,)
    h_n = hN[:, :B, :H]
    c_n = cN[:, :B, :H]
    return sig_out, (h_n, c_n)


# ----------------------------------------------------------------------------
# Pure-JAX f32 reference (for correctness check); gate order (i, f, g, o)
# ----------------------------------------------------------------------------
def rnn_forward_ref(params, x_ids, hidden):
    B, S = x_ids.shape
    H = params["hidden_dim"]
    h0, c0 = hidden
    embeds = jnp.take(params["embedding"], x_ids, axis=0)      # (B, S, E)
    layer_in = jnp.transpose(embeds, (1, 0, 2))                # (S, B, E)
    hs, cs = [], []
    for l in range(params["n_layers"]):
        wih, whh, b = params["wih"][l], params["whh"][l], params["b"][l]

        def step(carry, x_t):
            h, c = carry
            g = x_t @ wih + h @ whh + b
            i_g = jax.nn.sigmoid(g[:, 0 * H:1 * H])
            f_g = jax.nn.sigmoid(g[:, 1 * H:2 * H])
            g_g = jnp.tanh(g[:, 2 * H:3 * H])
            o_g = jax.nn.sigmoid(g[:, 3 * H:4 * H])
            c_n = f_g * c + i_g * g_g
            h_n = o_g * jnp.tanh(c_n)
            return (h_n, c_n), h_n

        (hL, cL), outs = lax.scan(step, (h0[l], c0[l]), layer_in)
        layer_in = outs
        hs.append(hL)
        cs.append(cL)
    lstm_out = jnp.transpose(layer_in, (1, 0, 2)).reshape(-1, H)
    sig = jax.nn.sigmoid(lstm_out @ params["fc_w"] + params["fc_b"])
    return sig.reshape(B, -1)[:, -1], (jnp.stack(hs), jnp.stack(cs))


# ----------------------------------------------------------------------------
# Parameter construction (deterministic, synthetic)
# ----------------------------------------------------------------------------
def make_params(key, vocab_size, embedding_dim, hidden_dim, n_layers, output_size):
    keys = jax.random.split(key, 3 + n_layers)
    scale = 1.0 / jnp.sqrt(hidden_dim)
    params = {
        "n_layers": n_layers,
        "hidden_dim": hidden_dim,
        "embedding": jax.random.normal(keys[0], (vocab_size, embedding_dim),
                                       jnp.float32) * 0.1,
        "fc_w": jax.random.uniform(keys[1], (hidden_dim, output_size),
                                   jnp.float32, -scale, scale),
        "fc_b": jax.random.uniform(keys[2], (1, output_size),
                                   jnp.float32, -scale, scale),
        "wih": [], "whh": [], "b": [],
    }
    for l in range(n_layers):
        d_in = embedding_dim if l == 0 else hidden_dim
        k1, k2, k3 = jax.random.split(keys[3 + l], 3)
        params["wih"].append(jax.random.uniform(
            k1, (d_in, 4 * hidden_dim), jnp.float32, -scale, scale))
        params["whh"].append(jax.random.uniform(
            k2, (hidden_dim, 4 * hidden_dim), jnp.float32, -scale, scale))
        params["b"].append(jax.random.uniform(
            k3, (1, 4 * hidden_dim), jnp.float32, -scale, scale))
    return params


# ----------------------------------------------------------------------------
if __name__ == "__main__":
    # small shapes consistent with the module's forward (padded internally)
    batch, seq = 2, 8
    vocab_size, embedding_dim, hidden_dim, n_layers, output_size = 64, 32, 32, 2, 1

    key = jax.random.PRNGKey(0)
    k_param, k_x = jax.random.split(key)
    params = make_params(k_param, vocab_size, embedding_dim,
                         hidden_dim, n_layers, output_size)
    prepped = prepare_params(params)

    x_ids = jax.random.randint(k_x, (batch, seq), 0, vocab_size, jnp.int32)
    hidden = (jnp.zeros((n_layers, batch, hidden_dim), jnp.float32),
              jnp.zeros((n_layers, batch, hidden_dim), jnp.float32))

    # chunk_steps=4 -> two S-chunks: exercises the grid carry + wavefront drain path.
    sig_out, (h_n, c_n) = rnn_forward(prepped, x_ids, hidden, chunk_steps=4)
    sig_out = jax.block_until_ready(sig_out)
    h_n = jax.block_until_ready(h_n)
    c_n = jax.block_until_ready(c_n)

    ref_sig, (ref_h, ref_c) = rnn_forward_ref(params, x_ids, hidden)
    ref_sig = jax.block_until_ready(ref_sig)

    assert sig_out.shape == (batch,)
    assert h_n.shape == (n_layers, batch, hidden_dim)
    assert c_n.shape == (n_layers, batch, hidden_dim)
    # bf16 MXU operands -> relaxed tolerance vs the f32 reference
    assert jnp.allclose(sig_out, ref_sig, atol=2e-2, rtol=2e-2), \
        float(jnp.max(jnp.abs(sig_out - ref_sig)))
    assert jnp.allclose(h_n, ref_h, atol=2e-2, rtol=2e-2)
    assert jnp.allclose(c_n, ref_c, atol=3e-2, rtol=3e-2)

    print("KERNEL_OK")
</pallas_src>

<mosaic_0001>
module attributes {stable_mosaic.version = 11 : i64} {
  func.func @wavefront_lstm2_fc_kernel(%arg0: i32, %arg1: memref<32x128xbf16, #tpu.memory_space<vmem>>, %arg2: memref<128x512xbf16, #tpu.memory_space<vmem>>, %arg3: memref<128x512xbf16, #tpu.memory_space<vmem>>, %arg4: memref<1x512xf32, #tpu.memory_space<vmem>>, %arg5: memref<128x512xbf16, #tpu.memory_space<vmem>>, %arg6: memref<128x512xbf16, #tpu.memory_space<vmem>>, %arg7: memref<1x512xf32, #tpu.memory_space<vmem>>, %arg8: memref<2x8x128xf32, #tpu.memory_space<vmem>>, %arg9: memref<2x8x128xf32, #tpu.memory_space<vmem>>, %arg10: memref<1x128xf32, #tpu.memory_space<vmem>>, %arg11: memref<1x1xf32, #tpu.memory_space<vmem>>, %arg12: memref<2x8x128xf32, #tpu.memory_space<vmem>>, %arg13: memref<2x8x128xf32, #tpu.memory_space<vmem>>, %arg14: memref<8x1xf32, #tpu.memory_space<vmem>>, %arg15: memref<32x512xf32, #tpu.memory_space<vmem>>, %arg16: memref<8x128xf32, #tpu.memory_space<vmem>>, %arg17: memref<8x128xf32, #tpu.memory_space<vmem>>, %arg18: memref<8x128xf32, #tpu.memory_space<vmem>>, %arg19: memref<8x128xf32, #tpu.memory_space<vmem>>) attributes {dimension_semantics = [#tpu.dimension_semantics<arbitrary>], iteration_bounds = array<i64: 2>, scalar_prefetch = 0 : i64, scratch_operands = 5 : i64, tpu.core_type = #tpu.core_type<tc>, window_params = [{transform_indices = @transform_0, window_bounds = array<i64: 32, 128>}, {pipeline_mode = #tpu.pipeline_mode<synchronous>, transform_indices = @transform_1, window_bounds = array<i64: 128, 512>}, {pipeline_mode = #tpu.pipeline_mode<synchronous>, transform_indices = @transform_2, window_bounds = array<i64: 128, 512>}, {pipeline_mode = #tpu.pipeline_mode<synchronous>, transform_indices = @transform_3, window_bounds = array<i64: 1, 512>}, {pipeline_mode = #tpu.pipeline_mode<synchronous>, transform_indices = @transform_4, window_bounds = array<i64: 128, 512>}, {pipeline_mode = #tpu.pipeline_mode<synchronous>, transform_indices = @transform_5, window_bounds = array<i64: 128, 512>}, {pipeline_mode = #tpu.pipeline_mode<synchronous>, transform_indices = @transform_6, window_bounds = array<i64: 1, 512>}, {pipeline_mode = #tpu.pipeline_mode<synchronous>, transform_indices = @transform_7, window_bounds = array<i64: 2, 8, 128>}, {pipeline_mode = #tpu.pipeline_mode<synchronous>, transform_indices = @transform_8, window_bounds = array<i64: 2, 8, 128>}, {pipeline_mode = #tpu.pipeline_mode<synchronous>, transform_indices = @transform_9, window_bounds = array<i64: 1, 128>}, {pipeline_mode = #tpu.pipeline_mode<synchronous>, transform_indices = @transform_10, window_bounds = array<i64: 1, 1>}, {pipeline_mode = #tpu.pipeline_mode<synchronous>, transform_indices = @transform_11, window_bounds = array<i64: 2, 8, 128>}, {pipeline_mode = #tpu.pipeline_mode<synchronous>, transform_indices = @transform_12, window_bounds = array<i64: 2, 8, 128>}, {pipeline_mode = #tpu.pipeline_mode<synchronous>, transform_indices = @transform_13, window_bounds = array<i64: 8, 1>}]} {
    %c0_i32 = arith.constant 0 : i32
    %0 = arith.cmpi eq, %arg0, %c0_i32 : i32
    %1 = arith.extui %0 : i1 to i32
    %c0_i32_0 = arith.constant 0 : i32
    %2 = arith.cmpi ne, %1, %c0_i32_0 : i32
    scf.if %2 {
      %c0_88 = arith.constant 0 : index
      %c0_89 = arith.constant 0 : index
      %c0_90 = arith.constant 0 : index
      %234 = vector.load %arg8[%c0_88, %c0_89, %c0_90] : memref<2x8x128xf32, #tpu.memory_space<vmem>>, vector<1x8x128xf32>
      %235 = vector.shape_cast %234 : vector<1x8x128xf32> to vector<8x128xf32>
      %c0_91 = arith.constant 0 : index
      %c0_92 = arith.constant 0 : index
      %236 = vector.load %arg16[%c0_91, %c0_92] : memref<8x128xf32, #tpu.memory_space<vmem>>, vector<8x128xf32>
      tpu.vector_store %arg16[%c0_91, %c0_92], %235 {strides = array<i32>} : memref<8x128xf32, #tpu.memory_space<vmem>>, vector<8x128xf32>,
      %c0_93 = arith.constant 0 : index
      %c0_94 = arith.constant 0 : index
      %c0_95 = arith.constant 0 : index
      %237 = vector.load %arg9[%c0_93, %c0_94, %c0_95] : memref<2x8x128xf32, #tpu.memory_space<vmem>>, vector<1x8x128xf32>
      %238 = vector.shape_cast %237 : vector<1x8x128xf32> to vector<8x128xf32>
      %c0_96 = arith.constant 0 : index
      %c0_97 = arith.constant 0 : index
      %239 = vector.load %arg17[%c0_96, %c0_97] : memref<8x128xf32, #tpu.memory_space<vmem>>, vector<8x128xf32>
      tpu.vector_store %arg17[%c0_96, %c0_97], %238 {strides = array<i32>} : memref<8x128xf32, #tpu.memory_space<vmem>>, vector<8x128xf32>,
      %c1 = arith.constant 1 : index
      %c0_98 = arith.constant 0 : index
      %c0_99 = arith.constant 0 : index
      %240 = vector.load %arg8[%c1, %c0_98, %c0_99] : memref<2x8x128xf32, #tpu.memory_space<vmem>>, vector<1x8x128xf32>
      %241 = vector.shape_cast %240 : vector<1x8x128xf32> to vector<8x128xf32>
      %c0_100 = arith.constant 0 : index
      %c0_101 = arith.constant 0 : index
      %242 = vector.load %arg18[%c0_100, %c0_101] : memref<8x128xf32, #tpu.memory_space<vmem>>, vector<8x128xf32>
      tpu.vector_store %arg18[%c0_100, %c0_101], %241 {strides = array<i32>} : memref<8x128xf32, #tpu.memory_space<vmem>>, vector<8x128xf32>,
      %c1_102 = arith.constant 1 : index
      %c0_103 = arith.constant 0 : index
      %c0_104 = arith.constant 0 : index
      %243 = vector.load %arg9[%c1_102, %c0_103, %c0_104] : memref<2x8x128xf32, #tpu.memory_space<vmem>>, vector<1x8x128xf32>
      %244 = vector.shape_cast %243 : vector<1x8x128xf32> to vector<8x128xf32>
      %c0_105 = arith.constant 0 : index
      %c0_106 = arith.constant 0 : index
      %245 = vector.load %arg19[%c0_105, %c0_106] : memref<8x128xf32, #tpu.memory_space<vmem>>, vector<8x128xf32>
      tpu.vector_store %arg19[%c0_105, %c0_106], %244 {strides = array<i32>} : memref<8x128xf32, #tpu.memory_space<vmem>>, vector<8x128xf32>,
    } else {
    }
    %c0 = arith.constant 0 : index
    %c0_1 = arith.constant 0 : index
    %3 = vector.load %arg1[%c0, %c0_1] : memref<32x128xbf16, #tpu.memory_space<vmem>>, vector<32x128xbf16>
    %c0_2 = arith.constant 0 : index
    %c0_3 = arith.constant 0 : index
    %4 = vector.load %arg2[%c0_2, %c0_3] : memref<128x512xbf16, #tpu.memory_space<vmem>>, vector<128x512xbf16>
    %cst = arith.constant dense<0.000000e+00> : vector<32x512xf32>
    %5 = tpu.matmul %3, %4, %cst {dimension_numbers = #tpu.dot_dimension_numbers<[1], [0], [0], [1], [0, 0, 1, 1], [], []>} : vector<32x128xbf16>, vector<128x512xbf16>, vector<32x512xf32> -> vector<32x512xf32>
    %c0_4 = arith.constant 0 : index
    %c0_5 = arith.constant 0 : index
    %6 = vector.load %arg4[%c0_4, %c0_5] : memref<1x512xf32, #tpu.memory_space<vmem>>, vector<1x512xf32>
    %7 = vector.broadcast %6 : vector<1x512xf32> to vector<32x512xf32>
    %8 = arith.addf %5, %7 : vector<32x512xf32>
    %c0_6 = arith.constant 0 : index
    %c0_7 = arith.constant 0 : index
    %9 = vector.load %arg15[%c0_6, %c0_7] : memref<32x512xf32, #tpu.memory_space<vmem>>, vector<32x512xf32>
    tpu.vector_store %arg15[%c0_6, %c0_7], %8 {strides = array<i32>} : memref<32x512xf32, #tpu.memory_space<vmem>>, vector<32x512xf32>,
    %c0_8 = arith.constant 0 : index
    %c0_9 = arith.constant 0 : index
    %10 = vector.load %arg7[%c0_8, %c0_9] : memref<1x512xf32, #tpu.memory_space<vmem>>, vector<1x512xf32>
    %c0_10 = arith.constant 0 : index
    %c0_11 = arith.constant 0 : index
    %11 = vector.load %arg16[%c0_10, %c0_11] : memref<8x128xf32, #tpu.memory_space<vmem>>, vector<8x128xf32>
    %c0_12 = arith.constant 0 : index
    %c0_13 = arith.constant 0 : index
    %12 = vector.load %arg17[%c0_12, %c0_13] : memref<8x128xf32, #tpu.memory_space<vmem>>, vector<8x128xf32>
    %c0_14 = arith.constant 0 : index
    %c0_15 = arith.constant 0 : index
    %13 = vector.load %arg18[%c0_14, %c0_15] : memref<8x128xf32, #tpu.memory_space<vmem>>, vector<8x128xf32>
    %c0_16 = arith.constant 0 : index
    %c0_17 = arith.constant 0 : index
    %14 = vector.load %arg19[%c0_16, %c0_17] : memref<8x128xf32, #tpu.memory_space<vmem>>, vector<8x128xf32>
    %c0_i32_18 = arith.constant 0 : i32
    %15 = arith.truncf %11 : vector<8x128xf32> to vector<8x128xbf16>
    %c0_19 = arith.constant 0 : index
    %c0_20 = arith.constant 0 : index
    %16 = vector.load %arg5[%c0_19, %c0_20] : memref<128x512xbf16, #tpu.memory_space<vmem>>, vector<128x512xbf16>
    %cst_21 = arith.constant dense<0.000000e+00> : vector<8x512xf32>
    %17 = tpu.matmul %15, %16, %cst_21 {dimension_numbers = #tpu.dot_dimension_numbers<[1], [0], [0], [1], [0, 0, 1, 1], [], []>} : vector<8x128xbf16>, vector<128x512xbf16>, vector<8x512xf32> -> vector<8x512xf32>
    %18 = arith.truncf %13 : vector<8x128xf32> to vector<8x128xbf16>
    %c0_22 = arith.constant 0 : index
    %c0_23 = arith.constant 0 : index
    %19 = vector.load %arg6[%c0_22, %c0_23] : memref<128x512xbf16, #tpu.memory_space<vmem>>, vector<128x512xbf16>
    %cst_24 = arith.constant dense<0.000000e+00> : vector<8x512xf32>
    %20 = tpu.matmul %18, %19, %cst_24 {dimension_numbers = #tpu.dot_dimension_numbers<[1], [0], [0], [1], [0, 0, 1, 1], [], []>} : vector<8x128xbf16>, vector<128x512xbf16>, vector<8x512xf32> -> vector<8x512xf32>
    %21 = arith.addf %17, %20 : vector<8x512xf32>
    %22 = vector.broadcast %10 : vector<1x512xf32> to vector<8x512xf32>
    %23 = arith.addf %21, %22 : vector<8x512xf32>
    %24 = vector.extract_strided_slice %23 {offsets = [0, 0], sizes = [8, 384], strides = [1, 1]} : vector<8x512xf32> to vector<8x384xf32>
    %25 = arith.negf %24 : vector<8x384xf32>
    %26 = math.exp %25 : vector<8x384xf32>
    %cst_25 = arith.constant 1.000000e+00 : f32
    %27 = vector.broadcast %cst_25 : f32 to vector<8x384xf32>
    %28 = arith.addf %27, %26 : vector<8x384xf32>
    %29 = arith.divf %27, %28 : vector<8x384xf32>
    %30 = vector.extract_strided_slice %23 {offsets = [0, 384], sizes = [8, 128], strides = [1, 1]} : vector<8x512xf32> to vector<8x128xf32>
    %31 = math.tanh %30 : vector<8x128xf32>
    %32 = vector.extract_strided_slice %29 {offsets = [0, 128], sizes = [8, 128], strides = [1, 1]} : vector<8x384xf32> to vector<8x128xf32>
    %33 = arith.mulf %32, %14 : vector<8x128xf32>
    %34 = vector.extract_strided_slice %29 {offsets = [0, 0], sizes = [8, 128], strides = [1, 1]} : vector<8x384xf32> to vector<8x128xf32>
    %35 = arith.mulf %34, %31 : vector<8x128xf32>
    %36 = arith.addf %33, %35 : vector<8x128xf32>
    %37 = vector.extract_strided_slice %29 {offsets = [0, 256], sizes = [8, 128], strides = [1, 1]} : vector<8x384xf32> to vector<8x128xf32>
    %38 = math.tanh %36 : vector<8x128xf32>
    %39 = arith.mulf %37, %38 : vector<8x128xf32>
    %c4_i32 = arith.constant 4 : i32
    %40 = arith.muli %arg0, %c4_i32 : i32
    %41 = arith.addi %40, %c0_i32_18 : i32
    %c0_i32_26 = arith.constant 0 : i32
    %42 = arith.cmpi sgt, %41, %c0_i32_26 : i32
    %43 = arith.select %42, %39, %13 : vector<8x128xf32>
    %44 = arith.select %42, %36, %14 : vector<8x128xf32>
    %c8_i32 = arith.constant 8 : i32
    %45 = arith.muli %c0_i32_18, %c8_i32 : i32
    %46 = tpu.assume_multiple %45, 8 : i32
    %47 = arith.index_cast %46 : i32 to index
    %c0_27 = arith.constant 0 : index
    %48 = vector.load %arg15[%47, %c0_27] : memref<32x512xf32, #tpu.memory_space<vmem>>, vector<8x512xf32>
    %c0_28 = arith.constant 0 : index
    %c0_29 = arith.constant 0 : index
    %49 = vector.load %arg3[%c0_28, %c0_29] : memref<128x512xbf16, #tpu.memory_space<vmem>>, vector<128x512xbf16>
    %cst_30 = arith.constant dense<0.000000e+00> : vector<8x512xf32>
    %50 = tpu.matmul %15, %49, %cst_30 {dimension_numbers = #tpu.dot_dimension_numbers<[1], [0], [0], [1], [0, 0, 1, 1], [], []>} : vector<8x128xbf16>, vector<128x512xbf16>, vector<8x512xf32> -> vector<8x512xf32>
    %51 = arith.addf %48, %50 : vector<8x512xf32>
    %52 = vector.extract_strided_slice %51 {offsets = [0, 0], sizes = [8, 384], strides = [1, 1]} : vector<8x512xf32> to vector<8x384xf32>
    %53 = arith.negf %52 : vector<8x384xf32>
    %54 = math.exp %53 : vector<8x384xf32>
    %cst_31 = arith.constant 1.000000e+00 : f32
    %55 = vector.broadcast %cst_31 : f32 to vector<8x384xf32>
    %56 = arith.addf %55, %54 : vector<8x384xf32>
    %57 = arith.divf %55, %56 : vector<8x384xf32>
    %58 = vector.extract_strided_slice %51 {offsets = [0, 384], sizes = [8, 128], strides = [1, 1]} : vector<8x512xf32> to vector<8x128xf32>
    %59 = math.tanh %58 : vector<8x128xf32>
    %60 = vector.extract_strided_slice %57 {offsets = [0, 128], sizes = [8, 128], strides = [1, 1]} : vector<8x384xf32> to vector<8x128xf32>
    %61 = arith.mulf %60, %12 : vector<8x128xf32>
    %62 = vector.extract_strided_slice %57 {offsets = [0, 0], sizes = [8, 128], strides = [1, 1]} : vector<8x384xf32> to vector<8x128xf32>
    %63 = arith.mulf %62, %59 : vector<8x128xf32>
    %64 = arith.addf %61, %63 : vector<8x128xf32>
    %65 = vector.extract_strided_slice %57 {offsets = [0, 256], sizes = [8, 128], strides = [1, 1]} : vector<8x384xf32> to vector<8x128xf32>
    %66 = math.tanh %64 : vector<8x128xf32>
    %67 = arith.mulf %65, %66 : vector<8x128xf32>
    %c1_i32 = arith.constant 1 : i32
    %68 = arith.truncf %67 : vector<8x128xf32> to vector<8x128xbf16>
    %c0_32 = arith.constant 0 : index
    %c0_33 = arith.constant 0 : index
    %69 = vector.load %arg5[%c0_32, %c0_33] : memref<128x512xbf16, #tpu.memory_space<vmem>>, vector<128x512xbf16>
    %cst_34 = arith.constant dense<0.000000e+00> : vector<8x512xf32>
    %70 = tpu.matmul %68, %69, %cst_34 {dimension_numbers = #tpu.dot_dimension_numbers<[1], [0], [0], [1], [0, 0, 1, 1], [], []>} : vector<8x128xbf16>, vector<128x512xbf16>, vector<8x512xf32> -> vector<8x512xf32>
    %71 = arith.truncf %43 : vector<8x128xf32> to vector<8x128xbf16>
    %c0_35 = arith.constant 0 : index
    %c0_36 = arith.constant 0 : index
    %72 = vector.load %arg6[%c0_35, %c0_36] : memref<128x512xbf16, #tpu.memory_space<vmem>>, vector<128x512xbf16>
    %cst_37 = arith.constant dense<0.000000e+00> : vector<8x512xf32>
    %73 = tpu.matmul %71, %72, %cst_37 {dimension_numbers = #tpu.dot_dimension_numbers<[1], [0], [0], [1], [0, 0, 1, 1], [], []>} : vector<8x128xbf16>, vector<128x512xbf16>, vector<8x512xf32> -> vector<8x512xf32>
    %74 = arith.addf %70, %73 : vector<8x512xf32>
    %75 = vector.broadcast %10 : vector<1x512xf32> to vector<8x512xf32>
    %76 = arith.addf %74, %75 : vector<8x512xf32>
    %77 = vector.extract_strided_slice %76 {offsets = [0, 0], sizes = [8, 384], strides = [1, 1]} : vector<8x512xf32> to vector<8x384xf32>
    %78 = arith.negf %77 : vector<8x384xf32>
    %79 = math.exp %78 : vector<8x384xf32>
    %cst_38 = arith.constant 1.000000e+00 : f32
    %80 = vector.broadcast %cst_38 : f32 to vector<8x384xf32>
    %81 = arith.addf %80, %79 : vector<8x384xf32>
    %82 = arith.divf %80, %81 : vector<8x384xf32>
    %83 = vector.extract_strided_slice %76 {offsets = [0, 384], sizes = [8, 128], strides = [1, 1]} : vector<8x512xf32> to vector<8x128xf32>
    %84 = math.tanh %83 : vector<8x128xf32>
    %85 = vector.extract_strided_slice %82 {offsets = [0, 128], sizes = [8, 128], strides = [1, 1]} : vector<8x384xf32> to vector<8x128xf32>
    %86 = arith.mulf %85, %44 : vector<8x128xf32>
    %87 = vector.extract_strided_slice %82 {offsets = [0, 0], sizes = [8, 128], strides = [1, 1]} : vector<8x384xf32> to vector<8x128xf32>
    %88 = arith.mulf %87, %84 : vector<8x128xf32>
    %89 = arith.addf %86, %88 : vector<8x128xf32>
    %90 = vector.extract_strided_slice %82 {offsets = [0, 256], sizes = [8, 128], strides = [1, 1]} : vector<8x384xf32> to vector<8x128xf32>
    %91 = math.tanh %89 : vector<8x128xf32>
    %92 = arith.mulf %90, %91 : vector<8x128xf32>
    %c4_i32_39 = arith.constant 4 : i32
    %93 = arith.muli %arg0, %c4_i32_39 : i32
    %94 = arith.addi %93, %c1_i32 : i32
    %c0_i32_40 = arith.constant 0 : i32
    %95 = arith.cmpi sgt, %94, %c0_i32_40 : i32
    %96 = arith.select %95, %92, %43 : vector<8x128xf32>
    %97 = arith.select %95, %89, %44 : vector<8x128xf32>
    %c8_i32_41 = arith.constant 8 : i32
    %98 = arith.muli %c1_i32, %c8_i32_41 : i32
    %99 = tpu.assume_multiple %98, 8 : i32
    %100 = arith.index_cast %99 : i32 to index
    %c0_42 = arith.constant 0 : index
    %101 = vector.load %arg15[%100, %c0_42] : memref<32x512xf32, #tpu.memory_space<vmem>>, vector<8x512xf32>
    %c0_43 = arith.constant 0 : index
    %c0_44 = arith.constant 0 : index
    %102 = vector.load %arg3[%c0_43, %c0_44] : memref<128x512xbf16, #tpu.memory_space<vmem>>, vector<128x512xbf16>
    %cst_45 = arith.constant dense<0.000000e+00> : vector<8x512xf32>
    %103 = tpu.matmul %68, %102, %cst_45 {dimension_numbers = #tpu.dot_dimension_numbers<[1], [0], [0], [1], [0, 0, 1, 1], [], []>} : vector<8x128xbf16>, vector<128x512xbf16>, vector<8x512xf32> -> vector<8x512xf32>
    %104 = arith.addf %101, %103 : vector<8x512xf32>
    %105 = vector.extract_strided_slice %104 {offsets = [0, 0], sizes = [8, 384], strides = [1, 1]} : vector<8x512xf32> to vector<8x384xf32>
    %106 = arith.negf %105 : vector<8x384xf32>
    %107 = math.exp %106 : vector<8x384xf32>
    %cst_46 = arith.constant 1.000000e+00 : f32
    %108 = vector.broadcast %cst_46 : f32 to vector<8x384xf32>
    %109 = arith.addf %108, %107 : vector<8x384xf32>
    %110 = arith.divf %108, %109 : vector<8x384xf32>
    %111 = vector.extract_strided_slice %104 {offsets = [0, 384], sizes = [8, 128], strides = [1, 1]} : vector<8x512xf32> to vector<8x128xf32>
    %112 = math.tanh %111 : vector<8x128xf32>
    %113 = vector.extract_strided_slice %110 {offsets = [0, 128], sizes = [8, 128], strides = [1, 1]} : vector<8x384xf32> to vector<8x128xf32>
    %114 = arith.mulf %113, %64 : vector<8x128xf32>
    %115 = vector.extract_strided_slice %110 {offsets = [0, 0], sizes = [8, 128], strides = [1, 1]} : vector<8x384xf32> to vector<8x128xf32>
    %116 = arith.mulf %115, %112 : vector<8x128xf32>
    %117 = arith.addf %114, %116 : vector<8x128xf32>
    %118 = vector.extract_strided_slice %110 {offsets = [0, 256], sizes = [8, 128], strides = [1, 1]} : vector<8x384xf32> to vector<8x128xf32>
    %119 = math.tanh %117 : vector<8x128xf32>
    %120 = arith.mulf %118, %119 : vector<8x128xf32>
    %c2_i32 = arith.constant 2 : i32
    %121 = arith.truncf %120 : vector<8x128xf32> to vector<8x128xbf16>
    %c0_47 = arith.constant 0 : index
    %c0_48 = arith.constant 0 : index
    %122 = vector.load %arg5[%c0_47, %c0_48] : memref<128x512xbf16, #tpu.memory_space<vmem>>, vector<128x512xbf16>
    %cst_49 = arith.constant dense<0.000000e+00> : vector<8x512xf32>
    %123 = tpu.matmul %121, %122, %cst_49 {dimension_numbers = #tpu.dot_dimension_numbers<[1], [0], [0], [1], [0, 0, 1, 1], [], []>} : vector<8x128xbf16>, vector<128x512xbf16>, vector<8x512xf32> -> vector<8x512xf32>
    %124 = arith.truncf %96 : vector<8x128xf32> to vector<8x128xbf16>
    %c0_50 = arith.constant 0 : index
    %c0_51 = arith.constant 0 : index
    %125 = vector.load %arg6[%c0_50, %c0_51] : memref<128x512xbf16, #tpu.memory_space<vmem>>, vector<128x512xbf16>
    %cst_52 = arith.constant dense<0.000000e+00> : vector<8x512xf32>
    %126 = tpu.matmul %124, %125, %cst_52 {dimension_numbers = #tpu.dot_dimension_numbers<[1], [0], [0], [1], [0, 0, 1, 1], [], []>} : vector<8x128xbf16>, vector<128x512xbf16>, vector<8x512xf32> -> vector<8x512xf32>
    %127 = arith.addf %123, %126 : vector<8x512xf32>
    %128 = vector.broadcast %10 : vector<1x512xf32> to vector<8x512xf32>
    %129 = arith.addf %127, %128 : vector<8x512xf32>
    %130 = vector.extract_strided_slice %129 {offsets = [0, 0], sizes = [8, 384], strides = [1, 1]} : vector<8x512xf32> to vector<8x384xf32>
    %131 = arith.negf %130 : vector<8x384xf32>
    %132 = math.exp %131 : vector<8x384xf32>
    %cst_53 = arith.constant 1.000000e+00 : f32
    %133 = vector.broadcast %cst_53 : f32 to vector<8x384xf32>
    %134 = arith.addf %133, %132 : vector<8x384xf32>
    %135 = arith.divf %133, %134 : vector<8x384xf32>
    %136 = vector.extract_strided_slice %129 {offsets = [0, 384], sizes = [8, 128], strides = [1, 1]} : vector<8x512xf32> to vector<8x128xf32>
    %137 = math.tanh %136 : vector<8x128xf32>
    %138 = vector.extract_strided_slice %135 {offsets = [0, 128], sizes = [8, 128], strides = [1, 1]} : vector<8x384xf32> to vector<8x128xf32>
    %139 = arith.mulf %138, %97 : vector<8x128xf32>
    %140 = vector.extract_strided_slice %135 {offsets = [0, 0], sizes = [8, 128], strides = [1, 1]} : vector<8x384xf32> to vector<8x128xf32>
    %141 = arith.mulf %140, %137 : vector<8x128xf32>
    %142 = arith.addf %139, %141 : vector<8x128xf32>
    %143 = vector.extract_strided_slice %135 {offsets = [0, 256], sizes = [8, 128], strides = [1, 1]} : vector<8x384xf32> to vector<8x128xf32>
    %144 = math.tanh %142 : vector<8x128xf32>
    %145 = arith.mulf %143, %144 : vector<8x128xf32>
    %c4_i32_54 = arith.constant 4 : i32
    %146 = arith.muli %arg0, %c4_i32_54 : i32
    %147 = arith.addi %146, %c2_i32 : i32
    %c0_i32_55 = arith.constant 0 : i32
    %148 = arith.cmpi sgt, %147, %c0_i32_55 : i32
    %149 = arith.select %148, %145, %96 : vector<8x128xf32>
    %150 = arith.select %148, %142, %97 : vector<8x128xf32>
    %c8_i32_56 = arith.constant 8 : i32
    %151 = arith.muli %c2_i32, %c8_i32_56 : i32
    %152 = tpu.assume_multiple %151, 8 : i32
    %153 = arith.index_cast %152 : i32 to index
    %c0_57 = arith.constant 0 : index
    %154 = vector.load %arg15[%153, %c0_57] : memref<32x512xf32, #tpu.memory_space<vmem>>, vector<8x512xf32>
    %c0_58 = arith.constant 0 : index
    %c0_59 = arith.constant 0 : index
    %155 = vector.load %arg3[%c0_58, %c0_59] : memref<128x512xbf16, #tpu.memory_space<vmem>>, vector<128x512xbf16>
    %cst_60 = arith.constant dense<0.000000e+00> : vector<8x512xf32>
    %156 = tpu.matmul %121, %155, %cst_60 {dimension_numbers = #tpu.dot_dimension_numbers<[1], [0], [0], [1], [0, 0, 1, 1], [], []>} : vector<8x128xbf16>, vector<128x512xbf16>, vector<8x512xf32> -> vector<8x512xf32>
    %157 = arith.addf %154, %156 : vector<8x512xf32>
    %158 = vector.extract_strided_slice %157 {offsets = [0, 0], sizes = [8, 384], strides = [1, 1]} : vector<8x512xf32> to vector<8x384xf32>
    %159 = arith.negf %158 : vector<8x384xf32>
    %160 = math.exp %159 : vector<8x384xf32>
    %cst_61 = arith.constant 1.000000e+00 : f32
    %161 = vector.broadcast %cst_61 : f32 to vector<8x384xf32>
    %162 = arith.addf %161, %160 : vector<8x384xf32>
    %163 = arith.divf %161, %162 : vector<8x384xf32>
    %164 = vector.extract_strided_slice %157 {offsets = [0, 384], sizes = [8, 128], strides = [1, 1]} : vector<8x512xf32> to vector<8x128xf32>
    %165 = math.tanh %164 : vector<8x128xf32>
    %166 = vector.extract_strided_slice %163 {offsets = [0, 128], sizes = [8, 128], strides = [1, 1]} : vector<8x384xf32> to vector<8x128xf32>
    %167 = arith.mulf %166, %117 : vector<8x128xf32>
    %168 = vector.extract_strided_slice %163 {offsets = [0, 0], sizes = [8, 128], strides = [1, 1]} : vector<8x384xf32> to vector<8x128xf32>
    %169 = arith.mulf %168, %165 : vector<8x128xf32>
    %170 = arith.addf %167, %169 : vector<8x128xf32>
    %171 = vector.extract_strided_slice %163 {offsets = [0, 256], sizes = [8, 128], strides = [1, 1]} : vector<8x384xf32> to vector<8x128xf32>
    %172 = math.tanh %170 : vector<8x128xf32>
    %173 = arith.mulf %171, %172 : vector<8x128xf32>
    %c3_i32 = arith.constant 3 : i32
    %174 = arith.truncf %173 : vector<8x128xf32> to vector<8x128xbf16>
    %c0_62 = arith.constant 0 : index
    %c0_63 = arith.constant 0 : index
    %175 = vector.load %arg5[%c0_62, %c0_63] : memref<128x512xbf16, #tpu.memory_space<vmem>>, vector<128x512xbf16>
    %cst_64 = arith.constant dense<0.000000e+00> : vector<8x512xf32>
    %176 = tpu.matmul %174, %175, %cst_64 {dimension_numbers = #tpu.dot_dimension_numbers<[1], [0], [0], [1], [0, 0, 1, 1], [], []>} : vector<8x128xbf16>, vector<128x512xbf16>, vector<8x512xf32> -> vector<8x512xf32>
    %177 = arith.truncf %149 : vector<8x128xf32> to vector<8x128xbf16>
    %c0_65 = arith.constant 0 : index
    %c0_66 = arith.constant 0 : index
    %178 = vector.load %arg6[%c0_65, %c0_66] : memref<128x512xbf16, #tpu.memory_space<vmem>>, vector<128x512xbf16>
    %cst_67 = arith.constant dense<0.000000e+00> : vector<8x512xf32>
    %179 = tpu.matmul %177, %178, %cst_67 {dimension_numbers = #tpu.dot_dimension_numbers<[1], [0], [0], [1], [0, 0, 1, 1], [], []>} : vector<8x128xbf16>, vector<128x512xbf16>, vector<8x512xf32> -> vector<8x512xf32>
    %180 = arith.addf %176, %179 : vector<8x512xf32>
    %181 = vector.broadcast %10 : vector<1x512xf32> to vector<8x512xf32>
    %182 = arith.addf %180, %181 : vector<8x512xf32>
    %183 = vector.extract_strided_slice %182 {offsets = [0, 0], sizes = [8, 384], strides = [1, 1]} : vector<8x512xf32> to vector<8x384xf32>
    %184 = arith.negf %183 : vector<8x384xf32>
    %185 = math.exp %184 : vector<8x384xf32>
    %cst_68 = arith.constant 1.000000e+00 : f32
    %186 = vector.broadcast %cst_68 : f32 to vector<8x384xf32>
    %187 = arith.addf %186, %185 : vector<8x384xf32>
    %188 = arith.divf %186, %187 : vector<8x384xf32>
    %189 = vector.extract_strided_slice %182 {offsets = [0, 384], sizes = [8, 128], strides = [1, 1]} : vector<8x512xf32> to vector<8x128xf32>
    %190 = math.tanh %189 : vector<8x128xf32>
    %191 = vector.extract_strided_slice %188 {offsets = [0, 128], sizes = [8, 128], strides = [1, 1]} : vector<8x384xf32> to vector<8x128xf32>
    %192 = arith.mulf %191, %150 : vector<8x128xf32>
    %193 = vector.extract_strided_slice %188 {offsets = [0, 0], sizes = [8, 128], strides = [1, 1]} : vector<8x384xf32> to vector<8x128xf32>
    %194 = arith.mulf %193, %190 : vector<8x128xf32>
    %195 = arith.addf %192, %194 : vector<8x128xf32>
    %196 = vector.extract_strided_slice %188 {offsets = [0, 256], sizes = [8, 128], strides = [1, 1]} : vector<8x384xf32> to vector<8x128xf32>
    %197 = math.tanh %195 : vector<8x128xf32>
    %198 = arith.mulf %196, %197 : vector<8x128xf32>
    %c4_i32_69 = arith.constant 4 : i32
    %199 = arith.muli %arg0, %c4_i32_69 : i32
    %200 = arith.addi %199, %c3_i32 : i32
    %c0_i32_70 = arith.constant 0 : i32
    %201 = arith.cmpi sgt, %200, %c0_i32_70 : i32
    %202 = arith.select %201, %198, %149 : vector<8x128xf32>
    %203 = arith.select %201, %195, %150 : vector<8x128xf32>
    %c8_i32_71 = arith.constant 8 : i32
    %204 = arith.muli %c3_i32, %c8_i32_71 : i32
    %205 = tpu.assume_multiple %204, 8 : i32
    %206 = arith.index_cast %205 : i32 to index
    %c0_72 = arith.constant 0 : index
    %207 = vector.load %arg15[%206, %c0_72] : memref<32x512xf32, #tpu.memory_space<vmem>>, vector<8x512xf32>
    %c0_73 = arith.constant 0 : index
    %c0_74 = arith.constant 0 : index
    %208 = vector.load %arg3[%c0_73, %c0_74] : memref<128x512xbf16, #tpu.memory_space<vmem>>, vector<128x512xbf16>
    %cst_75 = arith.constant dense<0.000000e+00> : vector<8x512xf32>
    %209 = tpu.matmul %174, %208, %cst_75 {dimension_numbers = #tpu.dot_dimension_numbers<[1], [0], [0], [1], [0, 0, 1, 1], [], []>} : vector<8x128xbf16>, vector<128x512xbf16>, vector<8x512xf32> -> vector<8x512xf32>
    %210 = arith.addf %207, %209 : vector<8x512xf32>
    %211 = vector.extract_strided_slice %210 {offsets = [0, 0], sizes = [8, 384], strides = [1, 1]} : vector<8x512xf32> to vector<8x384xf32>
    %212 = arith.negf %211 : vector<8x384xf32>
    %213 = math.exp %212 : vector<8x384xf32>
    %cst_76 = arith.constant 1.000000e+00 : f32
    %214 = vector.broadcast %cst_76 : f32 to vector<8x384xf32>
    %215 = arith.addf %214, %213 : vector<8x384xf32>
    %216 = arith.divf %214, %215 : vector<8x384xf32>
    %217 = vector.extract_strided_slice %210 {offsets = [0, 384], sizes = [8, 128], strides = [1, 1]} : vector<8x512xf32> to vector<8x128xf32>
    %218 = math.tanh %217 : vector<8x128xf32>
    %219 = vector.extract_strided_slice %216 {offsets = [0, 128], sizes = [8, 128], strides = [1, 1]} : vector<8x384xf32> to vector<8x128xf32>
    %220 = arith.mulf %219, %170 : vector<8x128xf32>
    %221 = vector.extract_strided_slice %216 {offsets = [0, 0], sizes = [8, 128], strides = [1, 1]} : vector<8x384xf32> to vector<8x128xf32>
    %222 = arith.mulf %221, %218 : vector<8x128xf32>
    %223 = arith.addf %220, %222 : vector<8x128xf32>
    %224 = vector.extract_strided_slice %216 {offsets = [0, 256], sizes = [8, 128], strides = [1, 1]} : vector<8x384xf32> to vector<8x128xf32>
    %225 = math.tanh %223 : vector<8x128xf32>
    %226 = arith.mulf %224, %225 : vector<8x128xf32>
    %c4_i32_77 = arith.constant 4 : i32
    %c0_78 = arith.constant 0 : index
    %c0_79 = arith.constant 0 : index
    %227 = vector.load %arg16[%c0_78, %c0_79] : memref<8x128xf32, #tpu.memory_space<vmem>>, vector<8x128xf32>
    tpu.vector_store %arg16[%c0_78, %c0_79], %226 {strides = array<i32>} : memref<8x128xf32, #tpu.memory_space<vmem>>, vector<8x128xf32>,
    %c0_80 = arith.constant 0 : index
    %c0_81 = arith.constant 0 : index
    %228 = vector.load %arg17[%c0_80, %c0_81] : memref<8x128xf32, #tpu.memory_space<vmem>>, vector<8x128xf32>
    tpu.vector_store %arg17[%c0_80, %c0_81], %223 {strides = array<i32>} : memref<8x128xf32, #tpu.memory_space<vmem>>, vector<8x128xf32>,
    %c0_82 = arith.constant 0 : index
    %c0_83 = arith.constant 0 : index
    %229 = vector.load %arg18[%c0_82, %c0_83] : memref<8x128xf32, #tpu.memory_space<vmem>>, vector<8x128xf32>
    tpu.vector_store %arg18[%c0_82, %c0_83], %202 {strides = array<i32>} : memref<8x128xf32, #tpu.memory_space<vmem>>, vector<8x128xf32>,
    %c0_84 = arith.constant 0 : index
    %c0_85 = arith.constant 0 : index
    %230 = vector.load %arg19[%c0_84, %c0_85] : memref<8x128xf32, #tpu.memory_space<vmem>>, vector<8x128xf32>
    tpu.vector_store %arg19[%c0_84, %c0_85], %203 {strides = array<i32>} : memref<8x128xf32, #tpu.memory_space<vmem>>, vector<8x128xf32>,
    %c1_i32_86 = arith.constant 1 : i32
    %231 = arith.cmpi eq, %arg0, %c1_i32_86 : i32
    %232 = arith.extui %231 : i1 to i32
    %c0_i32_87 = arith.constant 0 : i32
    %233 = arith.cmpi ne, %232, %c0_i32_87 : i32
    scf.if %233 {
      %234 = arith.truncf %226 : vector<8x128xf32> to vector<8x128xbf16>
      %c0_88 = arith.constant 0 : index
      %c0_89 = arith.constant 0 : index
      %235 = vector.load %arg5[%c0_88, %c0_89] : memref<128x512xbf16, #tpu.memory_space<vmem>>, vector<128x512xbf16>
      %cst_90 = arith.constant dense<0.000000e+00> : vector<8x512xf32>
      %236 = tpu.matmul %234, %235, %cst_90 {dimension_numbers = #tpu.dot_dimension_numbers<[1], [0], [0], [1], [0, 0, 1, 1], [], []>} : vector<8x128xbf16>, vector<128x512xbf16>, vector<8x512xf32> -> vector<8x512xf32>
      %237 = arith.truncf %202 : vector<8x128xf32> to vector<8x128xbf16>
      %c0_91 = arith.constant 0 : index
      %c0_92 = arith.constant 0 : index
      %238 = vector.load %arg6[%c0_91, %c0_92] : memref<128x512xbf16, #tpu.memory_space<vmem>>, vector<128x512xbf16>
      %cst_93 = arith.constant dense<0.000000e+00> : vector<8x512xf32>
      %239 = tpu.matmul %237, %238, %cst_93 {dimension_numbers = #tpu.dot_dimension_numbers<[1], [0], [0], [1], [0, 0, 1, 1], [], []>} : vector<8x128xbf16>, vector<128x512xbf16>, vector<8x512xf32> -> vector<8x512xf32>
      %240 = arith.addf %236, %239 : vector<8x512xf32>
      %241 = vector.broadcast %10 : vector<1x512xf32> to vector<8x512xf32>
      %242 = arith.addf %240, %241 : vector<8x512xf32>
      %243 = vector.extract_strided_slice %242 {offsets = [0, 0], sizes = [8, 384], strides = [1, 1]} : vector<8x512xf32> to vector<8x384xf32>
      %244 = arith.negf %243 : vector<8x384xf32>
      %245 = math.exp %244 : vector<8x384xf32>
      %cst_94 = arith.constant 1.000000e+00 : f32
      %246 = vector.broadcast %cst_94 : f32 to vector<8x384xf32>
      %247 = arith.addf %246, %245 : vector<8x384xf32>
      %248 = arith.divf %246, %247 : vector<8x384xf32>
      %249 = vector.extract_strided_slice %242 {offsets = [0, 384], sizes = [8, 128], strides = [1, 1]} : vector<8x512xf32> to vector<8x128xf32>
      %250 = math.tanh %249 : vector<8x128xf32>
      %251 = vector.extract_strided_slice %248 {offsets = [0, 128], sizes = [8, 128], strides = [1, 1]} : vector<8x384xf32> to vector<8x128xf32>
      %252 = arith.mulf %251, %203 : vector<8x128xf32>
      %253 = vector.extract_strided_slice %248 {offsets = [0, 0], sizes = [8, 128], strides = [1, 1]} : vector<8x384xf32> to vector<8x128xf32>
      %254 = arith.mulf %253, %250 : vector<8x128xf32>
      %255 = arith.addf %252, %254 : vector<8x128xf32>
      %256 = vector.extract_strided_slice %248 {offsets = [0, 256], sizes = [8, 128], strides = [1, 1]} : vector<8x384xf32> to vector<8x128xf32>
      %257 = math.tanh %255 : vector<8x128xf32>
      %258 = arith.mulf %256, %257 : vector<8x128xf32>
      %c0_95 = arith.constant 0 : index
      %c0_96 = arith.constant 0 : index
      %c0_97 = arith.constant 0 : index
      %259 = vector.load %arg12[%c0_95, %c0_96, %c0_97] : memref<2x8x128xf32, #tpu.memory_space<vmem>>, vector<1x8x128xf32>
      %260 = vector.shape_cast %259 : vector<1x8x128xf32> to vector<8x128xf32>
      %261 = vector.shape_cast %226 : vector<8x128xf32> to vector<1x8x128xf32>
      tpu.vector_store %arg12[%c0_95, %c0_96, %c0_97], %261 {strides = array<i32>} : memref<2x8x128xf32, #tpu.memory_space<vmem>>, vector<1x8x128xf32>,
      %c0_98 = arith.constant 0 : index
      %c0_99 = arith.constant 0 : index
      %c0_100 = arith.constant 0 : index
      %262 = vector.load %arg13[%c0_98, %c0_99, %c0_100] : memref<2x8x128xf32, #tpu.memory_space<vmem>>, vector<1x8x128xf32>
      %263 = vector.shape_cast %262 : vector<1x8x128xf32> to vector<8x128xf32>
      %264 = vector.shape_cast %223 : vector<8x128xf32> to vector<1x8x128xf32>
      tpu.vector_store %arg13[%c0_98, %c0_99, %c0_100], %264 {strides = array<i32>} : memref<2x8x128xf32, #tpu.memory_space<vmem>>, vector<1x8x128xf32>,
      %c1 = arith.constant 1 : index
      %c0_101 = arith.constant 0 : index
      %c0_102 = arith.constant 0 : index
      %265 = vector.load %arg12[%c1, %c0_101, %c0_102] : memref<2x8x128xf32, #tpu.memory_space<vmem>>, vector<1x8x128xf32>
      %266 = vector.shape_cast %265 : vector<1x8x128xf32> to vector<8x128xf32>
      %267 = vector.shape_cast %258 : vector<8x128xf32> to vector<1x8x128xf32>
      tpu.vector_store %arg12[%c1, %c0_101, %c0_102], %267 {strides = array<i32>} : memref<2x8x128xf32, #tpu.memory_space<vmem>>, vector<1x8x128xf32>,
      %c1_103 = arith.constant 1 : index
      %c0_104 = arith.constant 0 : index
      %c0_105 = arith.constant 0 : index
      %268 = vector.load %arg13[%c1_103, %c0_104, %c0_105] : memref<2x8x128xf32, #tpu.memory_space<vmem>>, vector<1x8x128xf32>
      %269 = vector.shape_cast %268 : vector<1x8x128xf32> to vector<8x128xf32>
      %270 = vector.shape_cast %255 : vector<8x128xf32> to vector<1x8x128xf32>
      tpu.vector_store %arg13[%c1_103, %c0_104, %c0_105], %270 {strides = array<i32>} : memref<2x8x128xf32, #tpu.memory_space<vmem>>, vector<1x8x128xf32>,
      %c0_106 = arith.constant 0 : index
      %c0_107 = arith.constant 0 : index
      %271 = vector.load %arg10[%c0_106, %c0_107] : memref<1x128xf32, #tpu.memory_space<vmem>>, vector<1x128xf32>
      %272 = vector.broadcast %271 : vector<1x128xf32> to vector<8x128xf32>
      %273 = arith.mulf %258, %272 : vector<8x128xf32>
      %cst_108 = arith.constant dense<0.000000e+00> : vector<8xf32>
      %274 = vector.multi_reduction <add>, %273, %cst_108 [1] : vector<8x128xf32> to vector<8xf32>
      %275 = vector.shape_cast %274 : vector<8xf32> to vector<8x1xf32>
      %c0_109 = arith.constant 0 : index
      %c0_110 = arith.constant 0 : index
      %276 = vector.load %arg11[%c0_109, %c0_110] : memref<1x1xf32, #tpu.memory_space<vmem>>, vector<1x1xf32>
      %277 = vector.broadcast %276 : vector<1x1xf32> to vector<8x1xf32>
      %278 = arith.addf %275, %277 : vector<8x1xf32>
      %279 = arith.negf %278 : vector<8x1xf32>
      %280 = math.exp %279 : vector<8x1xf32>
      %cst_111 = arith.constant 1.000000e+00 : f32
      %281 = vector.broadcast %cst_111 : f32 to vector<8x1xf32>
      %282 = arith.addf %281, %280 : vector<8x1xf32>
      %283 = arith.divf %281, %282 : vector<8x1xf32>
      %c0_112 = arith.constant 0 : index
      %c0_113 = arith.constant 0 : index
      %284 = vector.load %arg14[%c0_112, %c0_113] : memref<8x1xf32, #tpu.memory_space<vmem>>, vector<8x1xf32>
      tpu.vector_store %arg14[%c0_112, %c0_113], %283 {strides = array<i32>} : memref<8x1xf32, #tpu.memory_space<vmem>>, vector<8x1xf32>,
    } else {
    }
    return
  }
  func.func @transform_0(%arg0: i32) -> (i32, i32) {
    %c0_i32 = arith.constant 0 : i32
    %c0_i32_0 = arith.constant 0 : i32
    return %arg0, %c0_i32 : i32, i32
  }
  func.func @transform_1(%arg0: i32) -> (i32, i32) {
    %c0_i32 = arith.constant 0 : i32
    %c0_i32_0 = arith.constant 0 : i32
    %c0_i32_1 = arith.constant 0 : i32
    return %c0_i32, %c0_i32_0 : i32, i32
  }
  func.func @transform_2(%arg0: i32) -> (i32, i32) {
    %c0_i32 = arith.constant 0 : i32
    %c0_i32_0 = arith.constant 0 : i32
    %c0_i32_1 = arith.constant 0 : i32
    return %c0_i32, %c0_i32_0 : i32, i32
  }
  func.func @transform_3(%arg0: i32) -> (i32, i32) {
    %c0_i32 = arith.constant 0 : i32
    %c0_i32_0 = arith.constant 0 : i32
    %c0_i32_1 = arith.constant 0 : i32
    return %c0_i32, %c0_i32_0 : i32, i32
  }
  func.func @transform_4(%arg0: i32) -> (i32, i32) {
    %c0_i32 = arith.constant 0 : i32
    %c0_i32_0 = arith.constant 0 : i32
    %c0_i32_1 = arith.constant 0 : i32
    return %c0_i32, %c0_i32_0 : i32, i32
  }
  func.func @transform_5(%arg0: i32) -> (i32, i32) {
    %c0_i32 = arith.constant 0 : i32
    %c0_i32_0 = arith.constant 0 : i32
    %c0_i32_1 = arith.constant 0 : i32
    return %c0_i32, %c0_i32_0 : i32, i32
  }
  func.func @transform_6(%arg0: i32) -> (i32, i32) {
    %c0_i32 = arith.constant 0 : i32
    %c0_i32_0 = arith.constant 0 : i32
    %c0_i32_1 = arith.constant 0 : i32
    return %c0_i32, %c0_i32_0 : i32, i32
  }
  func.func @transform_7(%arg0: i32) -> (i32, i32, i32) {
    %c0_i32 = arith.constant 0 : i32
    %c0_i32_0 = arith.constant 0 : i32
    %c0_i32_1 = arith.constant 0 : i32
    %c0_i32_2 = arith.constant 0 : i32
    return %c0_i32, %c0_i32_0, %c0_i32_1 : i32, i32, i32
  }
  func.func @transform_8(%arg0: i32) -> (i32, i32, i32) {
    %c0_i32 = arith.constant 0 : i32
    %c0_i32_0 = arith.constant 0 : i32
    %c0_i32_1 = arith.constant 0 : i32
    %c0_i32_2 = arith.constant 0 : i32
    return %c0_i32, %c0_i32_0, %c0_i32_1 : i32, i32, i32
  }
  func.func @transform_9(%arg0: i32) -> (i32, i32) {
    %c0_i32 = arith.constant 0 : i32
    %c0_i32_0 = arith.constant 0 : i32
    %c0_i32_1 = arith.constant 0 : i32
    return %c0_i32, %c0_i32_0 : i32, i32
  }
  func.func @transform_10(%arg0: i32) -> (i32, i32) {
    %c0_i32 = arith.constant 0 : i32
    %c0_i32_0 = arith.constant 0 : i32
    %c0_i32_1 = arith.constant 0 : i32
    return %c0_i32, %c0_i32_0 : i32, i32
  }
  func.func @transform_11(%arg0: i32) -> (i32, i32, i32) {
    %c0_i32 = arith.constant 0 : i32
    %c0_i32_0 = arith.constant 0 : i32
    %c0_i32_1 = arith.constant 0 : i32
    %c0_i32_2 = arith.constant 0 : i32
    return %c0_i32, %c0_i32_0, %c0_i32_1 : i32, i32, i32
  }
  func.func @transform_12(%arg0: i32) -> (i32, i32, i32) {
    %c0_i32 = arith.constant 0 : i32
    %c0_i32_0 = arith.constant 0 : i32
    %c0_i32_1 = arith.constant 0 : i32
    %c0_i32_2 = arith.constant 0 : i32
    return %c0_i32, %c0_i32_0, %c0_i32_1 : i32, i32, i32
  }
  func.func @transform_13(%arg0: i32) -> (i32, i32) {
    %c0_i32 = arith.constant 0 : i32
    %c0_i32_0 = arith.constant 0 : i32
    %c0_i32_1 = arith.constant 0 : i32
    return %c0_i32, %c0_i32_0 : i32, i32
  }
}

</mosaic_0001>

<bundles_post_ra>
// kernel: tpu_custom_call.1
= control target key start
LH: loop header
LB: loop body
LE: loop exit
PB: predicated region body
PF: predicated region fallthrough
CT: control target
= control target key end

     0   :  { %s6030_s0 = inlined_call_operand.hbm [shape: bf16[64,128], index: 0, kind: input, shape index: {}]   ;;  %s6031_s1 = inlined_call_operand.hbm [shape: bf16[128,512], index: 1, kind: input, shape index: {}]   ;;  %s6032_s2 = inlined_call_operand.hbm [shape: bf16[128,512], index: 2, kind: input, shape index: {}]   ;;  %s6033_s3 = inlined_call_operand.hbm [shape: f32[1,512], index: 3, kind: input, shape index: {}]   ;;  %s6034_s4 = inlined_call_operand.hbm [shape: bf16[128,512], index: 4, kind: input, shape index: {}]   ;;  %s6035_s5 = inlined_call_operand.hbm [shape: bf16[128,512], index: 5, kind: input, shape index: {}]   ;;  %s6036_s6 = inlined_call_operand.hbm [shape: f32[1,512], index: 6, kind: input, shape index: {}]   ;;  %s6037_s7 = inlined_call_operand.vmem [shape: f32[2,8,128], index: 7, kind: input, shape index: {}]   ;;  %s6038_s8 = inlined_call_operand.vmem [shape: f32[2,8,128], index: 8, kind: input, shape index: {}]   ;;  %s6039_s9 = inlined_call_operand.vmem [shape: f32[1,128], index: 9, kind: input, shape index: {}]   ;;  %s6040_s10 = inlined_call_operand.<no memory space> [shape: f32[1,1], index: 10, kind: input, shape index: {}]   ;;  %s6041_s11 = inlined_call_operand.hbm [shape: f32[2,8,128], index: 11, kind: output, shape index: {0}]   ;;  %s6042_s12 = inlined_call_operand.hbm [shape: f32[2,8,128], index: 12, kind: output, shape index: {1}]   ;;  %s6043_s13 = inlined_call_operand.vmem [shape: f32[8,1], index: 13, kind: output, shape index: {2}]  }
   0x1   :  { %6165 = sst [smem:[#allocation100_spill]] %s6031_s1  ;;  %v19_v0 = vstv %s6040_s10 }
   0x2   :  { %6166 = sst [smem:[#allocation101_spill]] %s6039_s9  ;;  %20 = vst [vmem:[#allocation7] sm:$0x1] %v19_v0 }
   0x3   :  { %6167 = sst [smem:[#allocation102_spill]] %s6041_s11 }
   0x4   :  { %6168 = sst [smem:[#allocation103_spill]] %s6042_s12 }
   0x5   :  { %6169 = sst [smem:[#allocation104_spill]] %s6043_s13 }
   0x6   :  { %21 = vsyncpa [#allocation9], 0 }
   0x7   :  { %23 = vsyncpa [#allocation9 + $0x1], 0 }
   0x8   :  { %24 = vsyncpa [#allocation12], 0 }
   0x9   :  { %25 = vsyncpa [#allocation15], 0 }
   0xa   :  { %26 = vsyncpa [#allocation18], 0 }
   0xb   :  { %27 = vsyncpa [#allocation10], 0 }
   0xc   :  { %28 = vsyncpa [#allocation22], 0  ;;  %s4845_s27 = smov 0   ;;  %s4847_s28 = smov 0  }
   0xd   :  { %s4849_s29 = smov 0   ;;  %s4851_s30 = smov 0  }
   0xe LB: > { %s4755_s10 = smov [#allocation11]   ;;  %s4866_s15 = sadd.s32 4294967295, %s4753_s30   ;;  %s4753_s30 = sphi %s4851_s30, %s6378_s30   ;;  %s4749_s29 = sphi %s4849_s29, %s6377_s29   ;;  %s4745_s28 = sphi %s4847_s28, %s6376_s28   ;;  %s4741_s27 = sphi %s4845_s27, %s6375_s27  }
   0xf   : > { %s350_s14 = sshll.u32 %s4755_s10, 4  ;;  %p3538_p0 = scmp.ge.s32.totalorder %s4753_s30, 1  ;;  %s4872_s14 = int_to_ptr.vmem [resolvable:$true] %s350_s14 }
  0x10   : > { %p6046_p1 = scmp.eq.s32.totalorder %s4866_s15, 0  ;;  %p338_p2 = scmp.lt.s32.totalorder %s4753_s30, 3 }
  0x11   : > { %s4756_s17 = smov [#allocation14]   ;;  %s4757_s20 = smov [#allocation17]  }
  0x12   : > { %p4874_p4 = pnand %p3538_p0, %p338_p2  ;;  %s377_s18 = sshll.u32 %s4756_s17, 4  ;;  %s4886_s18 = int_to_ptr.vmem [resolvable:$true] %s377_s18 }
  0x13   : > { %s400_s21 = sshll.u32 %s4757_s20, 4  ;;  %s6172_s1 = sld [smem:[#allocation100_spill]]  ;;  %s4888_s21 = int_to_ptr.vmem [resolvable:$true] %s400_s21 }
  0x14   : > { %s6170_s16 = scalar_select %p4874_p4, 1, 0 }
  0x15   : > { %p3827_p5 = pneg %p4874_p4 }
  0x17   : > { %p4882_p6 = pnand %p3827_p5, %p6046_p1 }
  0x19   : > { %s4449_s24 = scalar_lea.hbm %s6172_s1, 4096  ;;  %p4898_p8 = pneg %p4882_p6 }
  0x1a   : > { %p4450_p7 = scmp.ne.s32.totalorder %s6172_s1, %s4449_s24  ;;  %p4456_p11 = scmp.lt.u32.totalorder %s4449_s24, %s6172_s1 }
  0x1c   : > { %p4452_p9 = pnand %p4898_p8, %p4450_p7 }
  0x1e   : > { %p4453_p10 = pneg %p4452_p9 }
  0x20   : > { %p4458_p12 = pnand %p4456_p11, %p4453_p10 }
  0x22   : > { %4461 = shalt.err (!%p4458_p12)
}
  0x23   : > { %s4462_s22 = scalar_lea.vmem %s4872_s14, 4096  ;;  %p4470_p5 = scmp.lt.s32.totalorder %s4872_s14, %s4872_s14 }
  0x24   : > { %p4463_p13 = scmp.ne.s32.totalorder %s4872_s14, %s4462_s22  ;;  %p4471_p3 = scmp.lt.s32.totalorder %s4462_s22, %s4462_s22 }
  0x26   : > { %p4465_p0 = pnand %p4463_p13, %p4898_p8  ;;  %p4472_p7 = por %p4471_p3, %p4470_p5 }
  0x28   : > { %p4466_p2 = pneg %p4465_p0 }
  0x2a   : > { %p4473_p9 = pnand %p4472_p7, %p4466_p2 }
  0x2c   : > { %4476 = shalt.err (!%p4473_p9)
}
  0x2d   : > { %s4758_s23 = smov 256   ;;  %s4759_s24 = smov 16  }
  0x2e   : > { %3830 = dma.hbm_to_vmem [thread:$0]  (!%p4882_p6), %s6172_s1, 4096, %s4872_s14, [#allocation12], %s4758_s23, %s4758_s23, %s4759_s24  }
  0x2f   : > { %s4477_s22 = scalar_lea.hbm %s6033_s3, 64 }
  0x30   : > { %p4478_p3 = scmp.ne.s32.totalorder %s6033_s3, %s4477_s22  ;;  %p4484_p12 = scmp.lt.u32.totalorder %s4477_s22, %s6033_s3 }
  0x32   : > { %p4480_p10 = pnand %p4478_p3, %p4898_p8 }
  0x34   : > { %p4481_p11 = pneg %p4480_p10 }
  0x36   : > { %p4486_p13 = pnand %p4484_p12, %p4481_p11 }
  0x38   : > { %4489 = shalt.err (!%p4486_p13)
}
  0x39   : > { %s4490_s14 = scalar_lea.vmem %s4886_s18, 64  ;;  %p4498_p7 = scmp.lt.s32.totalorder %s4886_s18, %s4886_s18 }
  0x3a   : > { %p4491_p0 = scmp.ne.s32.totalorder %s4886_s18, %s4490_s14  ;;  %p4499_p9 = scmp.lt.s32.totalorder %s4490_s14, %s4490_s14 }
  0x3c   : > { %p4493_p2 = pnand %p4491_p0, %p4898_p8  ;;  %p4500_p3 = por %p4499_p9, %p4498_p7 }
  0x3e   : > { %p4494_p5 = pneg %p4493_p2 }
  0x40   : > { %p4501_p10 = pnand %p4500_p3, %p4494_p5 }
  0x42   : > { %4504 = shalt.err (!%p4501_p10)
}
  0x43   : > { %3836 = dma.hbm_to_vmem [thread:$0]  (!%p4882_p6), %s6033_s3, 64, %s4886_s18, [#allocation15]  }
  0x44   : > { %s4505_s25 = scalar_lea.hbm %s6035_s5, 4096 }
  0x45   : > { %p4506_p11 = scmp.ne.s32.totalorder %s6035_s5, %s4505_s25  ;;  %p4512_p0 = scmp.lt.u32.totalorder %s4505_s25, %s6035_s5 }
  0x47   : > { %p4508_p12 = pnand %p4506_p11, %p4898_p8 }
  0x49   : > { %p4509_p13 = pneg %p4508_p12 }
  0x4b   : > { %p4514_p2 = pnand %p4512_p0, %p4509_p13 }
  0x4d   : > { %4517 = shalt.err (!%p4514_p2)
}
  0x4e   : > { %s4518_s18 = scalar_lea.vmem %s4888_s21, 4096  ;;  %p4526_p3 = scmp.lt.s32.totalorder %s4888_s21, %s4888_s21 }
  0x4f   : > { %p4519_p5 = scmp.ne.s32.totalorder %s4888_s21, %s4518_s18  ;;  %p4527_p10 = scmp.lt.s32.totalorder %s4518_s18, %s4518_s18 }
  0x51   : > { %p4521_p7 = pnand %p4519_p5, %p4898_p8  ;;  %p4528_p11 = por %p4527_p10, %p4526_p3 }
  0x53   : > { %p4522_p9 = pneg %p4521_p7 }
  0x55   : > { %p4529_p12 = pnand %p4528_p11, %p4522_p9 }
  0x57   : > { %4532 = shalt.err (!%p4529_p12)
}
  0x58   : > { %3842 = dma.hbm_to_vmem [thread:$0]  (!%p4882_p6), %s6035_s5, 4096, %s4888_s21, [#allocation18], %s4758_s23, %s4758_s23, %s4759_s24  }
  0x59   : > { %s4760_s11 = smov [#allocation13]   ;;  %s4761_s13 = smov [#allocation16]  }
  0x5a   : > { %s363_s12 = sshll.u32 %s4760_s11, 4  ;;  %s387_s25 = sshll.u32 %s4761_s13, 4  ;;  %s364_s12 = int_to_ptr.vmem [resolvable:$true] %s363_s12  ;;  %s388_s25 = int_to_ptr.vmem [resolvable:$true] %s387_s25 }
  0x5b   : > { %s4533_s20 = scalar_lea.hbm %s6032_s2, 4096 }
  0x5c   : > { %p4534_p13 = scmp.ne.s32.totalorder %s6032_s2, %s4533_s20  ;;  %p4540_p5 = scmp.lt.u32.totalorder %s4533_s20, %s6032_s2 }
  0x5e   : > { %p4536_p0 = pnand %p4534_p13, %p4898_p8 }
  0x60   : > { %p4537_p2 = pneg %p4536_p0 }
  0x62   : > { %p4542_p7 = pnand %p4540_p5, %p4537_p2 }
  0x64   : > { %4545 = shalt.err (!%p4542_p7)
}
  0x65   : > { %s4546_s21 = scalar_lea.vmem %s364_s12, 4096  ;;  %p4554_p11 = scmp.lt.s32.totalorder %s364_s12, %s364_s12 }
  0x66   : > { %p4547_p9 = scmp.ne.s32.totalorder %s364_s12, %s4546_s21  ;;  %p4555_p12 = scmp.lt.s32.totalorder %s4546_s21, %s4546_s21 }
  0x68   : > { %p4549_p3 = pnand %p4547_p9, %p4898_p8  ;;  %p4556_p1 = por %p4555_p12, %p4554_p11 }
  0x6a   : > { %p4550_p10 = pneg %p4549_p3 }
  0x6c   : > { %p4557_p4 = pnand %p4556_p1, %p4550_p10 }
  0x6e   : > { %4560 = shalt.err (!%p4557_p4)
}
  0x6f   : > { %3833 = dma.hbm_to_vmem [thread:$0]  (!%p4882_p6), %s6032_s2, 4096, %s364_s12, [#allocation12], %s4758_s23, %s4758_s23, %s4759_s24  }
  0x70   : > { %s4561_s26 = scalar_lea.hbm %s6034_s4, 4096 }
  0x71   : > { %p4562_p1 = scmp.ne.s32.totalorder %s6034_s4, %s4561_s26  ;;  %p4568_p0 = scmp.lt.u32.totalorder %s4561_s26, %s6034_s4 }
  0x73   : > { %p4564_p4 = pnand %p4562_p1, %p4898_p8 }
  0x75   : > { %p4565_p13 = pneg %p4564_p4 }
  0x77   : > { %p4570_p2 = pnand %p4568_p0, %p4565_p13 }
  0x79   : > { %4573 = shalt.err (!%p4570_p2)
}
  0x7a   : > { %s4574_s14 = scalar_lea.vmem %s388_s25, 4096  ;;  %p4582_p3 = scmp.lt.s32.totalorder %s388_s25, %s388_s25 }
  0x7b   : > { %p4575_p5 = scmp.ne.s32.totalorder %s388_s25, %s4574_s14  ;;  %p4583_p10 = scmp.lt.s32.totalorder %s4574_s14, %s4574_s14 }
  0x7d   : > { %p4577_p7 = pnand %p4575_p5, %p4898_p8  ;;  %p4584_p11 = por %p4583_p10, %p4582_p3 }
  0x7f   : > { %p4578_p9 = pneg %p4577_p7 }
  0x81   : > { %p4585_p12 = pnand %p4584_p11, %p4578_p9 }
  0x83   : > { %4588 = shalt.err (!%p4585_p12)
}
  0x84   : > { %3839 = dma.hbm_to_vmem [thread:$0]  (!%p4882_p6), %s6034_s4, 4096, %s388_s25, [#allocation15], %s4758_s23, %s4758_s23, %s4759_s24  }
  0x85   : > { %s4762_s1 = smov [#allocation19]   ;;  %s4589_s26 = scalar_lea.hbm %s6036_s6, 64 }
  0x86   : > { %s414_s9 = sshll.u32 %s4762_s1, 4  ;;  %p4590_p1 = scmp.ne.s32.totalorder %s6036_s6, %s4589_s26  ;;  %s415_s9 = int_to_ptr.vmem [resolvable:$true] %s414_s9 }
  0x87   : > { %p4596_p0 = scmp.lt.u32.totalorder %s4589_s26, %s6036_s6 }
  0x88   : > { %p4592_p4 = pnand %p4590_p1, %p4898_p8 }
  0x8a   : > { %p4593_p13 = pneg %p4592_p4 }
  0x8c   : > { %p4598_p2 = pnand %p4596_p0, %p4593_p13 }
  0x8e   : > { %4601 = shalt.err (!%p4598_p2)
}
  0x8f   : > { %s4602_s23 = scalar_lea.vmem %s415_s9, 64  ;;  %p4610_p3 = scmp.lt.s32.totalorder %s415_s9, %s415_s9 }
  0x90   : > { %p4603_p5 = scmp.ne.s32.totalorder %s415_s9, %s4602_s23  ;;  %p4611_p10 = scmp.lt.s32.totalorder %s4602_s23, %s4602_s23 }
  0x92   : > { %p4605_p7 = pnand %p4603_p5, %p4898_p8  ;;  %p4612_p11 = por %p4611_p10, %p4610_p3 }
  0x94   : > { %p4606_p9 = pneg %p4605_p7 }
  0x96   : > { %p4613_p12 = pnand %p4612_p11, %p4606_p9 }
  0x98   : > { %4616 = shalt.err (!%p4613_p12)
}
  0x99   : > { %3845 = dma.hbm_to_vmem [thread:$0]  (!%p4882_p6), %s6036_s6, 64, %s415_s9, [#allocation18]  }
  0x9a   : > { %s5032_s10 = sadd.s32 1, %s4753_s30   ;;  %s41_s19 = sadd.s32 1, %s4749_s29 }
  0x9b   : > { %s38_s14 = ssub.s32 %s4753_s30, %s5032_s10  ;;  %p48_p8 = scmp.ne.s32.totalorder %s4749_s29, %s4745_s28 }
  0x9c   : > { %p39_p1 = scmp.eq.s32.totalorder %s38_s14, 0  ;;  %p49_p4 = scmp.eq.s32.totalorder %s4753_s30, 0 }
  0x9d   : > { %p54_p13 = scmp.ne.s32.totalorder %s4745_s28, %s4741_s27  ;;  %p3856_p0 = scmp.lt.s32.totalorder %s4753_s30, 2 }
  0x9e   : > { %s5044_s12 = scalar_select %p39_p1, %s4749_s29, %s41_s19  }
  0x9f   : > { %p50_p2 = por %p49_p4, %p48_p8  ;;  %p6174_p5 = scmp.eq.s32.totalorder %s4866_s15, 0 }
  0xa0   : > { %s437_s1 = sand.u32 1, %s4749_s29   ;;  %s3792_s9 = sshll.u32 %s4753_s30, 8 }
  0xa1   : > { %p5048_p7 = por %p6174_p5, %p54_p13  ;;  %s3546_s11 = sshll.u32 %s437_s1, 4 }
  0xa2   : > { %s5057_s17 = scalar_lea.hbm %s6030_s0, %s3792_s9  ;;  %s441_s27 = scalar_lea.vmem [#allocation8], %s3546_s11 }
  0xa3   : > { %s448_s20 = sshll.u32 %s441_s27, 4  ;;  %p5059_p6 = pnand %p3856_p0, %p50_p2  ;;  %s5063_s20 = int_to_ptr.vmem [resolvable:$true] %s448_s20 }
  0xa4   : > { %s5065_s30 = scalar_lea.sflag [#allocation9], %s437_s1  ;;  %s4617_s18 = scalar_lea.hbm %s5057_s17, 256 }
  0xa5   : > { %p4618_p9 = scmp.ne.s32.totalorder %s5057_s17, %s4617_s18  ;;  %p4619_p3 = pneg %p5059_p6 }
  0xa6   : > { %s4622_s25 = scalar_lea.hbm %s6030_s0, 512  ;;  %p4623_p12 = scmp.lt.u32.totalorder %s5057_s17, %s6030_s0 }
  0xa7   : > { %p4620_p10 = pnand %p4619_p3, %p4618_p9  ;;  %p4624_p8 = scmp.lt.u32.totalorder %s4622_s25, %s4617_s18 }
  0xa8   : > { %p4626_p4 = scmp.lt.u32.totalorder %s4617_s18, %s5057_s17 }
  0xa9   : > { %p4621_p11 = pneg %p4620_p10  ;;  %p4625_p1 = por %p4624_p8, %p4623_p12 }
  0xab   : > { %p4627_p13 = por %p4626_p4, %p4625_p1 }
  0xad   : > { %p4628_p0 = pnand %p4627_p13, %p4621_p11 }
  0xaf   : > { %4631 = shalt.err (!%p4628_p0)
}
  0xb0   : > { %s4632_s1 = scalar_lea.vmem %s5063_s20, 256  ;;  %s4763_s9 = smov [#allocation8]  }
  0xb1   : > { %p4633_p2 = scmp.ne.s32.totalorder %s5063_s20, %s4632_s1  ;;  %s4637_s11 = sshll.u32 %s4763_s9, 4  ;;  %s4638_s11 = int_to_ptr.vmem [resolvable:$false] %s4637_s11 }
  0xb2   : > { %s4639_s13 = scalar_lea.vmem %s4638_s11, 512  ;;  %p4640_p10 = scmp.lt.s32.totalorder %s5063_s20, %s4638_s11 }
  0xb3   : > { %p4635_p5 = pnand %p4633_p2, %p4619_p3  ;;  %p4641_p12 = scmp.lt.s32.totalorder %s4639_s13, %s4632_s1 }
  0xb5   : > { %p4636_p9 = pneg %p4635_p5  ;;  %p4642_p8 = por %p4641_p12, %p4640_p10 }
  0xb7   : > { %p4643_p1 = pnand %p4642_p8, %p4636_p9 }
  0xb9   : > { %4646 = shalt.err (!%p4643_p1)
}
  0xba   : > { %s4764_s26 = smov 64   ;;  %s4765_s27 = smov 4  }
  0xbb   : > { %3849 = dma.hbm_to_vmem [thread:$0]  (!%p5059_p6), %s5057_s17, 256, %s5063_s20, %s5065_s30, %s4764_s26, %s4764_s26, %s4765_s27  }
  0xbc   : > { %p6177_p3 = scmp.ne.s32.totalorder %s6170_s16, 0 }
  0xbe   : > { %460 = sbr.rel (%p6177_p3) target bundleno = 2040 (0x7f8), region = 64 }
  0xc5   : > { %s462_s18 = sand.u32 1, %s4745_s28  }
  0xc6   : > { %s5096_s23 = sshll.u32 %s462_s18, 4  ;;  %s463_s24 = scalar_lea.sflag [#allocation9], %s462_s18 }
  0xc7   : > { %s466_s25 = scalar_lea.vmem [#allocation8], %s5096_s23 }
  0xc8   : > { %4716 = dma.done.wait (%p5048_p7), %s463_s24, 256  }
  0xc9   : > { %4718 = vsyncadd (%p5048_p7), %s463_s24, 4294967040  ;;  %p6178_p11 = scmp.eq.s32.totalorder %s4866_s15, 0 }
  0xcb   : > { %4720 = dma.done.wait (%p6178_p11), [#allocation12], 8192   ;;  %p6179_p6 = pmov %p6178_p11 }
  0xcd   : > { %4722 = vsyncadd (%p6179_p6), [#allocation12], 4294959104  ;;  %p6180_p4 = pmov %p6179_p6 }
  0xcf   : > { %4724 = dma.done.wait (%p6180_p4), [#allocation15], 4160   ;;  %p6181_p13 = pmov %p6180_p4 }
  0xd0   : > { %p6182_p0 = pmov %p6180_p4 }
  0xd1   : > { %4726 = vsyncadd (%p6181_p13), [#allocation15], 4294963136 }
  0xd2   : > { %4728 = dma.done.wait (%p6182_p0), [#allocation18], 4160   ;;  %p6183_p2 = pmov %p6182_p0 }
  0xd3   : > { %p6184_p7 = scmp.ne.s32.totalorder %s4866_s15, 0 }
  0xd4   : > { %4730 = vsyncadd (%p6183_p2), [#allocation18], 4294963136  ;;  %v534_v1 = vld [vmem:[%s6037_s7] sm:$0xff] (!%p6184_p7)  ;;  %v3558_v3 = vld [vmem:[%s6037_s7 + $0x8] sm:$0xff] (!%p6184_p7) }
  0xd5   : > { %533 = sbr.rel (%p6184_p7) target bundleno = 220 (0xdc), region = 96  ;;  %v536_v2 = vld [vmem:[%s6038_s8] sm:$0xff] (!%p6184_p7)  ;;  %535 = vst [vmem:[#allocation3] sm:$0xff] (!%p6184_p7), %v534_v1  ;;  %540 = vst [vmem:[#allocation5] sm:$0xff] (!%p6184_p7), %v3558_v3  ;;  %v3559_v4 = vld [vmem:[%s6038_s8 + $0x8] sm:$0xff] (!%p6184_p7) }
  0xd6   : > { %537 = vst [vmem:[#allocation4] sm:$0xff] (!%p6184_p7), %v536_v2  ;;  %543 = vst [vmem:[#allocation6] sm:$0xff] (!%p6184_p7), %v3559_v4 }
  0xdc PF: > { %v3915_v5 = vld [vmem:[#allocation11 + $0x4] ss:$16 sps:$4 sm:$0xff]   ;;  %v3917_v6 = vld [vmem:[#allocation11 + $0xc] ss:$16 sps:$4 sm:$0xff]   ;;  %v6048_v7 = vmov 0   ;;  %s5556_s1 = sshll.u32 %s4866_s15, 2 }
  0xdd   : > { %806 = vmatprep.mubr.bf16.mxu0 %v6048_v7  ;;  %859 = vmatprep.mubr.bf16.mxu1 %v6048_v7  ;;  %v3919_v8 = vld [vmem:[#allocation11] ss:$16 sps:$4 sm:$0xff]   ;;  %v3920_v9 = vld [vmem:[#allocation11 + $0x8] ss:$16 sps:$4 sm:$0xff]   ;;  %v3921_v10 = vld [vmem:[#allocation11 + $0x24] ss:$16 sps:$4 sm:$0xff]  }
  0xde   : > { %774 = vmatprep.subr.bf16.mxu0 %v3915_v5  ;;  %827 = vmatprep.subr.bf16.mxu1 %v3917_v6  ;;  %v3923_v11 = vld [vmem:[#allocation11 + $0x2c] ss:$16 sps:$4 sm:$0xff]   ;;  %v3925_v12 = vld [vmem:[#allocation11 + $0x20] ss:$16 sps:$4 sm:$0xff]   ;;  %v3926_v13 = vld [vmem:[#allocation11 + $0x28] ss:$16 sps:$4 sm:$0xff]  }
  0xdf   : > { %775 = vmatpush1.bf16.msra.mxu0 %v3919_v8  ;;  %828 = vmatpush1.bf16.msra.mxu1 %v3920_v9  ;;  %v3927_v14 = vld [vmem:[#allocation11 + $0x44] ss:$16 sps:$4 sm:$0xff]   ;;  %v3929_v15 = vld [vmem:[#allocation11 + $0x4c] ss:$16 sps:$4 sm:$0xff]   ;;  %v3931_v16 = vld [vmem:[#allocation11 + $0x40] ss:$16 sps:$4 sm:$0xff]  }
  0xe0   : > { %776 = vmatprep.subr.bf16.mxu0 %v3921_v10  ;;  %829 = vmatprep.subr.bf16.mxu1 %v3923_v11  ;;  %v3932_v17 = vld [vmem:[#allocation11 + $0x48] ss:$16 sps:$4 sm:$0xff]   ;;  %v3933_v18 = vld [vmem:[#allocation11 + $0x64] ss:$16 sps:$4 sm:$0xff]   ;;  %v3935_v19 = vld [vmem:[#allocation11 + $0x6c] ss:$16 sps:$4 sm:$0xff]  }
  0xe1   : > { %v3937_v20 = vld [vmem:[#allocation11 + $0x60] ss:$16 sps:$4 sm:$0xff]   ;;  %v3938_v21 = vld [vmem:[#allocation11 + $0x68] ss:$16 sps:$4 sm:$0xff]   ;;  %v3939_v22 = vld [vmem:[#allocation11 + $0x84] ss:$16 sps:$4 sm:$0xff]  }
  0xe2   : > { %v3941_v23 = vld [vmem:[#allocation11 + $0x8c] ss:$16 sps:$4 sm:$0xff]   ;;  %v3943_v24 = vld [vmem:[#allocation11 + $0x80] ss:$16 sps:$4 sm:$0xff]   ;;  %v3944_v25 = vld [vmem:[#allocation11 + $0x88] ss:$16 sps:$4 sm:$0xff]  }
  0xe3   : > { %777 = vmatpush1.bf16.msra.mxu0 %v3925_v12  ;;  %830 = vmatpush1.bf16.msra.mxu1 %v3926_v13  ;;  %v3945_v26 = vld [vmem:[#allocation11 + $0xa4] ss:$16 sps:$4 sm:$0xff]   ;;  %v3947_v27 = vld [vmem:[#allocation11 + $0xac] ss:$16 sps:$4 sm:$0xff]   ;;  %v3949_v28 = vld [vmem:[#allocation11 + $0xa0] ss:$16 sps:$4 sm:$0xff]  }
  0xe4   : > { %778 = vmatprep.subr.bf16.mxu0 %v3927_v14  ;;  %831 = vmatprep.subr.bf16.mxu1 %v3929_v15  ;;  %v3950_v29 = vld [vmem:[#allocation11 + $0xa8] ss:$16 sps:$4 sm:$0xff]   ;;  %v3951_v30 = vld [vmem:[#allocation11 + $0xc4] ss:$16 sps:$4 sm:$0xff]   ;;  %v3953_v31 = vld [vmem:[#allocation11 + $0xcc] ss:$16 sps:$4 sm:$0xff]  }
  0xe5   : > { %v3955_v32 = vld [vmem:[#allocation11 + $0xc0] ss:$16 sps:$4 sm:$0xff]   ;;  %v3956_v33 = vld [vmem:[#allocation11 + $0xc8] ss:$16 sps:$4 sm:$0xff]   ;;  %v3957_v34 = vld [vmem:[#allocation11 + $0xe4] ss:$16 sps:$4 sm:$0xff]  }
  0xe6   : > { %v3959_v35 = vld [vmem:[#allocation11 + $0xec] ss:$16 sps:$4 sm:$0xff]   ;;  %v3961_v36 = vld [vmem:[#allocation11 + $0xe0] ss:$16 sps:$4 sm:$0xff]   ;;  %v3962_v37 = vld [vmem:[#allocation11 + $0xe8] ss:$16 sps:$4 sm:$0xff]  }
  0xe7   : > { %779 = vmatpush1.bf16.msra.mxu0 %v3931_v16  ;;  %832 = vmatpush1.bf16.msra.mxu1 %v3932_v17  ;;  %v5131_v38 = vld [vmem:[#allocation17 + $0x4] ss:$16 sps:$4 sm:$0xff]   ;;  %v5133_v39 = vld [vmem:[#allocation17 + $0xc] ss:$16 sps:$4 sm:$0xff]   ;;  %v5137_v41 = vld [vmem:[#allocation17] ss:$16 sps:$4 sm:$0xff]  }
  0xe8   : > { %780 = vmatprep.subr.bf16.mxu0 %v3933_v18  ;;  %833 = vmatprep.subr.bf16.mxu1 %v3935_v19  ;;  %v3963_v40 = vld [vmem:[%s466_s25] sm:$0xff]   ;;  %v5139_v42 = vld [vmem:[#allocation17 + $0x8] ss:$16 sps:$4 sm:$0xff]   ;;  %v5141_v43 = vld [vmem:[#allocation17 + $0x24] ss:$16 sps:$4 sm:$0xff]   ;;  %p1501_p5 = scmp.gt.s32.totalorder %s5556_s1, 0 }
  0xe9   : > { %v5145_v44 = vld [vmem:[#allocation17 + $0x2c] ss:$16 sps:$4 sm:$0xff]   ;;  %v5147_v45 = vld [vmem:[#allocation17 + $0x20] ss:$16 sps:$4 sm:$0xff]   ;;  %v5151_v46 = vld [vmem:[#allocation17 + $0x28] ss:$16 sps:$4 sm:$0xff]  }
  0xea   : > { %v5155_v47 = vld [vmem:[#allocation17 + $0x44] ss:$16 sps:$4 sm:$0xff]   ;;  %v5157_v48 = vld [vmem:[#allocation17 + $0x4c] ss:$16 sps:$4 sm:$0xff]   ;;  %v5159_v49 = vld [vmem:[#allocation17 + $0x40] ss:$16 sps:$4 sm:$0xff]  }
  0xeb   : > { %781 = vmatpush1.bf16.msra.mxu0 %v3937_v20  ;;  %834 = vmatpush1.bf16.msra.mxu1 %v3938_v21  ;;  %v4000_v50 = vld [vmem:[%s466_s25 + $0x8] sm:$0xff]   ;;  %v5173_v53 = vld [vmem:[#allocation17 + $0x6c] ss:$16 sps:$4 sm:$0xff]   ;;  %v5177_v54 = vld [vmem:[#allocation17 + $0x60] ss:$16 sps:$4 sm:$0xff]   ;;  %s2010_s11 = sadd.s32 1, %s5556_s1 }
  0xec   : > { %782 = vmatprep.subr.bf16.mxu0 %v3939_v22  ;;  %835 = vmatprep.subr.bf16.mxu1 %v3941_v23  ;;  %v5167_v51 = vld [vmem:[#allocation17 + $0x48] ss:$16 sps:$4 sm:$0xff]   ;;  %v5171_v52 = vld [vmem:[#allocation17 + $0x64] ss:$16 sps:$4 sm:$0xff]   ;;  %v5185_v57 = vld [vmem:[#allocation17 + $0x8c] ss:$16 sps:$4 sm:$0xff]  }
  0xed   : > { %v5179_v55 = vld [vmem:[#allocation17 + $0x68] ss:$16 sps:$4 sm:$0xff]   ;;  %v5181_v56 = vld [vmem:[#allocation17 + $0x84] ss:$16 sps:$4 sm:$0xff]   ;;  %v5189_v58 = vld [vmem:[#allocation17 + $0x80] ss:$16 sps:$4 sm:$0xff]  }
  0xee   : > { %v5193_v59 = vld [vmem:[#allocation17 + $0x88] ss:$16 sps:$4 sm:$0xff]   ;;  %v5197_v60 = vld [vmem:[#allocation17 + $0xa4] ss:$16 sps:$4 sm:$0xff]   ;;  %v5199_v61 = vld [vmem:[#allocation17 + $0xac] ss:$16 sps:$4 sm:$0xff]  }
  0xef   : > { %783 = vmatpush1.bf16.msra.mxu0 %v3943_v24  ;;  %836 = vmatpush1.bf16.msra.mxu1 %v3944_v25  ;;  %6185 = vst [vmem:[#allocation29_spill] sm:$0xff] %v5197_v60  ;;  %6186 = vst [vmem:[#allocation30_spill] sm:$0xff] %v5199_v61  ;;  %v5203_v62 = vld [vmem:[#allocation17 + $0xa0] ss:$16 sps:$4 sm:$0xff]   ;;  %v5205_v63 = vld [vmem:[#allocation17 + $0xa8] ss:$16 sps:$4 sm:$0xff]  }
  0xf0   : > { %784 = vmatprep.subr.bf16.mxu0 %v3945_v26  ;;  %837 = vmatprep.subr.bf16.mxu1 %v3947_v27  ;;  %6187 = vst [vmem:[#allocation31_spill] sm:$0xff] %v5203_v62  ;;  %6188 = vst [vmem:[#allocation32_spill] sm:$0xff] %v5205_v63  ;;  %v5207_v0 = vld [vmem:[#allocation17 + $0xc4] ss:$16 sps:$4 sm:$0xff]   ;;  %v5211_v1 = vld [vmem:[#allocation17 + $0xcc] ss:$16 sps:$4 sm:$0xff]  }
  0xf1   : > { %6189 = vst [vmem:[#allocation33_spill] sm:$0xff] %v5207_v0  ;;  %6190 = vst [vmem:[#allocation34_spill] sm:$0xff] %v5211_v1  ;;  %v5213_v2 = vld [vmem:[#allocation17 + $0xc0] ss:$16 sps:$4 sm:$0xff]   ;;  %v5217_v3 = vld [vmem:[#allocation17 + $0xc8] ss:$16 sps:$4 sm:$0xff]  }
  0xf2   : > { %6191 = vst [vmem:[#allocation35_spill] sm:$0xff] %v5213_v2  ;;  %6192 = vst [vmem:[#allocation36_spill] sm:$0xff] %v5217_v3  ;;  %v5221_v4 = vld [vmem:[#allocation17 + $0xe4] ss:$16 sps:$4 sm:$0xff]   ;;  %v5223_v5 = vld [vmem:[#allocation17 + $0xec] ss:$16 sps:$4 sm:$0xff]  }
  0xf3   : > { %785 = vmatpush1.bf16.msra.mxu0 %v3949_v28  ;;  %838 = vmatpush1.bf16.msra.mxu1 %v3950_v29  ;;  %6193 = vst [vmem:[#allocation37_spill] sm:$0xff] %v5221_v4  ;;  %6194 = vst [vmem:[#allocation38_spill] sm:$0xff] %v5223_v5  ;;  %v5225_v6 = vld [vmem:[#allocation17 + $0xe0] ss:$16 sps:$4 sm:$0xff]   ;;  %v5229_v8 = vld [vmem:[#allocation17 + $0xe8] ss:$16 sps:$4 sm:$0xff]  }
  0xf4   : > { %786 = vmatprep.subr.bf16.mxu0 %v3951_v30  ;;  %839 = vmatprep.subr.bf16.mxu1 %v3953_v31  ;;  %6195 = vst [vmem:[#allocation39_spill] sm:$0xff] %v5225_v6  ;;  %6196 = vst [vmem:[#allocation40_spill] sm:$0xff] %v5229_v8  ;;  %v5231_v9 = vld [vmem:[#allocation5] sm:$0xff]  ;;  %v5233_v10 = vld [vmem:[#allocation16 + $0x4] ss:$16 sps:$4 sm:$0xff]   ;;  %p2011_p9 = scmp.gt.s32.totalorder %s2010_s11, 0 }
  0xf5   : > { %6197 = vst [vmem:[#allocation41_spill] sm:$0xff] %v5233_v10  ;;  %v5237_v11 = vld [vmem:[#allocation16 + $0xc] ss:$16 sps:$4 sm:$0xff]   ;;  %v934_v12 = vpack.c.bf16 %v5231_v9, %v5231_v9  ;;  %v5241_v13 = vld [vmem:[#allocation16] ss:$16 sps:$4 sm:$0xff]   ;;  %s2328_s26 = sadd.s32 2, %s5556_s1 }
  0xf6   : > { %6198 = vst [vmem:[#allocation42_spill] sm:$0xff] %v5237_v11  ;;  %v5245_v14 = vld [vmem:[#allocation16 + $0x8] ss:$16 sps:$4 sm:$0xff]   ;;  %v5249_v15 = vld [vmem:[#allocation16 + $0x24] ss:$16 sps:$4 sm:$0xff]   ;;  %p2329_p10 = scmp.gt.s32.totalorder %s2328_s26, 0 }
  0xf7   : > { %787 = vmatpush1.bf16.msra.mxu0 %v3955_v32  ;;  %840 = vmatpush1.bf16.msra.mxu1 %v3956_v33  ;;  %v5251_v16 = vld [vmem:[#allocation16 + $0x2c] ss:$16 sps:$4 sm:$0xff]   ;;  %v5253_v17 = vld [vmem:[#allocation16 + $0x20] ss:$16 sps:$4 sm:$0xff]   ;;  %v5257_v18 = vld [vmem:[#allocation16 + $0x28] ss:$16 sps:$4 sm:$0xff]  }
  0xf8   : > { %788 = vmatprep.subr.bf16.mxu0 %v3957_v34  ;;  %841 = vmatprep.subr.bf16.mxu1 %v3959_v35  ;;  %v5259_v19 = vld [vmem:[#allocation16 + $0x44] ss:$16 sps:$4 sm:$0xff]   ;;  %v5263_v20 = vld [vmem:[#allocation16 + $0x4c] ss:$16 sps:$4 sm:$0xff]   ;;  %v5267_v21 = vld [vmem:[#allocation16 + $0x40] ss:$16 sps:$4 sm:$0xff]  }
  0xf9   : > { %v5269_v22 = vld [vmem:[#allocation16 + $0x48] ss:$16 sps:$4 sm:$0xff]   ;;  %v5273_v23 = vld [vmem:[#allocation16 + $0x64] ss:$16 sps:$4 sm:$0xff]   ;;  %v5277_v24 = vld [vmem:[#allocation16 + $0x6c] ss:$16 sps:$4 sm:$0xff]  }
  0xfa   : > { %v5279_v25 = vld [vmem:[#allocation16 + $0x60] ss:$16 sps:$4 sm:$0xff]   ;;  %v5283_v26 = vld [vmem:[#allocation16 + $0x68] ss:$16 sps:$4 sm:$0xff]   ;;  %v5285_v27 = vld [vmem:[#allocation16 + $0x84] ss:$16 sps:$4 sm:$0xff]  }
  0xfb   : > { %789 = vmatpush1.bf16.msra.mxu0 %v3961_v36  ;;  %842 = vmatpush1.bf16.msra.mxu1 %v3962_v37  ;;  %v5289_v28 = vld [vmem:[#allocation16 + $0x8c] ss:$16 sps:$4 sm:$0xff]   ;;  %v5291_v29 = vld [vmem:[#allocation16 + $0x80] ss:$16 sps:$4 sm:$0xff]   ;;  %v5293_v30 = vld [vmem:[#allocation16 + $0x88] ss:$16 sps:$4 sm:$0xff]  }
  0xfc   : > { %1127 = vmatprep.subr.bf16.mxu0 %v5131_v38  ;;  %1168 = vmatprep.subr.bf16.mxu1 %v5133_v39  ;;  %v5297_v31 = vld [vmem:[#allocation16 + $0xa4] ss:$16 sps:$4 sm:$0xff]   ;;  %v5301_v32 = vld [vmem:[#allocation16 + $0xac] ss:$16 sps:$4 sm:$0xff]   ;;  %v5303_v33 = vld [vmem:[#allocation16 + $0xa0] ss:$16 sps:$4 sm:$0xff]  }
  0xfd   : > { %6199 = vst [vmem:[#allocation43_spill] sm:$0xff] %v5297_v31  ;;  %6200 = vst [vmem:[#allocation44_spill] sm:$0xff] %v5301_v32  ;;  %v5307_v34 = vld [vmem:[#allocation16 + $0xa8] ss:$16 sps:$4 sm:$0xff]   ;;  %v5309_v35 = vld [vmem:[#allocation16 + $0xc4] ss:$16 sps:$4 sm:$0xff]  }
  0xfe   : > { %807 = vmatmul.mubr.bf16.vlgmr.msra.gmra.mrb[0].mxu0 %v3963_v40  ;;  %860 = vmatmul.mubr.bf16.vlgmr.msra.gmra.mrb[0].mxu1 %v3963_v40  ;;  %6201 = vst [vmem:[#allocation45_spill] sm:$0xff] %v5303_v33  ;;  %6202 = vst [vmem:[#allocation46_spill] sm:$0xff] %v5307_v34  ;;  %v5313_v36 = vld [vmem:[#allocation16 + $0xcc] ss:$16 sps:$4 sm:$0xff]   ;;  %v5317_v37 = vld [vmem:[#allocation16 + $0xc0] ss:$16 sps:$4 sm:$0xff]  }
  0xff   : > { %1128 = vmatpush1.bf16.msra.mxu0 %v5137_v41  ;;  %1169 = vmatpush1.bf16.msra.mxu1 %v5139_v42  ;;  %6203 = vst [vmem:[#allocation47_spill] sm:$0xff] %v5309_v35  ;;  %6204 = vst [vmem:[#allocation48_spill] sm:$0xff] %v5313_v36  ;;  %v5319_v40 = vld [vmem:[#allocation16 + $0xc8] ss:$16 sps:$4 sm:$0xff]   ;;  %s1502_s9 = scalar_select %p1501_p5, 1, 0 }
 0x100   : > { %1129 = vmatprep.subr.bf16.mxu0 %v5141_v43  ;;  %1170 = vmatprep.subr.bf16.mxu1 %v5145_v44  ;;  %6205 = vst [vmem:[#allocation49_spill] sm:$0xff] %v5317_v37  ;;  %6206 = vst [vmem:[#allocation50_spill] sm:$0xff] %v5319_v40  ;;  %s2012_s13 = scalar_select %p2011_p9, 1, 0 }
 0x101   : > { %816 = vmatprep.mubr.bf16.mxu0 %v6048_v7  ;;  %869 = vmatprep.mubr.bf16.mxu1 %v6048_v7  ;;  %s2330_s27 = scalar_select %p2329_p10, 1, 0 }
 0x102   : > { %s2646_s18 = sadd.s32 3, %s5556_s1  ;;  %p3715_p8 = scmp.ne.s32.totalorder %s4866_s15, 1 }
 0x103   : > { %1130 = vmatpush1.bf16.msra.mxu0 %v5147_v45  ;;  %1171 = vmatpush1.bf16.msra.mxu1 %v5151_v46  ;;  %p2647_p12 = scmp.gt.s32.totalorder %s2646_s18, 0  ;;  %s6371_s16 = sld [smem:[#allocation101_spill]] (!%p3715_p8)  ;;  %vm3386_vm4 = vcmask (!%p3715_p8), 7168  }
 0x104   : > { %1131 = vmatprep.subr.bf16.mxu0 %v5155_v47  ;;  %1172 = vmatprep.subr.bf16.mxu1 %v5157_v48  ;;  %s6372_s20 = sld [smem:[#allocation104_spill]] (!%p3715_p8) }
 0x105   : > { %s2648_s23 = scalar_select %p2647_p12, 1, 0 }
 0x106   : > { %817 = vmatmul.mubr.bf16.gmra.mrb[4].mxu0 %v4000_v50  ;;  %870 = vmatmul.mubr.bf16.gmra.mrb[4].mxu1 %v4000_v50  ;;  %v5323_v50 = vld [vmem:[#allocation16 + $0xe4] ss:$16 sps:$4 sm:$0xff]  }
 0x107   : > { %1132 = vmatpush1.bf16.msra.mxu0 %v5159_v49  ;;  %1173 = vmatpush1.bf16.msra.mxu1 %v5167_v51  ;;  %6207 = vst [vmem:[#allocation51_spill] sm:$0xff] %v5323_v50 }
 0x108   : > { %1133 = vmatprep.subr.bf16.mxu0 %v5171_v52  ;;  %1174 = vmatprep.subr.bf16.mxu1 %v5173_v53 }
 0x109   : > { %1159 = vmatprep.mubr.bf16.mxu0 %v6048_v7  ;;  %1200 = vmatprep.mubr.bf16.mxu1 %v6048_v7 }
 0x10b   : > { %1134 = vmatpush1.bf16.msra.mxu0 %v5177_v54  ;;  %1175 = vmatpush1.bf16.msra.mxu1 %v5179_v55 }
 0x10c   : > { %1135 = vmatprep.subr.bf16.mxu0 %v5181_v56  ;;  %1176 = vmatprep.subr.bf16.mxu1 %v5185_v57 }
 0x10f   : > { %1136 = vmatpush1.bf16.msra.mxu0 %v5189_v58  ;;  %1177 = vmatpush1.bf16.msra.mxu1 %v5193_v59 }
 0x110   : > { %1137 = vmatprep.subr.bf16.mxu0 %v5197_v60  ;;  %1178 = vmatprep.subr.bf16.mxu1 %v5199_v61 }
 0x113   : > { %1138 = vmatpush1.bf16.msra.mxu0 %v5203_v62  ;;  %1179 = vmatpush1.bf16.msra.mxu1 %v5205_v63 }
 0x114   : > { %1139 = vmatprep.subr.bf16.mxu0 %v5207_v0  ;;  %1180 = vmatprep.subr.bf16.mxu1 %v5211_v1 }
 0x117   : > { %1140 = vmatpush1.bf16.msra.mxu0 %v5213_v2  ;;  %1181 = vmatpush1.bf16.msra.mxu1 %v5217_v3 }
 0x118   : > { %1141 = vmatprep.subr.bf16.mxu0 %v5221_v4  ;;  %1182 = vmatprep.subr.bf16.mxu1 %v5223_v5 }
 0x11b   : > { %1142 = vmatpush1.bf16.msra.mxu0 %v5225_v6  ;;  %1183 = vmatpush1.bf16.msra.mxu1 %v5229_v8 }
 0x11c   : > { %1369 = vmatprep.subr.bf16.mxu0 %v5233_v10  ;;  %1410 = vmatprep.subr.bf16.mxu1 %v5237_v11 }
 0x11e   : > { %1160 = vmatmul.mubr.bf16.vlgmr.msra.gmra.mrb[8].mxu0 %v934_v12  ;;  %1201 = vmatmul.mubr.bf16.vlgmr.msra.gmra.mrb[8].mxu1 %v934_v12  ;;  %v5325_v12 = vld [vmem:[#allocation16 + $0xec] ss:$16 sps:$4 sm:$0xff]  }
 0x11f   : > { %1370 = vmatpush1.bf16.msra.mxu0 %v5241_v13  ;;  %1411 = vmatpush1.bf16.msra.mxu1 %v5245_v14  ;;  %6208 = vst [vmem:[#allocation52_spill] sm:$0xff] %v5325_v12 }
 0x120   : > { %1371 = vmatprep.subr.bf16.mxu0 %v5249_v15  ;;  %1412 = vmatprep.subr.bf16.mxu1 %v5251_v16 }
 0x121   : > { %1401 = vmatprep.mubr.bf16.mxu0 %v6048_v7  ;;  %1442 = vmatprep.mubr.bf16.mxu1 %v6048_v7  ;;  %v5329_v7 = vld [vmem:[#allocation16 + $0xe0] ss:$16 sps:$4 sm:$0xff]  }
 0x122   : > { %6209 = vst [vmem:[#allocation53_spill] sm:$0xff] %v5329_v7 }
 0x123   : > { %1372 = vmatpush1.bf16.msra.mxu0 %v5253_v17  ;;  %1413 = vmatpush1.bf16.msra.mxu1 %v5257_v18 }
 0x124   : > { %1373 = vmatprep.subr.bf16.mxu0 %v5259_v19  ;;  %1414 = vmatprep.subr.bf16.mxu1 %v5263_v20 }
 0x127   : > { %1374 = vmatpush1.bf16.msra.mxu0 %v5267_v21  ;;  %1415 = vmatpush1.bf16.msra.mxu1 %v5269_v22 }
 0x128   : > { %1375 = vmatprep.subr.bf16.mxu0 %v5273_v23  ;;  %1416 = vmatprep.subr.bf16.mxu1 %v5277_v24 }
 0x12b   : > { %1376 = vmatpush1.bf16.msra.mxu0 %v5279_v25  ;;  %1417 = vmatpush1.bf16.msra.mxu1 %v5283_v26 }
 0x12c   : > { %1377 = vmatprep.subr.bf16.mxu0 %v5285_v27  ;;  %1418 = vmatprep.subr.bf16.mxu1 %v5289_v28 }
 0x12f   : > { %1378 = vmatpush1.bf16.msra.mxu0 %v5291_v29  ;;  %1419 = vmatpush1.bf16.msra.mxu1 %v5293_v30 }
 0x130   : > { %1379 = vmatprep.subr.bf16.mxu0 %v5297_v31  ;;  %1420 = vmatprep.subr.bf16.mxu1 %v5301_v32  ;;  %v5383_v31 = vld [vmem:[#allocation13 + $0x60] ss:$16 sps:$4 sm:$0xff]  }
 0x131   : > { %6226 = vst [vmem:[#allocation69_spill] sm:$0xff] %v5383_v31 }
 0x133   : > { %1380 = vmatpush1.bf16.msra.mxu0 %v5303_v33  ;;  %1421 = vmatpush1.bf16.msra.mxu1 %v5307_v34  ;;  %v5331_v33 = vld [vmem:[#allocation16 + $0xe8] ss:$16 sps:$4 sm:$0xff]  }
 0x134   : > { %1381 = vmatprep.subr.bf16.mxu0 %v5309_v35  ;;  %1422 = vmatprep.subr.bf16.mxu1 %v5313_v36  ;;  %6210 = vst [vmem:[#allocation54_spill] sm:$0xff] %v5331_v33  ;;  %v897_v34 = vld [vmem:[#allocation3] sm:$0xff] }
 0x135   : > { %v5335_v35 = vld [vmem:[#allocation13 + $0x4] ss:$16 sps:$4 sm:$0xff]   ;;  %v5337_v36 = vld [vmem:[#allocation13 + $0xc] ss:$16 sps:$4 sm:$0xff]   ;;  %v5339_v32 = vpack.c.bf16 %v897_v34, %v897_v34  ;;  %v5357_v34 = vld [vmem:[#allocation13 + $0x20] ss:$16 sps:$4 sm:$0xff]  }
 0x136   : > { %6211 = vst [vmem:[#allocation55_spill] sm:$0xff] %v5335_v35  ;;  %6212 = vst [vmem:[#allocation56_spill] sm:$0xff] %v5337_v36 }
 0x137   : > { %1382 = vmatpush1.bf16.msra.mxu0 %v5317_v37  ;;  %1423 = vmatpush1.bf16.msra.mxu1 %v5319_v40  ;;  %v5343_v40 = vld [vmem:[#allocation13] ss:$16 sps:$4 sm:$0xff]   ;;  %v5345_v37 = vld [vmem:[#allocation13 + $0x8] ss:$16 sps:$4 sm:$0xff]   ;;  %6217 = vst [vmem:[#allocation61_spill] sm:$0xff] %v5357_v34 }
 0x138   : > { %1383 = vmatprep.subr.bf16.mxu0 %v5323_v50  ;;  %1424 = vmatprep.subr.bf16.mxu1 %v5325_v12  ;;  %6213 = vst [vmem:[#allocation57_spill] sm:$0xff] %v5343_v40  ;;  %6214 = vst [vmem:[#allocation58_spill] sm:$0xff] %v5345_v37  ;;  %v5349_v50 = vld [vmem:[#allocation13 + $0x24] ss:$16 sps:$4 sm:$0xff]   ;;  %v5351_v12 = vld [vmem:[#allocation13 + $0x2c] ss:$16 sps:$4 sm:$0xff]  }
 0x139   : > { %6215 = vst [vmem:[#allocation59_spill] sm:$0xff] %v5349_v50  ;;  %6216 = vst [vmem:[#allocation60_spill] sm:$0xff] %v5351_v12 }
 0x13b   : > { %1384 = vmatpush1.bf16.msra.mxu0 %v5329_v7  ;;  %1425 = vmatpush1.bf16.msra.mxu1 %v5331_v33  ;;  %v5359_v33 = vld [vmem:[#allocation13 + $0x28] ss:$16 sps:$4 sm:$0xff]   ;;  %v6221_v7 = vmov 0  }
 0x13c   : > { %1706 = vmatprep.subr.bf16.mxu0 %v5335_v35  ;;  %1747 = vmatprep.subr.bf16.mxu1 %v5337_v36  ;;  %6218 = vst [vmem:[#allocation62_spill] sm:$0xff] %v5359_v33  ;;  %v5363_v36 = vld [vmem:[#allocation13 + $0x44] ss:$16 sps:$4 sm:$0xff]   ;;  %v5365_v35 = vld [vmem:[#allocation13 + $0x4c] ss:$16 sps:$4 sm:$0xff]  }
 0x13d   : > { %6219 = vst [vmem:[#allocation63_spill] sm:$0xff] %v5363_v36  ;;  %6220 = vst [vmem:[#allocation64_spill] sm:$0xff] %v5365_v35 }
 0x13e   : > { %1402 = vmatmul.mubr.bf16.vlgmr.msra.gmra.mrb[12].mxu0 %v5339_v32  ;;  %1443 = vmatmul.mubr.bf16.vlgmr.msra.gmra.mrb[12].mxu1 %v5339_v32 }
 0x13f   : > { %1707 = vmatpush1.bf16.msra.mxu0 %v5343_v40  ;;  %1748 = vmatpush1.bf16.msra.mxu1 %v5345_v37  ;;  %v5371_v37 = vld [vmem:[#allocation13 + $0x40] ss:$16 sps:$4 sm:$0xff]   ;;  %v5373_v40 = vld [vmem:[#allocation13 + $0x48] ss:$16 sps:$4 sm:$0xff]  }
 0x140   : > { %1708 = vmatprep.subr.bf16.mxu0 %v5349_v50  ;;  %1749 = vmatprep.subr.bf16.mxu1 %v5351_v12  ;;  %6222 = vst [vmem:[#allocation65_spill] sm:$0xff] %v5371_v37  ;;  %6223 = vst [vmem:[#allocation66_spill] sm:$0xff] %v5373_v40  ;;  %v5377_v12 = vld [vmem:[#allocation13 + $0x64] ss:$16 sps:$4 sm:$0xff]   ;;  %v5379_v50 = vld [vmem:[#allocation13 + $0x6c] ss:$16 sps:$4 sm:$0xff]  }
 0x141   : > { %1738 = vmatprep.mubr.bf16.mxu0 %v6221_v7  ;;  %1779 = vmatprep.mubr.bf16.mxu1 %v6221_v7  ;;  %6224 = vst [vmem:[#allocation67_spill] sm:$0xff] %v5377_v12  ;;  %6225 = vst [vmem:[#allocation68_spill] sm:$0xff] %v5379_v50 }
 0x143   : > { %1709 = vmatpush1.bf16.msra.mxu0 %v5357_v34  ;;  %1750 = vmatpush1.bf16.msra.mxu1 %v5359_v33  ;;  %v5385_v34 = vld [vmem:[#allocation13 + $0x68] ss:$16 sps:$4 sm:$0xff]   ;;  %v5389_v33 = vld [vmem:[#allocation13 + $0x84] ss:$16 sps:$4 sm:$0xff]  }
 0x144   : > { %1710 = vmatprep.subr.bf16.mxu0 %v5363_v36  ;;  %1751 = vmatprep.subr.bf16.mxu1 %v5365_v35  ;;  %6227 = vst [vmem:[#allocation70_spill] sm:$0xff] %v5385_v34  ;;  %6228 = vst [vmem:[#allocation71_spill] sm:$0xff] %v5389_v33  ;;  %v5391_v36 = vld [vmem:[#allocation13 + $0x8c] ss:$16 sps:$4 sm:$0xff]   ;;  %v5395_v35 = vld [vmem:[#allocation13 + $0x80] ss:$16 sps:$4 sm:$0xff]  }
 0x145   : > { %6229 = vst [vmem:[#allocation72_spill] sm:$0xff] %v5391_v36  ;;  %6230 = vst [vmem:[#allocation73_spill] sm:$0xff] %v5395_v35 }
 0x147   : > { %1711 = vmatpush1.bf16.msra.mxu0 %v5371_v37  ;;  %1752 = vmatpush1.bf16.msra.mxu1 %v5373_v40  ;;  %v5397_v37 = vld [vmem:[#allocation13 + $0x88] ss:$16 sps:$4 sm:$0xff]   ;;  %v5401_v40 = vld [vmem:[#allocation13 + $0xa4] ss:$16 sps:$4 sm:$0xff]  }
 0x148   : > { %1712 = vmatprep.subr.bf16.mxu0 %v5377_v12  ;;  %1753 = vmatprep.subr.bf16.mxu1 %v5379_v50  ;;  %6231 = vst [vmem:[#allocation74_spill] sm:$0xff] %v5397_v37  ;;  %6232 = vst [vmem:[#allocation75_spill] sm:$0xff] %v5401_v40  ;;  %v5403_v12 = vld [vmem:[#allocation13 + $0xac] ss:$16 sps:$4 sm:$0xff]   ;;  %v5407_v50 = vld [vmem:[#allocation13 + $0xa0] ss:$16 sps:$4 sm:$0xff]  }
 0x149   : > { %6233 = vst [vmem:[#allocation76_spill] sm:$0xff] %v5403_v12  ;;  %6234 = vst [vmem:[#allocation77_spill] sm:$0xff] %v5407_v50 }
 0x14b   : > { %1713 = vmatpush1.bf16.msra.mxu0 %v5383_v31  ;;  %1754 = vmatpush1.bf16.msra.mxu1 %v5385_v34  ;;  %v5409_v31 = vld [vmem:[#allocation13 + $0xa8] ss:$16 sps:$4 sm:$0xff]   ;;  %v5413_v34 = vld [vmem:[#allocation13 + $0xc4] ss:$16 sps:$4 sm:$0xff]  }
 0x14c   : > { %1714 = vmatprep.subr.bf16.mxu0 %v5389_v33  ;;  %1755 = vmatprep.subr.bf16.mxu1 %v5391_v36  ;;  %v5415_v33 = vld [vmem:[#allocation13 + $0xcc] ss:$16 sps:$4 sm:$0xff]   ;;  %v5419_v36 = vld [vmem:[#allocation13 + $0xc0] ss:$16 sps:$4 sm:$0xff]  }
 0x14d   : > { %6235 = vst [vmem:[#allocation78_spill] sm:$0xff] %v5415_v33  ;;  %6236 = vst [vmem:[#allocation79_spill] sm:$0xff] %v5419_v36 }
 0x14f   : > { %1715 = vmatpush1.bf16.msra.mxu0 %v5395_v35  ;;  %1756 = vmatpush1.bf16.msra.mxu1 %v5397_v37  ;;  %v5421_v35 = vld [vmem:[#allocation13 + $0xc8] ss:$16 sps:$4 sm:$0xff]   ;;  %v5425_v37 = vld [vmem:[#allocation13 + $0xe4] ss:$16 sps:$4 sm:$0xff]  }
 0x150   : > { %1716 = vmatprep.subr.bf16.mxu0 %v5401_v40  ;;  %1757 = vmatprep.subr.bf16.mxu1 %v5403_v12  ;;  %6237 = vst [vmem:[#allocation80_spill] sm:$0xff] %v5421_v35  ;;  %6238 = vst [vmem:[#allocation81_spill] sm:$0xff] %v5425_v37  ;;  %v5427_v40 = vld [vmem:[#allocation13 + $0xec] ss:$16 sps:$4 sm:$0xff]   ;;  %v5431_v12 = vld [vmem:[#allocation13 + $0xe0] ss:$16 sps:$4 sm:$0xff]  }
 0x151   : > { %6239 = vst [vmem:[#allocation82_spill] sm:$0xff] %v5427_v40  ;;  %6240 = vst [vmem:[#allocation83_spill] sm:$0xff] %v5431_v12 }
 0x153   : > { %1717 = vmatpush1.bf16.msra.mxu0 %v5407_v50  ;;  %1758 = vmatpush1.bf16.msra.mxu1 %v5409_v31  ;;  %v5433_v50 = vld [vmem:[#allocation13 + $0xe8] ss:$16 sps:$4 sm:$0xff]  }
 0x154   : > { %1718 = vmatprep.subr.bf16.mxu0 %v5413_v34  ;;  %1759 = vmatprep.subr.bf16.mxu1 %v5415_v33  ;;  %6241 = vst [vmem:[#allocation84_spill] sm:$0xff] %v5433_v50 }
 0x157   : > { %1719 = vmatpush1.bf16.msra.mxu0 %v5419_v36  ;;  %1760 = vmatpush1.bf16.msra.mxu1 %v5421_v35 }
 0x158   : > { %1720 = vmatprep.subr.bf16.mxu0 %v5425_v37  ;;  %1761 = vmatprep.subr.bf16.mxu1 %v5427_v40 }
 0x15b   : > { %1721 = vmatpush1.bf16.msra.mxu0 %v5431_v12  ;;  %1762 = vmatpush1.bf16.msra.mxu1 %v5433_v50 }
 0x15c   : > { %1818 = vmatprep.subr.bf16.mxu0 %v5131_v38  ;;  %1859 = vmatprep.subr.bf16.mxu1 %v5133_v39  ;;  %v582_v38 = vlaneseq }
 0x15e   : > { %1739 = vmatmul.mubr.bf16.vlgmr.msra.gmra.mrb[16].mxu0 %v5339_v32  ;;  %1780 = vmatmul.mubr.bf16.vlgmr.msra.gmra.mrb[16].mxu1 %v5339_v32  ;;  %v5477_v39 = vshrl.u32 %v582_v38, 7 }
 0x15f   : > { %1819 = vmatpush1.bf16.msra.mxu0 %v5137_v41  ;;  %1860 = vmatpush1.bf16.msra.mxu1 %v5139_v42 }
 0x160   : > { %1820 = vmatprep.subr.bf16.mxu0 %v5141_v43  ;;  %1861 = vmatprep.subr.bf16.mxu1 %v5145_v44  ;;  %v584_v41 = vsub.s32 0, %v5477_v39  ;;  %v6118_v42 = vsub.s32 2, %v5477_v39  ;;  %v580_v43 = vld [vmem:[#allocation14] sm:$0xf]  ;;  %v6120_v44 = vsub.s32 3, %v5477_v39 }
 0x161   : > { %1850 = vmatprep.mubr.bf16.mxu0 %v6221_v7  ;;  %1891 = vmatprep.mubr.bf16.mxu1 %v6221_v7 }
 0x163   : > { %1821 = vmatpush1.bf16.msra.mxu0 %v5147_v45  ;;  %1862 = vmatpush1.bf16.msra.mxu1 %v5151_v46  ;;  %v588_v45 = vsub.s32 1, %v5477_v39  ;;  %v5483_v46 = vrot.slane %v580_v43, %v584_v41 }
 0x164   : > { %1822 = vmatprep.subr.bf16.mxu0 %v5155_v47  ;;  %1863 = vmatprep.subr.bf16.mxu1 %v5157_v48  ;;  %v5487_v47 = vrot.slane %v580_v43, %v6118_v42 }
 0x167   : > { %1823 = vmatpush1.bf16.msra.mxu0 %v5159_v49  ;;  %1864 = vmatpush1.bf16.msra.mxu1 %v5167_v51  ;;  %v5495_v51 = vrot.slane %v580_v43, %v6120_v44 }
 0x168   : > { %1824 = vmatprep.subr.bf16.mxu0 %v5171_v52  ;;  %1865 = vmatprep.subr.bf16.mxu1 %v5173_v53 }
 0x16b   : > { %1825 = vmatpush1.bf16.msra.mxu0 %v5177_v54  ;;  %1866 = vmatpush1.bf16.msra.mxu1 %v5179_v55  ;;  %v5501_v54 = vrot.slane %v580_v43, %v588_v45 }
 0x16c   : > { %1826 = vmatprep.subr.bf16.mxu0 %v5181_v56  ;;  %1867 = vmatprep.subr.bf16.mxu1 %v5185_v57 }
 0x16f   : > { %1827 = vmatpush1.bf16.msra.mxu0 %v5189_v58  ;;  %1868 = vmatpush1.bf16.msra.mxu1 %v5193_v59 }
 0x170   : > { %1828 = vmatprep.subr.bf16.mxu0 %v5197_v60  ;;  %1869 = vmatprep.subr.bf16.mxu1 %v5199_v61 }
 0x173   : > { %1829 = vmatpush1.bf16.msra.mxu0 %v5203_v62  ;;  %1870 = vmatpush1.bf16.msra.mxu1 %v5205_v63 }
 0x174   : > { %1830 = vmatprep.subr.bf16.mxu0 %v5207_v0  ;;  %1871 = vmatprep.subr.bf16.mxu1 %v5211_v1 }
 0x177   : > { %1831 = vmatpush1.bf16.msra.mxu0 %v5213_v2  ;;  %1872 = vmatpush1.bf16.msra.mxu1 %v5217_v3 }
 0x178   : > { %1832 = vmatprep.subr.bf16.mxu0 %v5221_v4  ;;  %1873 = vmatprep.subr.bf16.mxu1 %v5223_v5 }
 0x17b   : > { %1833 = vmatpush1.bf16.msra.mxu0 %v5225_v6  ;;  %1874 = vmatpush1.bf16.msra.mxu1 %v5229_v8 }
 0x17c   : > { %1900 = vmatprep.subr.bf16.mxu0 %v5233_v10  ;;  %1941 = vmatprep.subr.bf16.mxu1 %v5237_v11 }
 0x1d1   : > { %v5489_v48 = vpop.f32.mrb[0].mxu0  ;;  %v5491_v49 = vpop.f32.mrb[0].mxu1 }
 0x1d2   : > { %v5497_v52 = vpop.f32.mrb[1].mxu0  ;;  %v5499_v53 = vpop.f32.mrb[1].mxu1 }
 0x1d3   : > { %v812_v55 = vpop.f32.mrb[2].mxu0  ;;  %v865_v56 = vpop.f32.mrb[2].mxu1 }
 0x1d4   : > { %v5504_v57 = vadd.f32 %v812_v55, %v5483_v46  ;;  %v814_v32 = vpop.f32.mrb[3].mxu0  ;;  %v5507_v38 = vadd.f32 %v865_v56, %v5487_v47  ;;  %v867_v42 = vpop.f32.mrb[3].mxu1 }
 0x1d5   : > { %v5510_v11 = vadd.f32 %v814_v32, %v5501_v54  ;;  %v5513_v44 = vadd.f32 %v867_v42, %v5495_v51 }
 0x1d6   : > { %6242 = vst [vmem:[#allocation85_spill] sm:$0xff] %v5504_v57  ;;  %6243 = vst [vmem:[#allocation86_spill] sm:$0xff] %v5507_v38 }
 0x1d7   : > { %6244 = vst [vmem:[#allocation87_spill] sm:$0xff] %v5510_v11  ;;  %6245 = vst [vmem:[#allocation88_spill] sm:$0xff] %v5513_v44 }
 0x1d9   : > { %v818_v10 = vpop.f32.mrb[4].mxu0  ;;  %v871_v8 = vpop.f32.mrb[4].mxu1 }
 0x1da   : > { %v5516_v43 = vadd.f32 %v818_v10, %v5483_v46  ;;  %v820_v6 = vpop.f32.mrb[5].mxu0  ;;  %v5519_v55 = vadd.f32 %v871_v8, %v5487_v47  ;;  %v873_v57 = vpop.f32.mrb[5].mxu1 }
 0x1db   : > { %v5522_v56 = vadd.f32 %v820_v6, %v5501_v54  ;;  %v822_v38 = vpop.f32.mrb[6].mxu0  ;;  %v5525_v32 = vadd.f32 %v873_v57, %v5495_v51  ;;  %v875_v11 = vpop.f32.mrb[6].mxu1 }
 0x1dc   : > { %6246 = vst [vmem:[#allocation89_spill] sm:$0xff] %v5516_v43  ;;  %6247 = vst [vmem:[#allocation90_spill] sm:$0xff] %v5519_v55  ;;  %v5528_v42 = vadd.f32 %v822_v38, %v5483_v46  ;;  %v824_v44 = vpop.f32.mrb[7].mxu0  ;;  %v5531_v10 = vadd.f32 %v875_v11, %v5487_v47  ;;  %v877_v43 = vpop.f32.mrb[7].mxu1 }
 0x1dd   : > { %6248 = vst [vmem:[#allocation91_spill] sm:$0xff] %v5522_v56  ;;  %6249 = vst [vmem:[#allocation92_spill] sm:$0xff] %v5525_v32  ;;  %v5534_v8 = vadd.f32 %v824_v44, %v5501_v54  ;;  %v5537_v55 = vadd.f32 %v877_v43, %v5495_v51 }
 0x1de   : > { %6250 = vst [vmem:[#allocation93_spill] sm:$0xff] %v5528_v42  ;;  %6251 = vst [vmem:[#allocation94_spill] sm:$0xff] %v5531_v10  ;;  %v896_v42 = vld [vmem:[#allocation19] sm:$0xf] }
 0x1df   : > { %6252 = vst [vmem:[#allocation95_spill] sm:$0xff] %v5534_v8  ;;  %6253 = vst [vmem:[#allocation96_spill] sm:$0xff] %v5537_v55  ;;  %v5539_v2 = vrot.slane %v896_v42, %v584_v41  ;;  %v5541_v1 = vrot.slane %v896_v42, %v588_v45  ;;  %v6255_v45 = vsub.s32 2, %v5477_v39 }
 0x1e1   : > { %6254 = vst [vmem:[#allocation97_spill] sm:$0xff] %v5541_v1 }
 0x1f1   : > { %v1161_v6 = vpop.f32.mrb[8].mxu0  ;;  %v1202_v56 = vpop.f32.mrb[8].mxu1 }
 0x1f2   : > { %v1163_v5 = vpop.f32.mrb[9].mxu0  ;;  %v1204_v57 = vpop.f32.mrb[9].mxu1 }
 0x1f3   : > { %v1165_v32 = vpop.f32.mrb[10].mxu0  ;;  %v1206_v4 = vpop.f32.mrb[10].mxu1 }
 0x1f4   : > { %v1166_v3 = vpop.f32.mrb[11].mxu0  ;;  %v1207_v38 = vpop.f32.mrb[11].mxu1 }
 0x211   : > { %v1403_v11 = vpop.f32.mrb[12].mxu0  ;;  %v1444_v10 = vpop.f32.mrb[12].mxu1 }
 0x212   : > { %v1404_v44 = vadd.f32 %v1403_v11, %v1161_v6  ;;  %v1445_v8 = vadd.f32 %v1444_v10, %v1202_v56  ;;  %v1405_v0 = vpop.f32.mrb[13].mxu0  ;;  %v1446_v43 = vpop.f32.mrb[13].mxu1  ;;  %v5547_v6 = vrot.slane %v896_v42, %v6255_v45 }
 0x213   : > { %v1406_v55 = vadd.f32 %v1405_v0, %v1163_v5  ;;  %v1447_v63 = vadd.f32 %v1446_v43, %v1204_v57  ;;  %v1407_v62 = vpop.f32.mrb[14].mxu0  ;;  %v1448_v61 = vpop.f32.mrb[14].mxu1  ;;  %v6257_v0 = vsub.s32 3, %v5477_v39 }
 0x214   : > { %v1472_v32 = vadd.f32 %v5539_v2, %v1404_v44  ;;  %v1408_v4 = vpop.f32.mrb[15].mxu0  ;;  %v1449_v3 = vpop.f32.mrb[15].mxu1  ;;  %6256 = vst [vmem:[#allocation98_spill] sm:$0xff] %v5547_v6  ;;  %v1474_v61 = vadd.f32 %v5547_v6, %v1445_v8  ;;  %v862_v44 = vadd.f32 %v5491_v49, %v5487_v47 }
 0x215   : > { %v1473_v38 = vadd.f32 %v5541_v1, %v1406_v55  ;;  %v5551_v5 = vrot.slane %v896_v42, %v6257_v0  ;;  %v900_v42 = vld [vmem:[#allocation6] sm:$0xff]  ;;  %v811_v3 = vadd.f32 %v5497_v52, %v5501_v54 }
 0x216   : > { %v3658_v41 = vmul.f32 -1.442695, %v1472_v32  ;;  %v3660_v10 = vmul.f32 -1.442695, %v1474_v61  ;;  %v1503_v32 = vstv %s1502_s9 }
 0x217   : > { %v3659_v60 = vmul.f32 -1.442695, %v1473_v38  ;;  %6258 = vst [vmem:[#allocation99_spill] sm:$0xff] %v5551_v5  ;;  %v1475_v62 = vadd.f32 %v5551_v5, %v1447_v63  ;;  %v809_v63 = vadd.f32 %v5489_v48, %v5483_v46  ;;  %v864_v38 = vadd.f32 %v5499_v53, %v5495_v51 }
 0x218   : > { %4109 = vpow2.f32 %v3658_v41  ;;  %vm5567_vm0 = vcmp.eq.s32.totalorder %v1503_v32, 1 }
 0x219   : > { %4111 = vpow2.f32 %v3659_v60 }
 0x21a   : > { %4113 = vtanh.f32 %v1475_v62 }
 0x222   : > { %v4110_v56 = vpop.eup %4109 }
 0x223   : > { %v1485_v55 = vadd.f32 1.0, %v4110_v56  ;;  %v4112_v57 = vpop.eup %4111 }
 0x224   : > { %v1486_v11 = vadd.f32 1.0, %v4112_v57  ;;  %v4114_v60 = vpop.eup %4113  ;;  %v6279_v57 = vld [vmem:[#allocation61_spill] sm:$0xff] }
 0x225   : > { %4115 = vrcp.f32 %v1485_v55 }
 0x226   : > { %4117 = vpow2.f32 %v3660_v10 }
 0x227   : > { %4119 = vrcp.f32 %v1486_v11 }
 0x22f   : > { %v4116_v39 = vpop.eup %4115 }
 0x230   : > { %v4118_v8 = vpop.eup %4117  ;;  %v1496_v43 = vmul.f32 %v4116_v39, %v4114_v60 }
 0x231   : > { %v4120_v4 = vpop.eup %4119  ;;  %v1740_v41 = vpop.f32.mrb[16].mxu0  ;;  %v1487_v46 = vadd.f32 1.0, %v4118_v8 }
 0x232   : > { %v1781_v45 = vpop.f32.mrb[16].mxu1  ;;  %v1788_v0 = vadd.f32 %v1740_v41, %v809_v63  ;;  %v1742_v62 = vpop.f32.mrb[17].mxu0  ;;  %v1495_v10 = vmul.f32 %v4120_v4, %v900_v42 }
 0x233   : > { %v1790_v61 = vadd.f32 %v1781_v45, %v862_v44  ;;  %v1783_v56 = vpop.f32.mrb[17].mxu1  ;;  %v1789_v48 = vadd.f32 %v1742_v62, %v811_v3  ;;  %v1744_v47 = vpop.f32.mrb[18].mxu0  ;;  %v898_v45 = vld [vmem:[#allocation4] sm:$0xff]  ;;  %v6272_v62 = vld [vmem:[#allocation54_spill] sm:$0xff] }
 0x234   : > { %v1791_v55 = vadd.f32 %v1783_v56, %v864_v38  ;;  %v1785_v49 = vpop.f32.mrb[18].mxu1  ;;  %v3694_v52 = vmul.f32 -1.442695, %v1788_v0  ;;  %v1745_v54 = vpop.f32.mrb[19].mxu0  ;;  %v1497_v51 = vadd.f32 %v1496_v43, %v1495_v10  ;;  %v6273_v10 = vld [vmem:[#allocation55_spill] sm:$0xff] }
 0x235   : > { %v1786_v11 = vpop.f32.mrb[19].mxu1  ;;  %v3695_v53 = vmul.f32 -1.442695, %v1789_v48  ;;  %v3696_v4 = vmul.f32 -1.442695, %v1790_v61  ;;  %v6275_v48 = vld [vmem:[#allocation57_spill] sm:$0xff] }
 0x236   : > { %4121 = vpow2.f32 %v3694_v52  ;;  %v5573_v60 = vsel %vm5567_vm0, %v1497_v51, %v900_v42  ;;  %v6277_v47 = vld [vmem:[#allocation59_spill] sm:$0xff]  ;;  %v6278_v49 = vld [vmem:[#allocation60_spill] sm:$0xff]  ;;  %v6280_v52 = vld [vmem:[#allocation62_spill] sm:$0xff] }
 0x237   : > { %4123 = vrcp.f32 %v1487_v46  ;;  %v6274_v46 = vld [vmem:[#allocation56_spill] sm:$0xff]  ;;  %v6281_v54 = vld [vmem:[#allocation63_spill] sm:$0xff] }
 0x238   : > { %4125 = vpow2.f32 %v3695_v53  ;;  %v6282_v11 = vld [vmem:[#allocation64_spill] sm:$0xff]  ;;  %v6284_v53 = vld [vmem:[#allocation66_spill] sm:$0xff] }
 0x239   : > { %4127 = vtanh.f32 %v1497_v51  ;;  %v6283_v51 = vld [vmem:[#allocation65_spill] sm:$0xff] }
 0x23a   : > { %4129 = vtanh.f32 %v1791_v55  ;;  %v6276_v55 = vld [vmem:[#allocation58_spill] sm:$0xff] }
 0x240   : > { %v4122_v39 = vpop.eup %4121 }
 0x241   : > { %v4124_v8 = vpop.eup %4123  ;;  %v1801_v63 = vadd.f32 1.0, %v4122_v39  ;;  %v6285_v39 = vld [vmem:[#allocation67_spill] sm:$0xff] }
 0x242   : > { %v4126_v44 = vpop.eup %4125 }
 0x243   : > { %v4128_v32 = vpop.eup %4127  ;;  %4131 = vrcp.f32 %v1801_v63  ;;  %v1802_v3 = vadd.f32 1.0, %v4126_v44  ;;  %v6287_v63 = vld [vmem:[#allocation69_spill] sm:$0xff]  ;;  %v6288_v44 = vld [vmem:[#allocation70_spill] sm:$0xff] }
 0x244   : > { %v1499_v38 = vmul.f32 %v4128_v32, %v4124_v8  ;;  %v4130_v41 = vpop.eup %4129  ;;  %v6286_v8 = vld [vmem:[#allocation68_spill] sm:$0xff]  ;;  %v6289_v32 = vld [vmem:[#allocation71_spill] sm:$0xff] }
 0x245   : > { %4133 = vrcp.f32 %v1802_v3  ;;  %v6291_v3 = vld [vmem:[#allocation73_spill] sm:$0xff] }
 0x246   : > { %v5578_v43 = vsel %vm5567_vm0, %v1499_v38, %v5231_v9  ;;  %4135 = vpow2.f32 %v3696_v4  ;;  %v6290_v4 = vld [vmem:[#allocation72_spill] sm:$0xff]  ;;  %v6292_v38 = vld [vmem:[#allocation74_spill] sm:$0xff] }
 0x247   : > { %v1817_v42 = vpack.c.bf16 %v5578_v43, %v5578_v43 }
 0x249   : > { %1851 = vmatmul.mubr.bf16.vlgmr.msra.gmra.mrb[20].mxu0 %v1817_v42  ;;  %1892 = vmatmul.mubr.bf16.vlgmr.msra.gmra.mrb[20].mxu1 %v1817_v42  ;;  %v6293_v42 = vld [vmem:[#allocation75_spill] sm:$0xff] }
 0x24a   : > { %1901 = vmatpush1.bf16.msra.mxu0 %v5241_v13  ;;  %1942 = vmatpush1.bf16.msra.mxu1 %v5245_v14 }
 0x24b   : > { %1902 = vmatprep.subr.bf16.mxu0 %v5249_v15  ;;  %1943 = vmatprep.subr.bf16.mxu1 %v5251_v16 }
 0x24c   : > { %1932 = vmatprep.mubr.bf16.mxu0 %v6221_v7  ;;  %1973 = vmatprep.mubr.bf16.mxu1 %v6221_v7 }
 0x24d   : > { %v4132_v9 = vpop.eup %4131 }
 0x24e   : > { %v1812_v0 = vmul.f32 %v4132_v9, %v4130_v41  ;;  %1903 = vmatpush1.bf16.msra.mxu0 %v5253_v17  ;;  %1944 = vmatpush1.bf16.msra.mxu1 %v5257_v18  ;;  %v6261_v17 = vld [vmem:[#allocation43_spill] sm:$0xff]  ;;  %v6262_v18 = vld [vmem:[#allocation44_spill] sm:$0xff]  ;;  %v6295_v9 = vld [vmem:[#allocation77_spill] sm:$0xff] }
 0x24f   : > { %v4134_v61 = vpop.eup %4133  ;;  %1904 = vmatprep.subr.bf16.mxu0 %v5259_v19  ;;  %1945 = vmatprep.subr.bf16.mxu1 %v5263_v20  ;;  %v6263_v19 = vld [vmem:[#allocation45_spill] sm:$0xff]  ;;  %v6264_v20 = vld [vmem:[#allocation46_spill] sm:$0xff]  ;;  %v6294_v41 = vld [vmem:[#allocation76_spill] sm:$0xff] }
 0x250   : > { %v1811_v13 = vmul.f32 %v4134_v61, %v898_v45  ;;  %v4136_v14 = vpop.eup %4135  ;;  %v5651_v45 = vld [vmem:[#allocation17 + $0x4] ss:$16 sps:$4 sm:$0xff]   ;;  %v5657_v61 = vld [vmem:[#allocation17] ss:$16 sps:$4 sm:$0xff]  }
 0x251   : > { %v1803_v16 = vadd.f32 1.0, %v4136_v14  ;;  %6296 = vst [vmem:[#allocation43_spill] sm:$0xff] %v5651_v45  ;;  %6298 = vst [vmem:[#allocation45_spill] sm:$0xff] %v5657_v61  ;;  %v5663_v14 = vld [vmem:[#allocation17 + $0x24] ss:$16 sps:$4 sm:$0xff]  }
 0x252   : > { %v5592_v15 = vadd.f32 %v1812_v0, %v1811_v13  ;;  %1905 = vmatpush1.bf16.msra.mxu0 %v5267_v21  ;;  %1946 = vmatpush1.bf16.msra.mxu1 %v5269_v22  ;;  %v6265_v21 = vld [vmem:[#allocation47_spill] sm:$0xff]  ;;  %v6266_v22 = vld [vmem:[#allocation48_spill] sm:$0xff] }
 0x253   : > { %1906 = vmatprep.subr.bf16.mxu0 %v5273_v23  ;;  %1947 = vmatprep.subr.bf16.mxu1 %v5277_v24  ;;  %v5654_v0 = vld [vmem:[#allocation17 + $0xc] ss:$16 sps:$4 sm:$0xff]   ;;  %v5660_v13 = vld [vmem:[#allocation17 + $0x8] ss:$16 sps:$4 sm:$0xff]   ;;  %6300 = vst [vmem:[#allocation47_spill] sm:$0xff] %v5663_v14 }
 0x254   : > { %4137 = vtanh.f32 %v5592_v15  ;;  %6297 = vst [vmem:[#allocation44_spill] sm:$0xff] %v5654_v0  ;;  %6299 = vst [vmem:[#allocation46_spill] sm:$0xff] %v5660_v13 }
 0x255   : > { %4139 = vrcp.f32 %v1803_v16  ;;  %v5666_v16 = vld [vmem:[#allocation17 + $0x2c] ss:$16 sps:$4 sm:$0xff]  }
 0x256   : > { %1907 = vmatpush1.bf16.msra.mxu0 %v5279_v25  ;;  %1948 = vmatpush1.bf16.msra.mxu1 %v5283_v26  ;;  %v6267_v25 = vld [vmem:[#allocation49_spill] sm:$0xff]  ;;  %v6268_v26 = vld [vmem:[#allocation50_spill] sm:$0xff]  ;;  %6301 = vst [vmem:[#allocation48_spill] sm:$0xff] %v5666_v16 }
 0x257   : > { %1908 = vmatprep.subr.bf16.mxu0 %v5285_v27  ;;  %1949 = vmatprep.subr.bf16.mxu1 %v5289_v28  ;;  %v6269_v27 = vld [vmem:[#allocation51_spill] sm:$0xff]  ;;  %v6270_v28 = vld [vmem:[#allocation52_spill] sm:$0xff] }
 0x25a   : > { %1909 = vmatpush1.bf16.msra.mxu0 %v5291_v29  ;;  %1950 = vmatpush1.bf16.msra.mxu1 %v5293_v30  ;;  %v6271_v30 = vld [vmem:[#allocation53_spill] sm:$0xff] }
 0x25b   : > { %1910 = vmatprep.subr.bf16.mxu0 %v6261_v17  ;;  %1951 = vmatprep.subr.bf16.mxu1 %v6262_v18  ;;  %v5671_v17 = vld [vmem:[#allocation17 + $0x20] ss:$16 sps:$4 sm:$0xff]   ;;  %v5674_v18 = vld [vmem:[#allocation17 + $0x28] ss:$16 sps:$4 sm:$0xff]  }
 0x25c   : > { %6302 = vst [vmem:[#allocation49_spill] sm:$0xff] %v5671_v17  ;;  %6303 = vst [vmem:[#allocation50_spill] sm:$0xff] %v5674_v18 }
 0x25e   : > { %1911 = vmatpush1.bf16.msra.mxu0 %v6263_v19  ;;  %1952 = vmatpush1.bf16.msra.mxu1 %v6264_v20  ;;  %v4138_v23 = vpop.eup %4137 }
 0x25f   : > { %1912 = vmatprep.subr.bf16.mxu0 %v6265_v21  ;;  %1953 = vmatprep.subr.bf16.mxu1 %v6266_v22  ;;  %v4140_v24 = vpop.eup %4139 }
 0x260   : > { %v1815_v29 = vmul.f32 %v4140_v24, %v4138_v23  ;;  %v5677_v23 = vld [vmem:[#allocation17 + $0x44] ss:$16 sps:$4 sm:$0xff]   ;;  %v5680_v24 = vld [vmem:[#allocation17 + $0x4c] ss:$16 sps:$4 sm:$0xff]  }
 0x261   : > { %6304 = vst [vmem:[#allocation51_spill] sm:$0xff] %v5677_v23  ;;  %6305 = vst [vmem:[#allocation52_spill] sm:$0xff] %v5680_v24 }
 0x262   : > { %1913 = vmatpush1.bf16.msra.mxu0 %v6267_v25  ;;  %1954 = vmatpush1.bf16.msra.mxu1 %v6268_v26  ;;  %v1816_v56 = vpack.c.bf16 %v1815_v29, %v1815_v29  ;;  %v5683_v29 = vld [vmem:[#allocation17 + $0x40] ss:$16 sps:$4 sm:$0xff]  }
 0x263   : > { %1914 = vmatprep.subr.bf16.mxu0 %v6269_v27  ;;  %1955 = vmatprep.subr.bf16.mxu1 %v6270_v28  ;;  %6306 = vst [vmem:[#allocation53_spill] sm:$0xff] %v5683_v29 }
 0x266   : > { %1915 = vmatpush1.bf16.msra.mxu0 %v6271_v30  ;;  %1956 = vmatpush1.bf16.msra.mxu1 %v6272_v62 }
 0x267   : > { %2024 = vmatprep.subr.bf16.mxu0 %v6273_v10  ;;  %2065 = vmatprep.subr.bf16.mxu1 %v6274_v46 }
 0x269   : > { %1933 = vmatmul.mubr.bf16.vlgmr.msra.gmra.mrb[24].mxu0 %v1816_v56  ;;  %1974 = vmatmul.mubr.bf16.vlgmr.msra.gmra.mrb[24].mxu1 %v1816_v56 }
 0x26a   : > { %2025 = vmatpush1.bf16.msra.mxu0 %v6275_v48  ;;  %2066 = vmatpush1.bf16.msra.mxu1 %v6276_v55 }
 0x26b   : > { %2026 = vmatprep.subr.bf16.mxu0 %v6277_v47  ;;  %2067 = vmatprep.subr.bf16.mxu1 %v6278_v49 }
 0x26c   : > { %2056 = vmatprep.mubr.bf16.mxu0 %v6221_v7  ;;  %2097 = vmatprep.mubr.bf16.mxu1 %v6221_v7 }
 0x26e   : > { %2027 = vmatpush1.bf16.msra.mxu0 %v6279_v57  ;;  %2068 = vmatpush1.bf16.msra.mxu1 %v6280_v52 }
 0x26f   : > { %2028 = vmatprep.subr.bf16.mxu0 %v6281_v54  ;;  %2069 = vmatprep.subr.bf16.mxu1 %v6282_v11 }
 0x272   : > { %2029 = vmatpush1.bf16.msra.mxu0 %v6283_v51  ;;  %2070 = vmatpush1.bf16.msra.mxu1 %v6284_v53 }
 0x273   : > { %2030 = vmatprep.subr.bf16.mxu0 %v6285_v39  ;;  %2071 = vmatprep.subr.bf16.mxu1 %v6286_v8 }
 0x276   : > { %2031 = vmatpush1.bf16.msra.mxu0 %v6287_v63  ;;  %2072 = vmatpush1.bf16.msra.mxu1 %v6288_v44 }
 0x277   : > { %2032 = vmatprep.subr.bf16.mxu0 %v6289_v32  ;;  %2073 = vmatprep.subr.bf16.mxu1 %v6290_v4 }
 0x27a   : > { %2033 = vmatpush1.bf16.msra.mxu0 %v6291_v3  ;;  %2074 = vmatpush1.bf16.msra.mxu1 %v6292_v38 }
 0x27b   : > { %2034 = vmatprep.subr.bf16.mxu0 %v6293_v42  ;;  %2075 = vmatprep.subr.bf16.mxu1 %v6294_v41 }
 0x27e   : > { %2035 = vmatpush1.bf16.msra.mxu0 %v6295_v9  ;;  %2076 = vmatpush1.bf16.msra.mxu1 %v5409_v31 }
 0x27f   : > { %2036 = vmatprep.subr.bf16.mxu0 %v5413_v34  ;;  %2077 = vmatprep.subr.bf16.mxu1 %v5415_v33 }
 0x282   : > { %2037 = vmatpush1.bf16.msra.mxu0 %v5419_v36  ;;  %2078 = vmatpush1.bf16.msra.mxu1 %v5421_v35 }
 0x283   : > { %2038 = vmatprep.subr.bf16.mxu0 %v5425_v37  ;;  %2079 = vmatprep.subr.bf16.mxu1 %v5427_v40 }
 0x286   : > { %2039 = vmatpush1.bf16.msra.mxu0 %v5431_v12  ;;  %2080 = vmatpush1.bf16.msra.mxu1 %v5433_v50 }
 0x287   : > { %2136 = vmatprep.subr.bf16.mxu0 %v5651_v45  ;;  %2177 = vmatprep.subr.bf16.mxu1 %v5654_v0 }
 0x289   : > { %2057 = vmatmul.mubr.bf16.vlgmr.msra.gmra.mrb[28].mxu0 %v1816_v56  ;;  %2098 = vmatmul.mubr.bf16.vlgmr.msra.gmra.mrb[28].mxu1 %v1816_v56  ;;  %v5686_v56 = vld [vmem:[#allocation17 + $0x48] ss:$16 sps:$4 sm:$0xff]  }
 0x28a   : > { %2137 = vmatpush1.bf16.msra.mxu0 %v5657_v61  ;;  %2178 = vmatpush1.bf16.msra.mxu1 %v5660_v13  ;;  %6307 = vst [vmem:[#allocation54_spill] sm:$0xff] %v5686_v56  ;;  %v6321_v13 = vld [vmem:[#allocation36_spill] sm:$0xff] }
 0x28b   : > { %2138 = vmatprep.subr.bf16.mxu0 %v5663_v14  ;;  %2179 = vmatprep.subr.bf16.mxu1 %v5666_v16  ;;  %v6317_v16 = vld [vmem:[#allocation32_spill] sm:$0xff]  ;;  %v6319_v14 = vld [vmem:[#allocation34_spill] sm:$0xff] }
 0x28c   : > { %2168 = vmatprep.mubr.bf16.mxu0 %v6221_v7  ;;  %2209 = vmatprep.mubr.bf16.mxu1 %v6221_v7 }
 0x28e   : > { %2139 = vmatpush1.bf16.msra.mxu0 %v5671_v17  ;;  %2180 = vmatpush1.bf16.msra.mxu1 %v5674_v18  ;;  %v5689_v17 = vld [vmem:[#allocation17 + $0x64] ss:$16 sps:$4 sm:$0xff]   ;;  %v5692_v18 = vld [vmem:[#allocation17 + $0x6c] ss:$16 sps:$4 sm:$0xff]  }
 0x28f   : > { %2140 = vmatprep.subr.bf16.mxu0 %v5677_v23  ;;  %2181 = vmatprep.subr.bf16.mxu1 %v5680_v24  ;;  %6308 = vst [vmem:[#allocation55_spill] sm:$0xff] %v5689_v17  ;;  %6309 = vst [vmem:[#allocation56_spill] sm:$0xff] %v5692_v18  ;;  %v5695_v23 = vld [vmem:[#allocation17 + $0x60] ss:$16 sps:$4 sm:$0xff]   ;;  %v5698_v24 = vld [vmem:[#allocation17 + $0x68] ss:$16 sps:$4 sm:$0xff]  }
 0x290   : > { %6310 = vst [vmem:[#allocation57_spill] sm:$0xff] %v5695_v23  ;;  %6311 = vst [vmem:[#allocation58_spill] sm:$0xff] %v5698_v24 }
 0x292   : > { %2141 = vmatpush1.bf16.msra.mxu0 %v5683_v29  ;;  %2182 = vmatpush1.bf16.msra.mxu1 %v5686_v56  ;;  %v5701_v29 = vld [vmem:[#allocation17 + $0x84] ss:$16 sps:$4 sm:$0xff]   ;;  %v5704_v56 = vld [vmem:[#allocation17 + $0x8c] ss:$16 sps:$4 sm:$0xff]  }
 0x293   : > { %2142 = vmatprep.subr.bf16.mxu0 %v5689_v17  ;;  %2183 = vmatprep.subr.bf16.mxu1 %v5692_v18  ;;  %6312 = vst [vmem:[#allocation59_spill] sm:$0xff] %v5701_v29  ;;  %6313 = vst [vmem:[#allocation60_spill] sm:$0xff] %v5704_v56  ;;  %v6314_v18 = vld [vmem:[#allocation29_spill] sm:$0xff]  ;;  %v6315_v17 = vld [vmem:[#allocation30_spill] sm:$0xff] }
 0x296   : > { %2143 = vmatpush1.bf16.msra.mxu0 %v5695_v23  ;;  %2184 = vmatpush1.bf16.msra.mxu1 %v5698_v24  ;;  %v6316_v23 = vld [vmem:[#allocation31_spill] sm:$0xff]  ;;  %v6318_v24 = vld [vmem:[#allocation33_spill] sm:$0xff] }
 0x297   : > { %2144 = vmatprep.subr.bf16.mxu0 %v5701_v29  ;;  %2185 = vmatprep.subr.bf16.mxu1 %v5704_v56  ;;  %v6320_v29 = vld [vmem:[#allocation35_spill] sm:$0xff]  ;;  %v6322_v56 = vld [vmem:[#allocation37_spill] sm:$0xff] }
 0x29a   : > { %2145 = vmatpush1.bf16.msra.mxu0 %v5189_v58  ;;  %2186 = vmatpush1.bf16.msra.mxu1 %v5193_v59  ;;  %v6323_v58 = vld [vmem:[#allocation38_spill] sm:$0xff]  ;;  %v6324_v59 = vld [vmem:[#allocation39_spill] sm:$0xff] }
 0x29b   : > { %2146 = vmatprep.subr.bf16.mxu0 %v6314_v18  ;;  %2187 = vmatprep.subr.bf16.mxu1 %v6315_v17  ;;  %v6325_v18 = vld [vmem:[#allocation40_spill] sm:$0xff]  ;;  %v6326_v17 = vld [vmem:[#allocation41_spill] sm:$0xff] }
 0x29e   : > { %2147 = vmatpush1.bf16.msra.mxu0 %v6316_v23  ;;  %2188 = vmatpush1.bf16.msra.mxu1 %v6317_v16  ;;  %v6327_v23 = vld [vmem:[#allocation42_spill] sm:$0xff] }
 0x29f   : > { %2148 = vmatprep.subr.bf16.mxu0 %v6318_v24  ;;  %2189 = vmatprep.subr.bf16.mxu1 %v6319_v14 }
 0x2a2   : > { %2149 = vmatpush1.bf16.msra.mxu0 %v6320_v29  ;;  %2190 = vmatpush1.bf16.msra.mxu1 %v6321_v13 }
 0x2a3   : > { %2150 = vmatprep.subr.bf16.mxu0 %v6322_v56  ;;  %2191 = vmatprep.subr.bf16.mxu1 %v6323_v58 }
 0x2a6   : > { %2151 = vmatpush1.bf16.msra.mxu0 %v6324_v59  ;;  %2192 = vmatpush1.bf16.msra.mxu1 %v6325_v18 }
 0x2a7   : > { %2218 = vmatprep.subr.bf16.mxu0 %v6326_v17  ;;  %2259 = vmatprep.subr.bf16.mxu1 %v6327_v23 }
 0x31c   : > { %v1852_v16 = vpop.f32.mrb[20].mxu0  ;;  %v1893_v24 = vpop.f32.mrb[20].mxu1 }
 0x31d   : > { %v1854_v61 = vpop.f32.mrb[21].mxu0  ;;  %v1895_v14 = vpop.f32.mrb[21].mxu1 }
 0x31e   : > { %v1856_v0 = vpop.f32.mrb[22].mxu0  ;;  %v1897_v29 = vpop.f32.mrb[22].mxu1 }
 0x31f   : > { %v1857_v45 = vpop.f32.mrb[23].mxu0  ;;  %v1898_v13 = vpop.f32.mrb[23].mxu1 }
 0x320   : > { %v2013_v13 = vstv %s2012_s13 }
 0x321   : > { %vm2014_vm1 = vcmp.eq.s32.totalorder %v2013_v13, 1  ;;  %v5757_v13 = vld [vmem:[#allocation16 + $0x20] ss:$16 sps:$4 sm:$0xff]  }
 0x33c   : > { %v1934_v50 = vpop.f32.mrb[24].mxu0  ;;  %v1975_v56 = vpop.f32.mrb[24].mxu1 }
 0x33d   : > { %v1935_v12 = vadd.f32 %v1934_v50, %v1852_v16  ;;  %v1976_v58 = vadd.f32 %v1975_v56, %v1893_v24  ;;  %v1936_v40 = vpop.f32.mrb[25].mxu0  ;;  %v1977_v59 = vpop.f32.mrb[25].mxu1 }
 0x33e   : > { %v1937_v37 = vadd.f32 %v1936_v40, %v1854_v61  ;;  %v1978_v18 = vadd.f32 %v1977_v59, %v1895_v14  ;;  %v1938_v35 = vpop.f32.mrb[26].mxu0  ;;  %v1979_v17 = vpop.f32.mrb[26].mxu1 }
 0x33f   : > { %v1982_v23 = vadd.f32 %v1935_v12, %v5539_v2  ;;  %v1939_v36 = vpop.f32.mrb[27].mxu0  ;;  %v1980_v33 = vpop.f32.mrb[27].mxu1  ;;  %v1984_v50 = vadd.f32 %v1976_v58, %v5547_v6 }
 0x340   : > { %v1983_v0 = vadd.f32 %v1937_v37, %v5541_v1  ;;  %v1985_v16 = vadd.f32 %v1978_v18, %v5551_v5 }
 0x341   : > { %v3697_v29 = vmul.f32 -1.442695, %v1982_v23  ;;  %v3699_v24 = vmul.f32 -1.442695, %v1984_v50  ;;  %v6328_v23 = vld [vmem:[#allocation85_spill] sm:$0xff] }
 0x342   : > { %v3698_v45 = vmul.f32 -1.442695, %v1983_v0 }
 0x343   : > { %4141 = vpow2.f32 %v3697_v29  ;;  %v6329_v29 = vld [vmem:[#allocation86_spill] sm:$0xff] }
 0x344   : > { %4143 = vpow2.f32 %v3698_v45 }
 0x345   : > { %4145 = vtanh.f32 %v1985_v16 }
 0x346   : > { %4147 = vpow2.f32 %v3699_v24  ;;  %v6330_v24 = vld [vmem:[#allocation87_spill] sm:$0xff] }
 0x34d   : > { %v4142_v40 = vpop.eup %4141 }
 0x34e   : > { %v1995_v61 = vadd.f32 1.0, %v4142_v40  ;;  %v4144_v35 = vpop.eup %4143 }
 0x34f   : > { %v1996_v36 = vadd.f32 1.0, %v4144_v35  ;;  %v4146_v33 = vpop.eup %4145 }
 0x350   : > { %4149 = vrcp.f32 %v1995_v61  ;;  %v4148_v37 = vpop.eup %4147  ;;  %v6331_v61 = vld [vmem:[#allocation88_spill] sm:$0xff] }
 0x351   : > { %4151 = vrcp.f32 %v1996_v36  ;;  %v1997_v58 = vadd.f32 1.0, %v4148_v37 }
 0x353   : > { %4153 = vrcp.f32 %v1997_v58 }
 0x35a   : > { %v4150_v12 = vpop.eup %4149 }
 0x35b   : > { %v2006_v14 = vmul.f32 %v4150_v12, %v4146_v33  ;;  %v4152_v56 = vpop.eup %4151 }
 0x35c   : > { %v2058_v59 = vpop.f32.mrb[28].mxu0  ;;  %v2099_v18 = vpop.f32.mrb[28].mxu1  ;;  %v2005_v17 = vmul.f32 %v4152_v56, %v5573_v60 }
 0x35d   : > { %v2106_v0 = vadd.f32 %v2058_v59, %v6328_v23  ;;  %v2108_v45 = vadd.f32 %v2099_v18, %v6329_v29  ;;  %v2060_v50 = vpop.f32.mrb[29].mxu0  ;;  %v2101_v16 = vpop.f32.mrb[29].mxu1 }
 0x35e   : > { %v2107_v40 = vadd.f32 %v2060_v50, %v6330_v24  ;;  %v2109_v35 = vadd.f32 %v2101_v16, %v6331_v61  ;;  %v2062_v36 = vpop.f32.mrb[30].mxu0  ;;  %v2103_v5 = vpop.f32.mrb[30].mxu1  ;;  %v2007_v33 = vadd.f32 %v2006_v14, %v2005_v17  ;;  %v5746_v17 = vld [vmem:[#allocation16 + $0x8] ss:$16 sps:$4 sm:$0xff]   ;;  %v5763_v24 = vld [vmem:[#allocation16 + $0x44] ss:$16 sps:$4 sm:$0xff]  }
 0x35f   : > { %v3700_v12 = vmul.f32 -1.442695, %v2106_v0  ;;  %v2063_v37 = vpop.f32.mrb[31].mxu0  ;;  %v2104_v6 = vpop.f32.mrb[31].mxu1  ;;  %v3702_v18 = vmul.f32 -1.442695, %v2108_v45 }
 0x360   : > { %v3701_v1 = vmul.f32 -1.442695, %v2107_v40  ;;  %4155 = vtanh.f32 %v2007_v33  ;;  %v5735_v56 = vsel %vm2014_vm1, %v2007_v33, %v5573_v60  ;;  %v4154_v59 = vpop.eup %4153  ;;  %v5749_v0 = vld [vmem:[#allocation16 + $0x24] ss:$16 sps:$4 sm:$0xff]   ;;  %v5760_v45 = vld [vmem:[#allocation16 + $0x28] ss:$16 sps:$4 sm:$0xff]  }
 0x361   : > { %4157 = vpow2.f32 %v3700_v12  ;;  %v5766_v40 = vld [vmem:[#allocation16 + $0x4c] ss:$16 sps:$4 sm:$0xff]   ;;  %v5769_v33 = vld [vmem:[#allocation16 + $0x40] ss:$16 sps:$4 sm:$0xff]   ;;  %v5772_v12 = vld [vmem:[#allocation16 + $0x48] ss:$16 sps:$4 sm:$0xff]  }
 0x362   : > { %4159 = vpow2.f32 %v3701_v1  ;;  %v5743_v1 = vld [vmem:[#allocation16] ss:$16 sps:$4 sm:$0xff]  }
 0x363   : > { %4161 = vtanh.f32 %v2109_v35 }
 0x364   : > { %4163 = vpow2.f32 %v3702_v18  ;;  %v5775_v18 = vld [vmem:[#allocation16 + $0x64] ss:$16 sps:$4 sm:$0xff]  }
 0x36a   : > { %v4156_v23 = vpop.eup %4155 }
 0x36b   : > { %v4158_v29 = vpop.eup %4157  ;;  %v2009_v50 = vmul.f32 %v4156_v23, %v4154_v59  ;;  %v5778_v23 = vld [vmem:[#allocation16 + $0x6c] ss:$16 sps:$4 sm:$0xff]  }
 0x36c   : > { %v2119_v5 = vadd.f32 1.0, %v4158_v29  ;;  %v4160_v14 = vpop.eup %4159 }
 0x36d   : > { %v5739_v6 = vsel %vm2014_vm1, %v2009_v50, %v5578_v43  ;;  %v2120_v58 = vadd.f32 1.0, %v4160_v14  ;;  %v5752_v43 = vld [vmem:[#allocation16 + $0x2c] ss:$16 sps:$4 sm:$0xff]   ;;  %v4162_v16 = vpop.eup %4161  ;;  %v5787_v14 = vld [vmem:[#allocation16 + $0x68] ss:$16 sps:$4 sm:$0xff]  }
 0x36e   : > { %4165 = vrcp.f32 %v2119_v5  ;;  %v2135_v60 = vpack.c.bf16 %v5739_v6, %v5739_v6  ;;  %v4164_v61 = vpop.eup %4163  ;;  %v5784_v5 = vld [vmem:[#allocation16 + $0x60] ss:$16 sps:$4 sm:$0xff]  }
 0x36f   : > { %4167 = vrcp.f32 %v2120_v58  ;;  %v2121_v59 = vadd.f32 1.0, %v4164_v61  ;;  %v5790_v58 = vld [vmem:[#allocation16 + $0x84] ss:$16 sps:$4 sm:$0xff]  }
 0x370   : > { %2169 = vmatmul.mubr.bf16.vlgmr.msra.gmra.mrb[32].mxu0 %v2135_v60  ;;  %2210 = vmatmul.mubr.bf16.vlgmr.msra.gmra.mrb[32].mxu1 %v2135_v60  ;;  %v5793_v60 = vld [vmem:[#allocation16 + $0x8c] ss:$16 sps:$4 sm:$0xff]   ;;  %v5803_v61 = vld [vmem:[#allocation16 + $0xa4] ss:$16 sps:$4 sm:$0xff]  }
 0x371   : > { %2219 = vmatpush1.bf16.msra.mxu0 %v5743_v1  ;;  %2260 = vmatpush1.bf16.msra.mxu1 %v5746_v17  ;;  %4169 = vrcp.f32 %v2121_v59 }
 0x372   : > { %2220 = vmatprep.subr.bf16.mxu0 %v5749_v0  ;;  %2261 = vmatprep.subr.bf16.mxu1 %v5752_v43 }
 0x373   : > { %2250 = vmatprep.mubr.bf16.mxu0 %v6221_v7  ;;  %2291 = vmatprep.mubr.bf16.mxu1 %v6221_v7 }
 0x375   : > { %2221 = vmatpush1.bf16.msra.mxu0 %v5757_v13  ;;  %2262 = vmatpush1.bf16.msra.mxu1 %v5760_v45 }
 0x376   : > { %2222 = vmatprep.subr.bf16.mxu0 %v5763_v24  ;;  %2263 = vmatprep.subr.bf16.mxu1 %v5766_v40 }
 0x378   : > { %v4166_v35 = vpop.eup %4165 }
 0x379   : > { %v2130_v36 = vmul.f32 %v4166_v35, %v4162_v16  ;;  %2223 = vmatpush1.bf16.msra.mxu0 %v5769_v33  ;;  %2264 = vmatpush1.bf16.msra.mxu1 %v5772_v12  ;;  %v4168_v37 = vpop.eup %4167  ;;  %v5800_v16 = vld [vmem:[#allocation16 + $0x88] ss:$16 sps:$4 sm:$0xff]   ;;  %v5806_v35 = vld [vmem:[#allocation16 + $0xac] ss:$16 sps:$4 sm:$0xff]  }
 0x37a   : > { %2224 = vmatprep.subr.bf16.mxu0 %v5775_v18  ;;  %2265 = vmatprep.subr.bf16.mxu1 %v5778_v23  ;;  %v2129_v29 = vmul.f32 %v4168_v37, %v5592_v15  ;;  %v5797_v15 = vld [vmem:[#allocation16 + $0x80] ss:$16 sps:$4 sm:$0xff]  }
 0x37c   : > { %v5782_v50 = vadd.f32 %v2130_v36, %v2129_v29  ;;  %v4170_v36 = vpop.eup %4169  ;;  %v4284_v29 = vld [vmem:[#allocation17 + $0xc8] ss:$16 sps:$4 sm:$0xff]  }
 0x37d   : > { %2225 = vmatpush1.bf16.msra.mxu0 %v5784_v5  ;;  %2266 = vmatpush1.bf16.msra.mxu1 %v5787_v14 }
 0x37e   : > { %2226 = vmatprep.subr.bf16.mxu0 %v5790_v58  ;;  %2267 = vmatprep.subr.bf16.mxu1 %v5793_v60  ;;  %4171 = vtanh.f32 %v5782_v50 }
 0x381   : > { %2227 = vmatpush1.bf16.msra.mxu0 %v5797_v15  ;;  %2268 = vmatpush1.bf16.msra.mxu1 %v5800_v16 }
 0x382   : > { %2228 = vmatprep.subr.bf16.mxu0 %v5803_v61  ;;  %2269 = vmatprep.subr.bf16.mxu1 %v5806_v35 }
 0x385   : > { %2229 = vmatpush1.bf16.msra.mxu0 %v6263_v19  ;;  %2270 = vmatpush1.bf16.msra.mxu1 %v6264_v20  ;;  %v6332_v20 = vld [vmem:[#allocation78_spill] sm:$0xff] }
 0x386   : > { %2230 = vmatprep.subr.bf16.mxu0 %v6265_v21  ;;  %2271 = vmatprep.subr.bf16.mxu1 %v6266_v22  ;;  %v6333_v21 = vld [vmem:[#allocation79_spill] sm:$0xff]  ;;  %v6334_v22 = vld [vmem:[#allocation80_spill] sm:$0xff] }
 0x388   : > { %v4172_v37 = vpop.eup %4171 }
 0x389   : > { %2231 = vmatpush1.bf16.msra.mxu0 %v6267_v25  ;;  %2272 = vmatpush1.bf16.msra.mxu1 %v6268_v26  ;;  %v2133_v59 = vmul.f32 %v4172_v37, %v4170_v36  ;;  %v6335_v25 = vld [vmem:[#allocation81_spill] sm:$0xff]  ;;  %v6336_v26 = vld [vmem:[#allocation82_spill] sm:$0xff] }
 0x38a   : > { %2232 = vmatprep.subr.bf16.mxu0 %v6269_v27  ;;  %2273 = vmatprep.subr.bf16.mxu1 %v6270_v28  ;;  %v6337_v27 = vld [vmem:[#allocation83_spill] sm:$0xff]  ;;  %v6338_v28 = vld [vmem:[#allocation84_spill] sm:$0xff] }
 0x38b   : > { %v2134_v19 = vpack.c.bf16 %v2133_v59, %v2133_v59  ;;  %v4285_v36 = vld [vmem:[#allocation17 + $0xe4] ss:$16 sps:$4 sm:$0xff]   ;;  %v4286_v37 = vld [vmem:[#allocation17 + $0xec] ss:$16 sps:$4 sm:$0xff]   ;;  %v4287_v59 = vld [vmem:[#allocation17 + $0xe0] ss:$16 sps:$4 sm:$0xff]  }
 0x38d   : > { %2233 = vmatpush1.bf16.msra.mxu0 %v6271_v30  ;;  %2274 = vmatpush1.bf16.msra.mxu1 %v6272_v62  ;;  %v6339_v30 = vld [vmem:[#allocation43_spill] sm:$0xff]  ;;  %v6340_v62 = vld [vmem:[#allocation44_spill] sm:$0xff] }
 0x38e   : > { %2342 = vmatprep.subr.bf16.mxu0 %v6273_v10  ;;  %2383 = vmatprep.subr.bf16.mxu1 %v6274_v46  ;;  %v6343_v10 = vld [vmem:[#allocation47_spill] sm:$0xff]  ;;  %v6344_v46 = vld [vmem:[#allocation48_spill] sm:$0xff] }
 0x390   : > { %2251 = vmatmul.mubr.bf16.vlgmr.msra.gmra.mrb[36].mxu0 %v2134_v19  ;;  %2292 = vmatmul.mubr.bf16.vlgmr.msra.gmra.mrb[36].mxu1 %v2134_v19 }
 0x391   : > { %2343 = vmatpush1.bf16.msra.mxu0 %v6275_v48  ;;  %2384 = vmatpush1.bf16.msra.mxu1 %v6276_v55  ;;  %v6345_v48 = vld [vmem:[#allocation49_spill] sm:$0xff]  ;;  %v6346_v55 = vld [vmem:[#allocation50_spill] sm:$0xff] }
 0x392   : > { %2344 = vmatprep.subr.bf16.mxu0 %v6277_v47  ;;  %2385 = vmatprep.subr.bf16.mxu1 %v6278_v49  ;;  %v6347_v47 = vld [vmem:[#allocation51_spill] sm:$0xff]  ;;  %v6348_v49 = vld [vmem:[#allocation52_spill] sm:$0xff] }
 0x393   : > { %2374 = vmatprep.mubr.bf16.mxu0 %v6221_v7  ;;  %2415 = vmatprep.mubr.bf16.mxu1 %v6221_v7 }
 0x395   : > { %2345 = vmatpush1.bf16.msra.mxu0 %v6279_v57  ;;  %2386 = vmatpush1.bf16.msra.mxu1 %v6280_v52  ;;  %v6349_v57 = vld [vmem:[#allocation53_spill] sm:$0xff]  ;;  %v6350_v52 = vld [vmem:[#allocation54_spill] sm:$0xff] }
 0x396   : > { %2346 = vmatprep.subr.bf16.mxu0 %v6281_v54  ;;  %2387 = vmatprep.subr.bf16.mxu1 %v6282_v11  ;;  %v6351_v54 = vld [vmem:[#allocation55_spill] sm:$0xff]  ;;  %v6352_v11 = vld [vmem:[#allocation56_spill] sm:$0xff] }
 0x399   : > { %2347 = vmatpush1.bf16.msra.mxu0 %v6283_v51  ;;  %2388 = vmatpush1.bf16.msra.mxu1 %v6284_v53  ;;  %v6353_v51 = vld [vmem:[#allocation57_spill] sm:$0xff]  ;;  %v6354_v53 = vld [vmem:[#allocation58_spill] sm:$0xff] }
 0x39a   : > { %2348 = vmatprep.subr.bf16.mxu0 %v6285_v39  ;;  %2389 = vmatprep.subr.bf16.mxu1 %v6286_v8  ;;  %v6355_v39 = vld [vmem:[#allocation59_spill] sm:$0xff]  ;;  %v6356_v8 = vld [vmem:[#allocation60_spill] sm:$0xff] }
 0x39d   : > { %2349 = vmatpush1.bf16.msra.mxu0 %v6287_v63  ;;  %2390 = vmatpush1.bf16.msra.mxu1 %v6288_v44  ;;  %v4275_v63 = vld [vmem:[#allocation17 + $0x80] ss:$16 sps:$4 sm:$0xff]   ;;  %v4276_v44 = vld [vmem:[#allocation17 + $0x88] ss:$16 sps:$4 sm:$0xff]  }
 0x39e   : > { %2350 = vmatprep.subr.bf16.mxu0 %v6289_v32  ;;  %2391 = vmatprep.subr.bf16.mxu1 %v6290_v4  ;;  %v4277_v32 = vld [vmem:[#allocation17 + $0xa4] ss:$16 sps:$4 sm:$0xff]   ;;  %v4278_v4 = vld [vmem:[#allocation17 + $0xac] ss:$16 sps:$4 sm:$0xff]  }
 0x3a1   : > { %2351 = vmatpush1.bf16.msra.mxu0 %v6291_v3  ;;  %2392 = vmatpush1.bf16.msra.mxu1 %v6292_v38  ;;  %v4279_v3 = vld [vmem:[#allocation17 + $0xa0] ss:$16 sps:$4 sm:$0xff]   ;;  %v4280_v38 = vld [vmem:[#allocation17 + $0xa8] ss:$16 sps:$4 sm:$0xff]  }
 0x3a2   : > { %2352 = vmatprep.subr.bf16.mxu0 %v6293_v42  ;;  %2393 = vmatprep.subr.bf16.mxu1 %v6294_v41  ;;  %v4281_v42 = vld [vmem:[#allocation17 + $0xc4] ss:$16 sps:$4 sm:$0xff]   ;;  %v4282_v41 = vld [vmem:[#allocation17 + $0xcc] ss:$16 sps:$4 sm:$0xff]  }
 0x3a5   : > { %2353 = vmatpush1.bf16.msra.mxu0 %v6295_v9  ;;  %2394 = vmatpush1.bf16.msra.mxu1 %v5409_v31  ;;  %v6341_v31 = vld [vmem:[#allocation45_spill] sm:$0xff]  ;;  %v4283_v9 = vld [vmem:[#allocation17 + $0xc0] ss:$16 sps:$4 sm:$0xff]  }
 0x3a6   : > { %2354 = vmatprep.subr.bf16.mxu0 %v5413_v34  ;;  %2395 = vmatprep.subr.bf16.mxu1 %v6332_v20  ;;  %v6342_v34 = vld [vmem:[#allocation46_spill] sm:$0xff]  ;;  %v4289_v20 = vld [vmem:[#allocation16 + $0x4] ss:$16 sps:$4 sm:$0xff]  }
 0x3a9   : > { %2355 = vmatpush1.bf16.msra.mxu0 %v6333_v21  ;;  %2396 = vmatpush1.bf16.msra.mxu1 %v6334_v22  ;;  %v4290_v21 = vld [vmem:[#allocation16 + $0xc] ss:$16 sps:$4 sm:$0xff]  }
 0x3aa   : > { %2356 = vmatprep.subr.bf16.mxu0 %v6335_v25  ;;  %2397 = vmatprep.subr.bf16.mxu1 %v6336_v26 }
 0x3ad   : > { %2357 = vmatpush1.bf16.msra.mxu0 %v6337_v27  ;;  %2398 = vmatpush1.bf16.msra.mxu1 %v6338_v28 }
 0x3ae   : > { %2454 = vmatprep.subr.bf16.mxu0 %v6339_v30  ;;  %2495 = vmatprep.subr.bf16.mxu1 %v6340_v62 }
 0x3b0   : > { %2375 = vmatmul.mubr.bf16.vlgmr.msra.gmra.mrb[40].mxu0 %v2134_v19  ;;  %2416 = vmatmul.mubr.bf16.vlgmr.msra.gmra.mrb[40].mxu1 %v2134_v19  ;;  %v4288_v19 = vld [vmem:[#allocation17 + $0xe8] ss:$16 sps:$4 sm:$0xff]  }
 0x3b1   : > { %2455 = vmatpush1.bf16.msra.mxu0 %v6341_v31  ;;  %2496 = vmatpush1.bf16.msra.mxu1 %v6342_v34 }
 0x3b2   : > { %2456 = vmatprep.subr.bf16.mxu0 %v6343_v10  ;;  %2497 = vmatprep.subr.bf16.mxu1 %v6344_v46 }
 0x3b3   : > { %2486 = vmatprep.mubr.bf16.mxu0 %v6221_v7  ;;  %2527 = vmatprep.mubr.bf16.mxu1 %v6221_v7 }
 0x3b5   : > { %2457 = vmatpush1.bf16.msra.mxu0 %v6345_v48  ;;  %2498 = vmatpush1.bf16.msra.mxu1 %v6346_v55 }
 0x3b6   : > { %2458 = vmatprep.subr.bf16.mxu0 %v6347_v47  ;;  %2499 = vmatprep.subr.bf16.mxu1 %v6348_v49 }
 0x3b9   : > { %2459 = vmatpush1.bf16.msra.mxu0 %v6349_v57  ;;  %2500 = vmatpush1.bf16.msra.mxu1 %v6350_v52 }
 0x3ba   : > { %2460 = vmatprep.subr.bf16.mxu0 %v6351_v54  ;;  %2501 = vmatprep.subr.bf16.mxu1 %v6352_v11 }
 0x3bd   : > { %2461 = vmatpush1.bf16.msra.mxu0 %v6353_v51  ;;  %2502 = vmatpush1.bf16.msra.mxu1 %v6354_v53 }
 0x3be   : > { %2462 = vmatprep.subr.bf16.mxu0 %v6355_v39  ;;  %2503 = vmatprep.subr.bf16.mxu1 %v6356_v8  ;;  %v6357_v39 = vld [vmem:[#allocation97_spill] sm:$0xff] }
 0x3c1   : > { %2463 = vmatpush1.bf16.msra.mxu0 %v4275_v63  ;;  %2504 = vmatpush1.bf16.msra.mxu1 %v4276_v44 }
 0x3c2   : > { %2464 = vmatprep.subr.bf16.mxu0 %v4277_v32  ;;  %2505 = vmatprep.subr.bf16.mxu1 %v4278_v4  ;;  %v6358_v32 = vld [vmem:[#allocation98_spill] sm:$0xff] }
 0x3c5   : > { %2465 = vmatpush1.bf16.msra.mxu0 %v4279_v3  ;;  %2506 = vmatpush1.bf16.msra.mxu1 %v4280_v38  ;;  %v6359_v3 = vld [vmem:[#allocation99_spill] sm:$0xff] }
 0x3c6   : > { %2466 = vmatprep.subr.bf16.mxu0 %v4281_v42  ;;  %2507 = vmatprep.subr.bf16.mxu1 %v4282_v41 }
 0x3c9   : > { %2467 = vmatpush1.bf16.msra.mxu0 %v4283_v9  ;;  %2508 = vmatpush1.bf16.msra.mxu1 %v4284_v29 }
 0x3ca   : > { %2468 = vmatprep.subr.bf16.mxu0 %v4285_v36  ;;  %2509 = vmatprep.subr.bf16.mxu1 %v4286_v37 }
 0x3cd   : > { %2469 = vmatpush1.bf16.msra.mxu0 %v4287_v59  ;;  %2510 = vmatpush1.bf16.msra.mxu1 %v4288_v19 }
 0x3ce   : > { %2536 = vmatprep.subr.bf16.mxu0 %v4289_v20  ;;  %2577 = vmatprep.subr.bf16.mxu1 %v4290_v21  ;;  %v2331_v21 = vstv %s2330_s27 }
 0x3cf   : > { %vm2332_vm2 = vcmp.eq.s32.totalorder %v2331_v21, 1  ;;  %v4304_v21 = vld [vmem:[#allocation13 + $0x8] ss:$16 sps:$4 sm:$0xff]  }
 0x443   : > { %v2170_v22 = vpop.f32.mrb[32].mxu0  ;;  %v2211_v25 = vpop.f32.mrb[32].mxu1 }
 0x444   : > { %v2172_v26 = vpop.f32.mrb[33].mxu0  ;;  %v2213_v27 = vpop.f32.mrb[33].mxu1 }
 0x445   : > { %v2174_v28 = vpop.f32.mrb[34].mxu0  ;;  %v2215_v30 = vpop.f32.mrb[34].mxu1 }
 0x446   : > { %v2175_v62 = vpop.f32.mrb[35].mxu0  ;;  %v2216_v31 = vpop.f32.mrb[35].mxu1  ;;  %v6360_v30 = vld [vmem:[#allocation89_spill] sm:$0xff] }
 0x447   : > { %v6361_v31 = vld [vmem:[#allocation90_spill] sm:$0xff] }
 0x463   : > { %v2252_v34 = vpop.f32.mrb[36].mxu0  ;;  %v2293_v10 = vpop.f32.mrb[36].mxu1 }
 0x464   : > { %v2253_v46 = vadd.f32 %v2252_v34, %v2170_v22  ;;  %v2294_v48 = vadd.f32 %v2293_v10, %v2211_v25  ;;  %v2254_v55 = vpop.f32.mrb[37].mxu0  ;;  %v2295_v47 = vpop.f32.mrb[37].mxu1 }
 0x465   : > { %v2255_v49 = vadd.f32 %v2254_v55, %v2172_v26  ;;  %v2296_v57 = vadd.f32 %v2295_v47, %v2213_v27  ;;  %v2256_v52 = vpop.f32.mrb[38].mxu0  ;;  %v2297_v54 = vpop.f32.mrb[38].mxu1  ;;  %v6363_v47 = vld [vmem:[#allocation92_spill] sm:$0xff] }
 0x466   : > { %v2300_v11 = vadd.f32 %v2253_v46, %v5539_v2  ;;  %v2257_v51 = vpop.f32.mrb[39].mxu0  ;;  %v2298_v53 = vpop.f32.mrb[39].mxu1  ;;  %v2302_v4 = vadd.f32 %v2294_v48, %v6358_v32  ;;  %v6362_v48 = vld [vmem:[#allocation91_spill] sm:$0xff] }
 0x467   : > { %v2301_v8 = vadd.f32 %v2255_v49, %v6357_v39  ;;  %v2303_v38 = vadd.f32 %v2296_v57, %v6359_v3 }
 0x468   : > { %v3703_v63 = vmul.f32 -1.442695, %v2300_v11  ;;  %v3705_v42 = vmul.f32 -1.442695, %v2302_v4 }
 0x469   : > { %v3704_v44 = vmul.f32 -1.442695, %v2301_v8 }
 0x46a   : > { %4173 = vpow2.f32 %v3703_v63 }
 0x46b   : > { %4175 = vpow2.f32 %v3704_v44 }
 0x46c   : > { %4177 = vtanh.f32 %v2303_v38 }
 0x46d   : > { %4179 = vpow2.f32 %v3705_v42 }
 0x474   : > { %v4174_v41 = vpop.eup %4173 }
 0x475   : > { %v2313_v9 = vadd.f32 1.0, %v4174_v41  ;;  %v4176_v29 = vpop.eup %4175 }
 0x476   : > { %v2314_v36 = vadd.f32 1.0, %v4176_v29  ;;  %v4178_v37 = vpop.eup %4177 }
 0x477   : > { %4181 = vrcp.f32 %v2313_v9  ;;  %v4180_v59 = vpop.eup %4179 }
 0x478   : > { %4183 = vrcp.f32 %v2314_v36  ;;  %v2315_v25 = vadd.f32 1.0, %v4180_v59 }
 0x47a   : > { %4185 = vrcp.f32 %v2315_v25  ;;  %v4306_v25 = vld [vmem:[#allocation13 + $0x2c] ss:$16 sps:$4 sm:$0xff]  }
 0x481   : > { %v4182_v19 = vpop.eup %4181 }
 0x482   : > { %v2324_v20 = vmul.f32 %v4182_v19, %v4178_v37  ;;  %v4184_v22 = vpop.eup %4183  ;;  %v4302_v19 = vld [vmem:[#allocation13 + $0xc] ss:$16 sps:$4 sm:$0xff]  }
 0x483   : > { %v2376_v26 = vpop.f32.mrb[40].mxu0  ;;  %v2417_v27 = vpop.f32.mrb[40].mxu1  ;;  %v2323_v28 = vmul.f32 %v4184_v22, %v5735_v56  ;;  %v4305_v22 = vld [vmem:[#allocation13 + $0x24] ss:$16 sps:$4 sm:$0xff]  }
 0x484   : > { %v2424_v62 = vadd.f32 %v2376_v26, %v6360_v30  ;;  %v2426_v34 = vadd.f32 %v2417_v27, %v6361_v31  ;;  %v2378_v10 = vpop.f32.mrb[41].mxu0  ;;  %v2419_v46 = vpop.f32.mrb[41].mxu1  ;;  %v4307_v26 = vld [vmem:[#allocation13 + $0x20] ss:$16 sps:$4 sm:$0xff]   ;;  %v4308_v27 = vld [vmem:[#allocation13 + $0x28] ss:$16 sps:$4 sm:$0xff]  }
 0x485   : > { %v2425_v55 = vadd.f32 %v2378_v10, %v6362_v48  ;;  %v2427_v49 = vadd.f32 %v2419_v46, %v6363_v47  ;;  %v2380_v57 = vpop.f32.mrb[42].mxu0  ;;  %v2421_v52 = vpop.f32.mrb[42].mxu1  ;;  %v2325_v54 = vadd.f32 %v2324_v20, %v2323_v28  ;;  %v4303_v20 = vld [vmem:[#allocation13] ss:$16 sps:$4 sm:$0xff]   ;;  %v4309_v28 = vld [vmem:[#allocation13 + $0x44] ss:$16 sps:$4 sm:$0xff]  }
 0x486   : > { %v3706_v11 = vmul.f32 -1.442695, %v2424_v62  ;;  %v2381_v51 = vpop.f32.mrb[43].mxu0  ;;  %v2422_v53 = vpop.f32.mrb[43].mxu1  ;;  %v3708_v4 = vmul.f32 -1.442695, %v2426_v34 }
 0x487   : > { %v3707_v8 = vmul.f32 -1.442695, %v2425_v55  ;;  %4187 = vtanh.f32 %v2325_v54  ;;  %v5885_v63 = vsel %vm2332_vm2, %v2325_v54, %v5735_v56  ;;  %v4186_v44 = vpop.eup %4185  ;;  %v4310_v30 = vld [vmem:[#allocation13 + $0x4c] ss:$16 sps:$4 sm:$0xff]   ;;  %v4311_v62 = vld [vmem:[#allocation13 + $0x40] ss:$16 sps:$4 sm:$0xff]  }
 0x488   : > { %4189 = vpow2.f32 %v3706_v11  ;;  %v4312_v31 = vld [vmem:[#allocation13 + $0x48] ss:$16 sps:$4 sm:$0xff]   ;;  %v4313_v34 = vld [vmem:[#allocation13 + $0x64] ss:$16 sps:$4 sm:$0xff]   ;;  %v4314_v10 = vld [vmem:[#allocation13 + $0x6c] ss:$16 sps:$4 sm:$0xff]  }
 0x489   : > { %4191 = vpow2.f32 %v3707_v8  ;;  %v4315_v46 = vld [vmem:[#allocation13 + $0x60] ss:$16 sps:$4 sm:$0xff]   ;;  %v4316_v48 = vld [vmem:[#allocation13 + $0x68] ss:$16 sps:$4 sm:$0xff]   ;;  %v4318_v55 = vld [vmem:[#allocation13 + $0x8c] ss:$16 sps:$4 sm:$0xff]  }
 0x48a   : > { %4193 = vtanh.f32 %v2427_v49  ;;  %v4319_v47 = vld [vmem:[#allocation13 + $0x80] ss:$16 sps:$4 sm:$0xff]   ;;  %v4320_v49 = vld [vmem:[#allocation13 + $0x88] ss:$16 sps:$4 sm:$0xff]   ;;  %v4321_v57 = vld [vmem:[#allocation13 + $0xa4] ss:$16 sps:$4 sm:$0xff]  }
 0x48b   : > { %4195 = vpow2.f32 %v3708_v4  ;;  %v4322_v52 = vld [vmem:[#allocation13 + $0xac] ss:$16 sps:$4 sm:$0xff]   ;;  %v4323_v54 = vld [vmem:[#allocation13 + $0xa0] ss:$16 sps:$4 sm:$0xff]   ;;  %v4324_v11 = vld [vmem:[#allocation13 + $0xa8] ss:$16 sps:$4 sm:$0xff]  }
 0x48c   : > { %v4325_v51 = vld [vmem:[#allocation13 + $0xc4] ss:$16 sps:$4 sm:$0xff]   ;;  %v4326_v53 = vld [vmem:[#allocation13 + $0xcc] ss:$16 sps:$4 sm:$0xff]   ;;  %v4327_v8 = vld [vmem:[#allocation13 + $0xc0] ss:$16 sps:$4 sm:$0xff]  }
 0x48d   : > { %v4329_v4 = vld [vmem:[#allocation13 + $0xe4] ss:$16 sps:$4 sm:$0xff]  }
 0x491   : > { %v4188_v38 = vpop.eup %4187 }
 0x492   : > { %v4190_v42 = vpop.eup %4189  ;;  %v2327_v41 = vmul.f32 %v4188_v38, %v4186_v44  ;;  %v4328_v44 = vld [vmem:[#allocation13 + $0xc8] ss:$16 sps:$4 sm:$0xff]   ;;  %v4330_v38 = vld [vmem:[#allocation13 + $0xec] ss:$16 sps:$4 sm:$0xff]  }
 0x493   : > { %v2437_v9 = vadd.f32 1.0, %v4190_v42  ;;  %v4192_v29 = vpop.eup %4191  ;;  %v4331_v42 = vld [vmem:[#allocation13 + $0xe0] ss:$16 sps:$4 sm:$0xff]  }
 0x494   : > { %v5889_v36 = vsel %vm2332_vm2, %v2327_v41, %v5739_v6  ;;  %v2438_v37 = vadd.f32 1.0, %v4192_v29  ;;  %v4194_v6 = vpop.eup %4193  ;;  %v4332_v41 = vld [vmem:[#allocation13 + $0xe8] ss:$16 sps:$4 sm:$0xff]  }
 0x495   : > { %4197 = vrcp.f32 %v2437_v9  ;;  %v2453_v56 = vpack.c.bf16 %v5889_v36, %v5889_v36 }
 0x496   : > { %4199 = vrcp.f32 %v2438_v37 }
 0x497   : > { %2487 = vmatmul.mubr.bf16.vlgmr.msra.gmra.mrb[44].mxu0 %v2453_v56  ;;  %2528 = vmatmul.mubr.bf16.vlgmr.msra.gmra.mrb[44].mxu1 %v2453_v56 }
 0x498   : > { %2537 = vmatpush1.bf16.msra.mxu0 %v5743_v1  ;;  %2578 = vmatpush1.bf16.msra.mxu1 %v5746_v17  ;;  %v4196_v1 = vpop.eup %4195 }
 0x499   : > { %2538 = vmatprep.subr.bf16.mxu0 %v5749_v0  ;;  %2579 = vmatprep.subr.bf16.mxu1 %v5752_v43  ;;  %v2439_v43 = vadd.f32 1.0, %v4196_v1 }
 0x49a   : > { %2568 = vmatprep.mubr.bf16.mxu0 %v6221_v7  ;;  %2609 = vmatprep.mubr.bf16.mxu1 %v6221_v7 }
 0x49b   : > { %4201 = vrcp.f32 %v2439_v43 }
 0x49c   : > { %2539 = vmatpush1.bf16.msra.mxu0 %v5757_v13  ;;  %2580 = vmatpush1.bf16.msra.mxu1 %v5760_v45 }
 0x49d   : > { %2540 = vmatprep.subr.bf16.mxu0 %v5763_v24  ;;  %2581 = vmatprep.subr.bf16.mxu1 %v5766_v40  ;;  %v4291_v24 = vld [vmem:[#allocation16 + $0xa0] ss:$16 sps:$4 sm:$0xff]   ;;  %v4292_v40 = vld [vmem:[#allocation16 + $0xa8] ss:$16 sps:$4 sm:$0xff]  }
 0x49f   : > { %v4198_v59 = vpop.eup %4197 }
 0x4a0   : > { %v2448_v17 = vmul.f32 %v4198_v59, %v4194_v6  ;;  %2541 = vmatpush1.bf16.msra.mxu0 %v5769_v33  ;;  %2582 = vmatpush1.bf16.msra.mxu1 %v5772_v12  ;;  %v4200_v0 = vpop.eup %4199  ;;  %v4293_v33 = vld [vmem:[#allocation16 + $0xc4] ss:$16 sps:$4 sm:$0xff]   ;;  %v4294_v12 = vld [vmem:[#allocation16 + $0xcc] ss:$16 sps:$4 sm:$0xff]  }
 0x4a1   : > { %2542 = vmatprep.subr.bf16.mxu0 %v5775_v18  ;;  %2583 = vmatprep.subr.bf16.mxu1 %v5778_v23  ;;  %v2447_v13 = vmul.f32 %v4200_v0, %v5782_v50  ;;  %v4295_v50 = vld [vmem:[#allocation16 + $0xc0] ss:$16 sps:$4 sm:$0xff]  }
 0x4a3   : > { %v5908_v45 = vadd.f32 %v2448_v17, %v2447_v13 }
 0x4a4   : > { %2543 = vmatpush1.bf16.msra.mxu0 %v5784_v5  ;;  %2584 = vmatpush1.bf16.msra.mxu1 %v5787_v14  ;;  %v4296_v5 = vld [vmem:[#allocation16 + $0xc8] ss:$16 sps:$4 sm:$0xff]   ;;  %v4297_v14 = vld [vmem:[#allocation16 + $0xe4] ss:$16 sps:$4 sm:$0xff]  }
 0x4a5   : > { %2544 = vmatprep.subr.bf16.mxu0 %v5790_v58  ;;  %2585 = vmatprep.subr.bf16.mxu1 %v5793_v60  ;;  %4203 = vtanh.f32 %v5908_v45  ;;  %v4202_v18 = vpop.eup %4201  ;;  %v4298_v58 = vld [vmem:[#allocation16 + $0xec] ss:$16 sps:$4 sm:$0xff]  }
 0x4a8   : > { %2545 = vmatpush1.bf16.msra.mxu0 %v5797_v15  ;;  %2586 = vmatpush1.bf16.msra.mxu1 %v5800_v16  ;;  %v4299_v15 = vld [vmem:[#allocation16 + $0xe0] ss:$16 sps:$4 sm:$0xff]   ;;  %v4300_v16 = vld [vmem:[#allocation16 + $0xe8] ss:$16 sps:$4 sm:$0xff]  }
 0x4a9   : > { %2546 = vmatprep.subr.bf16.mxu0 %v5803_v61  ;;  %2587 = vmatprep.subr.bf16.mxu1 %v5806_v35  ;;  %v4301_v35 = vld [vmem:[#allocation13 + $0x4] ss:$16 sps:$4 sm:$0xff]  }
 0x4ac   : > { %2547 = vmatpush1.bf16.msra.mxu0 %v4291_v24  ;;  %2588 = vmatpush1.bf16.msra.mxu1 %v4292_v40 }
 0x4ad   : > { %2548 = vmatprep.subr.bf16.mxu0 %v4293_v33  ;;  %2589 = vmatprep.subr.bf16.mxu1 %v4294_v12 }
 0x4af   : > { %v4204_v23 = vpop.eup %4203 }
 0x4b0   : > { %2549 = vmatpush1.bf16.msra.mxu0 %v4295_v50  ;;  %2590 = vmatpush1.bf16.msra.mxu1 %v4296_v5  ;;  %v2451_v60 = vmul.f32 %v4204_v23, %v4202_v18 }
 0x4b1   : > { %2550 = vmatprep.subr.bf16.mxu0 %v4297_v14  ;;  %2591 = vmatprep.subr.bf16.mxu1 %v4298_v58 }
 0x4b2   : > { %v5919_v61 = vpack.c.bf16 %v2451_v60, %v2451_v60 }
 0x4b4   : > { %2551 = vmatpush1.bf16.msra.mxu0 %v4299_v15  ;;  %2592 = vmatpush1.bf16.msra.mxu1 %v4300_v16 }
 0x4b5   : > { %2660 = vmatprep.subr.bf16.mxu0 %v4301_v35  ;;  %2701 = vmatprep.subr.bf16.mxu1 %v4302_v19 }
 0x4b7   : > { %2569 = vmatmul.mubr.bf16.vlgmr.msra.gmra.mrb[48].mxu0 %v5919_v61  ;;  %2610 = vmatmul.mubr.bf16.vlgmr.msra.gmra.mrb[48].mxu1 %v5919_v61 }
 0x4b8   : > { %2661 = vmatpush1.bf16.msra.mxu0 %v4303_v20  ;;  %2702 = vmatpush1.bf16.msra.mxu1 %v4304_v21 }
 0x4b9   : > { %2662 = vmatprep.subr.bf16.mxu0 %v4305_v22  ;;  %2703 = vmatprep.subr.bf16.mxu1 %v4306_v25 }
 0x4ba   : > { %2692 = vmatprep.mubr.bf16.mxu0 %v6221_v7  ;;  %2733 = vmatprep.mubr.bf16.mxu1 %v6221_v7  ;;  %v4317_v7 = vld [vmem:[#allocation13 + $0x84] ss:$16 sps:$4 sm:$0xff]  }
 0x4bc   : > { %2663 = vmatpush1.bf16.msra.mxu0 %v4307_v26  ;;  %2704 = vmatpush1.bf16.msra.mxu1 %v4308_v27 }
 0x4bd   : > { %2664 = vmatprep.subr.bf16.mxu0 %v4309_v28  ;;  %2705 = vmatprep.subr.bf16.mxu1 %v4310_v30  ;;  %v2649_v28 = vstv %s2648_s23 }
 0x4be   : > { %vm2650_vm3 = vcmp.eq.s32.totalorder %v2649_v28, 1  ;;  %v4359_v28 = vld [vmem:[#allocation17 + $0x8c] ss:$16 sps:$4 sm:$0xff] (!%p3715_p8)  }
 0x4c0   : > { %2665 = vmatpush1.bf16.msra.mxu0 %v4311_v62  ;;  %2706 = vmatpush1.bf16.msra.mxu1 %v4312_v31 }
 0x4c1   : > { %2666 = vmatprep.subr.bf16.mxu0 %v4313_v34  ;;  %2707 = vmatprep.subr.bf16.mxu1 %v4314_v10  ;;  %v6364_v10 = vld [vmem:[#allocation93_spill] sm:$0xff] }
 0x4c4   : > { %2667 = vmatpush1.bf16.msra.mxu0 %v4315_v46  ;;  %2708 = vmatpush1.bf16.msra.mxu1 %v4316_v48  ;;  %v6365_v48 = vld [vmem:[#allocation94_spill] sm:$0xff] }
 0x4c5   : > { %2668 = vmatprep.subr.bf16.mxu0 %v4317_v7  ;;  %2709 = vmatprep.subr.bf16.mxu1 %v4318_v55 }
 0x4c8   : > { %2669 = vmatpush1.bf16.msra.mxu0 %v4319_v47  ;;  %2710 = vmatpush1.bf16.msra.mxu1 %v4320_v49  ;;  %v6366_v49 = vld [vmem:[#allocation95_spill] sm:$0xff] }
 0x4c9   : > { %2670 = vmatprep.subr.bf16.mxu0 %v4321_v57  ;;  %2711 = vmatprep.subr.bf16.mxu1 %v4322_v52  ;;  %v6367_v52 = vld [vmem:[#allocation96_spill] sm:$0xff] }
 0x4cc   : > { %2671 = vmatpush1.bf16.msra.mxu0 %v4323_v54  ;;  %2712 = vmatpush1.bf16.msra.mxu1 %v4324_v11 }
 0x4cd   : > { %2672 = vmatprep.subr.bf16.mxu0 %v4325_v51  ;;  %2713 = vmatprep.subr.bf16.mxu1 %v4326_v53 }
 0x4d0   : > { %2673 = vmatpush1.bf16.msra.mxu0 %v4327_v8  ;;  %2714 = vmatpush1.bf16.msra.mxu1 %v4328_v44 }
 0x4d1   : > { %2674 = vmatprep.subr.bf16.mxu0 %v4329_v4  ;;  %2715 = vmatprep.subr.bf16.mxu1 %v4330_v38 }
 0x4d4   : > { %2675 = vmatpush1.bf16.msra.mxu0 %v4331_v42  ;;  %2716 = vmatpush1.bf16.msra.mxu1 %v4332_v41 }
 0x4d7   : > { %2693 = vmatmul.mubr.bf16.vlgmr.msra.gmra.mrb[52].mxu0 %v5919_v61  ;;  %2734 = vmatmul.mubr.bf16.vlgmr.msra.gmra.mrb[52].mxu1 %v5919_v61 }
 0x56a   : > { %v2488_v9 = vpop.f32.mrb[44].mxu0  ;;  %v2529_v29 = vpop.f32.mrb[44].mxu1 }
 0x56b   : > { %v2490_v37 = vpop.f32.mrb[45].mxu0  ;;  %v2531_v56 = vpop.f32.mrb[45].mxu1 }
 0x56c   : > { %v2492_v6 = vpop.f32.mrb[46].mxu0  ;;  %v2533_v1 = vpop.f32.mrb[46].mxu1 }
 0x56d   : > { %v2493_v59 = vpop.f32.mrb[47].mxu0  ;;  %v2534_v17 = vpop.f32.mrb[47].mxu1 }
 0x58a   : > { %v2570_v0 = vpop.f32.mrb[48].mxu0  ;;  %v2611_v43 = vpop.f32.mrb[48].mxu1 }
 0x58b   : > { %v2571_v13 = vadd.f32 %v2570_v0, %v2488_v9  ;;  %v2612_v24 = vadd.f32 %v2611_v43, %v2529_v29  ;;  %v2572_v40 = vpop.f32.mrb[49].mxu0  ;;  %v2613_v33 = vpop.f32.mrb[49].mxu1 }
 0x58c   : > { %v2573_v12 = vadd.f32 %v2572_v40, %v2490_v37  ;;  %v2614_v18 = vadd.f32 %v2613_v33, %v2531_v56  ;;  %v2574_v23 = vpop.f32.mrb[50].mxu0  ;;  %v2615_v50 = vpop.f32.mrb[50].mxu1 }
 0x58d   : > { %v2618_v5 = vadd.f32 %v2571_v13, %v5539_v2  ;;  %v2575_v14 = vpop.f32.mrb[51].mxu0  ;;  %v2616_v58 = vpop.f32.mrb[51].mxu1  ;;  %v2620_v61 = vadd.f32 %v2612_v24, %v6358_v32  ;;  %v4333_v50 = vld [vmem:[#allocation17 + $0x4] ss:$16 sps:$4 sm:$0xff] (!%p3715_p8)  }
 0x58e   : > { %v2619_v60 = vadd.f32 %v2573_v12, %v6357_v39  ;;  %v2621_v35 = vadd.f32 %v2614_v18, %v6359_v3  ;;  %v4767_v14 = vmov (!%p3715_p8), 0   ;;  %3004 = vmatprep.subr.bf16.mxu0 (!%p3715_p8), %v4333_v50  ;;  %v4338_v58 = vld [vmem:[#allocation17 + $0x8] ss:$16 sps:$4 sm:$0xff] (!%p3715_p8)  }
 0x58f   : > { %v3709_v15 = vmul.f32 -1.442695, %v2618_v5  ;;  %v3711_v19 = vmul.f32 -1.442695, %v2620_v61  ;;  %v4335_v5 = vld [vmem:[#allocation17 + $0xc] ss:$16 sps:$4 sm:$0xff] (!%p3715_p8)   ;;  %3036 = vmatprep.mubr.bf16.mxu0 (!%p3715_p8), %v4767_v14  ;;  %3077 = vmatprep.mubr.bf16.mxu1 (!%p3715_p8), %v4767_v14 }
 0x590   : > { %v3710_v16 = vmul.f32 -1.442695, %v2619_v60  ;;  %3045 = vmatprep.subr.bf16.mxu1 (!%p3715_p8), %v4335_v5  ;;  %v4339_v60 = vld [vmem:[#allocation17 + $0x24] ss:$16 sps:$4 sm:$0xff] (!%p3715_p8)   ;;  %v4344_v61 = vld [vmem:[#allocation17 + $0x28] ss:$16 sps:$4 sm:$0xff] (!%p3715_p8)  }
 0x591   : > { %4205 = vpow2.f32 %v3709_v15  ;;  %3046 = vmatpush1.bf16.msra.mxu1 (!%p3715_p8), %v4338_v58  ;;  %v4341_v15 = vld [vmem:[#allocation17 + $0x2c] ss:$16 sps:$4 sm:$0xff] (!%p3715_p8)   ;;  %v4420_v50 = vld [vmem:[#allocation16 + $0xc8] ss:$16 sps:$4 sm:$0xff] (!%p3715_p8)   ;;  %v4425_v5 = vld [vmem:[#allocation16 + $0xe4] ss:$16 sps:$4 sm:$0xff] (!%p3715_p8)  }
 0x592   : > { %4207 = vpow2.f32 %v3710_v16  ;;  %v4343_v16 = vld [vmem:[#allocation17 + $0x20] ss:$16 sps:$4 sm:$0xff] (!%p3715_p8)   ;;  %3047 = vmatprep.subr.bf16.mxu1 (!%p3715_p8), %v4341_v15  ;;  %v4426_v58 = vld [vmem:[#allocation16 + $0xe8] ss:$16 sps:$4 sm:$0xff] (!%p3715_p8)  }
 0x593   : > { %4209 = vtanh.f32 %v2621_v35  ;;  %v4345_v35 = vld [vmem:[#allocation17 + $0x44] ss:$16 sps:$4 sm:$0xff] (!%p3715_p8)  }
 0x594   : > { %4211 = vpow2.f32 %v3711_v19  ;;  %v4347_v19 = vld [vmem:[#allocation17 + $0x4c] ss:$16 sps:$4 sm:$0xff] (!%p3715_p8)  }
 0x595   : > { %3048 = vmatpush1.bf16.msra.mxu1 (!%p3715_p8), %v4344_v61 }
 0x596   : > { %3049 = vmatprep.subr.bf16.mxu1 (!%p3715_p8), %v4347_v19 }
 0x59b   : > { %v4206_v20 = vpop.eup %4205 }
 0x59c   : > { %v2631_v21 = vadd.f32 1.0, %v4206_v20  ;;  %v4208_v22 = vpop.eup %4207  ;;  %v4349_v20 = vld [vmem:[#allocation17 + $0x40] ss:$16 sps:$4 sm:$0xff] (!%p3715_p8)  }
 0x59d   : > { %v2632_v25 = vadd.f32 1.0, %v4208_v22  ;;  %v4210_v39 = vpop.eup %4209  ;;  %v4351_v22 = vld [vmem:[#allocation17 + $0x64] ss:$16 sps:$4 sm:$0xff] (!%p3715_p8)  }
 0x59e   : > { %4213 = vrcp.f32 %v2631_v21  ;;  %v4212_v26 = vpop.eup %4211  ;;  %v4350_v21 = vld [vmem:[#allocation17 + $0x48] ss:$16 sps:$4 sm:$0xff] (!%p3715_p8)  }
 0x59f   : > { %4215 = vrcp.f32 %v2632_v25  ;;  %v2633_v62 = vadd.f32 1.0, %v4212_v26  ;;  %v4353_v25 = vld [vmem:[#allocation17 + $0x6c] ss:$16 sps:$4 sm:$0xff] (!%p3715_p8)   ;;  %3050 = vmatpush1.bf16.msra.mxu1 (!%p3715_p8), %v4350_v21  ;;  %v4356_v26 = vld [vmem:[#allocation17 + $0x68] ss:$16 sps:$4 sm:$0xff] (!%p3715_p8)  }
 0x5a0   : > { %3051 = vmatprep.subr.bf16.mxu1 (!%p3715_p8), %v4353_v25 }
 0x5a1   : > { %4217 = vrcp.f32 %v2633_v62  ;;  %v4363_v62 = vld [vmem:[#allocation17 + $0xa4] ss:$16 sps:$4 sm:$0xff] (!%p3715_p8)  }
 0x5a3   : > { %3052 = vmatpush1.bf16.msra.mxu1 (!%p3715_p8), %v4356_v26 }
 0x5a4   : > { %3053 = vmatprep.subr.bf16.mxu1 (!%p3715_p8), %v4359_v28 }
 0x5a8   : > { %v4214_v27 = vpop.eup %4213 }
 0x5a9   : > { %v2642_v30 = vmul.f32 %v4214_v27, %v4210_v39  ;;  %v4216_v32 = vpop.eup %4215  ;;  %v4355_v39 = vld [vmem:[#allocation17 + $0x60] ss:$16 sps:$4 sm:$0xff] (!%p3715_p8)   ;;  %v4357_v27 = vld [vmem:[#allocation17 + $0x84] ss:$16 sps:$4 sm:$0xff] (!%p3715_p8)  }
 0x5aa   : > { %v2694_v3 = vpop.f32.mrb[52].mxu0  ;;  %v2735_v31 = vpop.f32.mrb[52].mxu1  ;;  %v2641_v34 = vmul.f32 %v4216_v32, %v5885_v63  ;;  %v4362_v32 = vld [vmem:[#allocation17 + $0x88] ss:$16 sps:$4 sm:$0xff] (!%p3715_p8)  }
 0x5ab   : > { %v2742_v46 = vadd.f32 %v2694_v3, %v6364_v10  ;;  %v2744_v7 = vadd.f32 %v2735_v31, %v6365_v48  ;;  %v2696_v55 = vpop.f32.mrb[53].mxu0  ;;  %v2737_v47 = vpop.f32.mrb[53].mxu1  ;;  %v4365_v3 = vld [vmem:[#allocation17 + $0xac] ss:$16 sps:$4 sm:$0xff] (!%p3715_p8)   ;;  %v4367_v31 = vld [vmem:[#allocation17 + $0xa0] ss:$16 sps:$4 sm:$0xff] (!%p3715_p8)   ;;  %3054 = vmatpush1.bf16.msra.mxu1 (!%p3715_p8), %v4362_v32 }
 0x5ac   : > { %v2743_v57 = vadd.f32 %v2696_v55, %v6366_v49  ;;  %v2745_v54 = vadd.f32 %v2737_v47, %v6367_v52  ;;  %v2698_v11 = vpop.f32.mrb[54].mxu0  ;;  %v2739_v51 = vpop.f32.mrb[54].mxu1  ;;  %v2643_v53 = vadd.f32 %v2642_v30, %v2641_v34  ;;  %v4361_v30 = vld [vmem:[#allocation17 + $0x80] ss:$16 sps:$4 sm:$0xff] (!%p3715_p8)   ;;  %v4368_v34 = vld [vmem:[#allocation17 + $0xa8] ss:$16 sps:$4 sm:$0xff] (!%p3715_p8)   ;;  %3055 = vmatprep.subr.bf16.mxu1 (!%p3715_p8), %v4365_v3 }
 0x5ad   : > { %v3712_v8 = vmul.f32 -1.442695, %v2742_v46  ;;  %v2699_v44 = vpop.f32.mrb[55].mxu0  ;;  %v2740_v4 = vpop.f32.mrb[55].mxu1  ;;  %v3714_v9 = vmul.f32 -1.442695, %v2744_v7 }
 0x5ae   : > { %v3713_v38 = vmul.f32 -1.442695, %v2743_v57  ;;  %4219 = vtanh.f32 %v2643_v53  ;;  %v5939_v42 = vsel %vm2650_vm3, %v2643_v53, %v5885_v63  ;;  %v4218_v41 = vpop.eup %4217  ;;  %v4369_v10 = vld [vmem:[#allocation17 + $0xc4] ss:$16 sps:$4 sm:$0xff] (!%p3715_p8)   ;;  %v4371_v46 = vld [vmem:[#allocation17 + $0xcc] ss:$16 sps:$4 sm:$0xff] (!%p3715_p8)  }
 0x5af   : > { %2773 = vst [vmem:[#allocation6] sm:$0xff] %v5939_v42  ;;  %4221 = vpow2.f32 %v3712_v8  ;;  %v4373_v48 = vld [vmem:[#allocation17 + $0xc0] ss:$16 sps:$4 sm:$0xff] (!%p3715_p8)   ;;  %v4374_v7 = vld [vmem:[#allocation17 + $0xc8] ss:$16 sps:$4 sm:$0xff] (!%p3715_p8)   ;;  %3056 = vmatpush1.bf16.msra.mxu1 (!%p3715_p8), %v4368_v34 }
 0x5b0   : > { %4223 = vpow2.f32 %v3713_v38  ;;  %v4375_v55 = vld [vmem:[#allocation17 + $0xe4] ss:$16 sps:$4 sm:$0xff] (!%p3715_p8)   ;;  %3057 = vmatprep.subr.bf16.mxu1 (!%p3715_p8), %v4371_v46  ;;  %v4377_v47 = vld [vmem:[#allocation17 + $0xec] ss:$16 sps:$4 sm:$0xff] (!%p3715_p8)   ;;  %v4379_v49 = vld [vmem:[#allocation17 + $0xe0] ss:$16 sps:$4 sm:$0xff] (!%p3715_p8)  }
 0x5b1   : > { %4225 = vtanh.f32 %v2745_v54  ;;  %v4380_v57 = vld [vmem:[#allocation17 + $0xe8] ss:$16 sps:$4 sm:$0xff] (!%p3715_p8)   ;;  %v4383_v52 = vld [vmem:[#allocation16 + $0x4] ss:$16 sps:$4 sm:$0xff] (!%p3715_p8)   ;;  %v4386_v54 = vld [vmem:[#allocation16 + $0xc] ss:$16 sps:$4 sm:$0xff] (!%p3715_p8)  }
 0x5b2   : > { %4227 = vpow2.f32 %v3714_v9  ;;  %v4381_v51 = vld [vmem:[#allocation16] ss:$16 sps:$4 sm:$0xff] (!%p3715_p8)   ;;  %v4384_v53 = vld [vmem:[#allocation16 + $0x8] ss:$16 sps:$4 sm:$0xff] (!%p3715_p8)   ;;  %v4389_v8 = vld [vmem:[#allocation16 + $0x24] ss:$16 sps:$4 sm:$0xff] (!%p3715_p8)  }
 0x5b3   : > { %3058 = vmatpush1.bf16.msra.mxu1 (!%p3715_p8), %v4374_v7  ;;  %v4392_v44 = vld [vmem:[#allocation16 + $0x2c] ss:$16 sps:$4 sm:$0xff] (!%p3715_p8)   ;;  %v4387_v4 = vld [vmem:[#allocation16 + $0x20] ss:$16 sps:$4 sm:$0xff] (!%p3715_p8)   ;;  %v4390_v38 = vld [vmem:[#allocation16 + $0x28] ss:$16 sps:$4 sm:$0xff] (!%p3715_p8)  }
 0x5b4   : > { %3059 = vmatprep.subr.bf16.mxu1 (!%p3715_p8), %v4377_v47  ;;  %v4398_v9 = vld [vmem:[#allocation16 + $0x4c] ss:$16 sps:$4 sm:$0xff] (!%p3715_p8)   ;;  %v6368_v46 = vld [vmem:[#allocation97_spill] sm:$0xff] (!%p3715_p8) }
 0x5b5   : > { %v6369_v47 = vld [vmem:[#allocation98_spill] sm:$0xff] (!%p3715_p8) }
 0x5b7   : > { %3060 = vmatpush1.bf16.msra.mxu1 (!%p3715_p8), %v4380_v57  ;;  %v6370_v57 = vld [vmem:[#allocation99_spill] sm:$0xff] (!%p3715_p8) }
 0x5b8   : > { %v4220_v29 = vpop.eup %4219  ;;  %3287 = vmatprep.subr.bf16.mxu1 (!%p3715_p8), %v4386_v54 }
 0x5b9   : > { %v4222_v37 = vpop.eup %4221  ;;  %v2645_v56 = vmul.f32 %v4220_v29, %v4218_v41  ;;  %v4395_v41 = vld [vmem:[#allocation16 + $0x44] ss:$16 sps:$4 sm:$0xff] (!%p3715_p8)   ;;  %v4393_v29 = vld [vmem:[#allocation16 + $0x40] ss:$16 sps:$4 sm:$0xff] (!%p3715_p8)  }
 0x5ba   : > { %v2755_v6 = vadd.f32 1.0, %v4222_v37  ;;  %v4224_v1 = vpop.eup %4223  ;;  %v4396_v37 = vld [vmem:[#allocation16 + $0x48] ss:$16 sps:$4 sm:$0xff] (!%p3715_p8)  }
 0x5bb   : > { %v5944_v59 = vsel %vm2650_vm3, %v2645_v56, %v5889_v36  ;;  %v2756_v63 = vadd.f32 1.0, %v4224_v1  ;;  %v4226_v17 = vpop.eup %4225  ;;  %v4401_v56 = vld [vmem:[#allocation16 + $0x64] ss:$16 sps:$4 sm:$0xff] (!%p3715_p8)   ;;  %v4399_v1 = vld [vmem:[#allocation16 + $0x60] ss:$16 sps:$4 sm:$0xff] (!%p3715_p8)  }
 0x5bc   : > { %2772 = vst [vmem:[#allocation5] sm:$0xff] %v5944_v59  ;;  %4229 = vrcp.f32 %v2755_v6  ;;  %v4228_v0 = vpop.eup %4227  ;;  %v2811_v11 = vpack.c.bf16 (!%p3715_p8), %v5944_v59, %v5944_v59  ;;  %v4404_v6 = vld [vmem:[#allocation16 + $0x6c] ss:$16 sps:$4 sm:$0xff] (!%p3715_p8)   ;;  %v4402_v59 = vld [vmem:[#allocation16 + $0x68] ss:$16 sps:$4 sm:$0xff] (!%p3715_p8)  }
 0x5bd   : > { %4231 = vrcp.f32 %v2756_v63  ;;  %v2757_v40 = vadd.f32 1.0, %v4228_v0  ;;  %v4407_v63 = vld [vmem:[#allocation16 + $0x84] ss:$16 sps:$4 sm:$0xff] (!%p3715_p8)   ;;  %v4405_v0 = vld [vmem:[#allocation16 + $0x80] ss:$16 sps:$4 sm:$0xff] (!%p3715_p8)  }
 0x5be   : > { %3078 = vmatmul.mubr.bf16.vlgmr.msra.gmra.mrb[0].mxu1 (!%p3715_p8), %v2811_v11 }
 0x5bf   : > { %4233 = vrcp.f32 %v2757_v40  ;;  %3288 = vmatpush1.bf16.msra.mxu1 (!%p3715_p8), %v4384_v53  ;;  %3319 = vmatprep.mubr.bf16.mxu1 (!%p3715_p8), %v4767_v14  ;;  %v4411_v40 = vld [vmem:[#allocation16 + $0xa0] ss:$16 sps:$4 sm:$0xff] (!%p3715_p8)  }
 0x5c0   : > { %3289 = vmatprep.subr.bf16.mxu1 (!%p3715_p8), %v4392_v44 }
 0x5c3   : > { %3290 = vmatpush1.bf16.msra.mxu1 (!%p3715_p8), %v4390_v38 }
 0x5c4   : > { %3291 = vmatprep.subr.bf16.mxu1 (!%p3715_p8), %v4398_v9 }
 0x5c6   : > { %v4230_v43 = vpop.eup %4229 }
 0x5c7   : > { %v2766_v13 = vmul.f32 %v4230_v43, %v4226_v17  ;;  %v4232_v24 = vpop.eup %4231  ;;  %3292 = vmatpush1.bf16.msra.mxu1 (!%p3715_p8), %v4396_v37  ;;  %v4410_v17 = vld [vmem:[#allocation16 + $0x8c] ss:$16 sps:$4 sm:$0xff] (!%p3715_p8)   ;;  %v4408_v43 = vld [vmem:[#allocation16 + $0x88] ss:$16 sps:$4 sm:$0xff] (!%p3715_p8)  }
 0x5c8   : > { %v2765_v33 = vmul.f32 %v4232_v24, %v5908_v45  ;;  %v4337_v45 = vld [vmem:[#allocation17] ss:$16 sps:$4 sm:$0xff] (!%p3715_p8)   ;;  %3293 = vmatprep.subr.bf16.mxu1 (!%p3715_p8), %v4404_v6  ;;  %v4416_v24 = vld [vmem:[#allocation16 + $0xac] ss:$16 sps:$4 sm:$0xff] (!%p3715_p8)  }
 0x5c9   : > { %v4234_v36 = vpop.eup %4233  ;;  %3005 = vmatpush1.bf16.msra.mxu0 (!%p3715_p8), %v4337_v45  ;;  %v4423_v45 = vld [vmem:[#allocation16 + $0xe0] ss:$16 sps:$4 sm:$0xff] (!%p3715_p8)  }
 0x5ca   : > { %v2767_v12 = vadd.f32 %v2766_v13, %v2765_v33  ;;  %3006 = vmatprep.subr.bf16.mxu0 (!%p3715_p8), %v4339_v60  ;;  %v4413_v13 = vld [vmem:[#allocation16 + $0xa4] ss:$16 sps:$4 sm:$0xff] (!%p3715_p8)   ;;  %v4414_v33 = vld [vmem:[#allocation16 + $0xa8] ss:$16 sps:$4 sm:$0xff] (!%p3715_p8)  }
 0x5cb   : > { %3294 = vmatpush1.bf16.msra.mxu1 (!%p3715_p8), %v4402_v59 }
 0x5cc   : > { %4235 = vtanh.f32 %v2767_v12  ;;  %2771 = vst [vmem:[#allocation4] sm:$0xff] %v2767_v12  ;;  %3357 = vst [vmem:[#allocation21] sm:$0xff] (!%p3715_p8), %v2767_v12  ;;  %3295 = vmatprep.subr.bf16.mxu1 (!%p3715_p8), %v4410_v17  ;;  %v4419_v12 = vld [vmem:[#allocation16 + $0xc4] ss:$16 sps:$4 sm:$0xff] (!%p3715_p8)   ;;  %v3784_v17 = vld [vmem:[#allocation7] ss:$0 sm:$0xff] (!%p3715_p8) }
 0x5cd   : > { %3007 = vmatpush1.bf16.msra.mxu0 (!%p3715_p8), %v4343_v16 }
 0x5ce   : > { %3008 = vmatprep.subr.bf16.mxu0 (!%p3715_p8), %v4345_v35 }
 0x5cf   : > { %3296 = vmatpush1.bf16.msra.mxu1 (!%p3715_p8), %v4408_v43 }
 0x5d0   : > { %3297 = vmatprep.subr.bf16.mxu1 (!%p3715_p8), %v4416_v24 }
 0x5d1   : > { %3009 = vmatpush1.bf16.msra.mxu0 (!%p3715_p8), %v4349_v20 }
 0x5d2   : > { %3010 = vmatprep.subr.bf16.mxu0 (!%p3715_p8), %v4351_v22 }
 0x5d3   : > { %2777 = sbr.rel (%p3715_p8) target bundleno = 1977 (0x7b9), region = 100  ;;  %3298 = vmatpush1.bf16.msra.mxu1 (!%p3715_p8), %v4414_v33 }
 0x5d5   : > { %3011 = vmatpush1.bf16.msra.mxu0 (!%p3715_p8), %v4355_v39 }
 0x5d6   : > { %v4236_v18 = vpop.eup %4235  ;;  %3012 = vmatprep.subr.bf16.mxu0 (!%p3715_p8), %v4357_v27 }
 0x5d7   : > { %v5948_v23 = vmul.f32 %v4236_v18, %v4234_v36  ;;  %v4422_v36 = vld [vmem:[#allocation16 + $0xcc] ss:$16 sps:$4 sm:$0xff] (!%p3715_p8)   ;;  %v4417_v18 = vld [vmem:[#allocation16 + $0xc0] ss:$16 sps:$4 sm:$0xff] (!%p3715_p8)  }
 0x5d8   : > { %3299 = vmatprep.subr.bf16.mxu1 (!%p3715_p8), %v4422_v36 }
 0x5d9   : > { %2770 = vst [vmem:[#allocation3] sm:$0xff] %v5948_v23  ;;  %3356 = vst [vmem:[#allocation20] sm:$0xff] (!%p3715_p8), %v5948_v23  ;;  %3013 = vmatpush1.bf16.msra.mxu0 (!%p3715_p8), %v4361_v30  ;;  %3300 = vmatpush1.bf16.msra.mxu1 (!%p3715_p8), %v4420_v50  ;;  %v2778_v60 = vpack.c.bf16 (!%p3715_p8), %v5948_v23, %v5948_v23 }
 0x5da   : > { %3014 = vmatprep.subr.bf16.mxu0 %v4363_v62 }
 0x5dd   : > { %3015 = vmatpush1.bf16.msra.mxu0 %v4367_v31 }
 0x5de   : > { %3016 = vmatprep.subr.bf16.mxu0 %v4369_v10 }
 0x5e1   : > { %3017 = vmatpush1.bf16.msra.mxu0 %v4373_v48 }
 0x5e2   : > { %3018 = vmatprep.subr.bf16.mxu0 %v4375_v55 }
 0x5e5   : > { %3019 = vmatpush1.bf16.msra.mxu0 %v4379_v49 }
 0x5e6   : > { %3246 = vmatprep.subr.bf16.mxu0 %v4383_v52 }
 0x5e8   : > { %3037 = vmatmul.mubr.bf16.vlgmr.msra.gmra.mrb[0].mxu0 %v2811_v11 }
 0x5e9   : > { %3247 = vmatpush1.bf16.msra.mxu0 %v4381_v51  ;;  %3278 = vmatprep.mubr.bf16.mxu0 %v4767_v14  ;;  %v4428_v14 = vld [vmem:[#allocation16 + $0xec] ss:$16 sps:$4 sm:$0xff]  }
 0x5ea   : > { %3248 = vmatprep.subr.bf16.mxu0 %v4389_v8  ;;  %3301 = vmatprep.subr.bf16.mxu1 %v4428_v14 }
 0x5eb   : > { %3302 = vmatpush1.bf16.msra.mxu1 %v4426_v58 }
 0x5ed   : > { %3249 = vmatpush1.bf16.msra.mxu0 %v4387_v4 }
 0x5ee   : > { %3250 = vmatprep.subr.bf16.mxu0 %v4395_v41  ;;  %3320 = vmatmul.mubr.bf16.vlgmr.msra.gmra.mrb[4].mxu1 %v2778_v60 }
 0x5f1   : > { %3251 = vmatpush1.bf16.msra.mxu0 %v4393_v29 }
 0x5f2   : > { %3252 = vmatprep.subr.bf16.mxu0 %v4401_v56 }
 0x5f5   : > { %3253 = vmatpush1.bf16.msra.mxu0 %v4399_v1  ;;  %v3783_v1 = vld [vmem:[%s6371_s16] ss:$0 sm:$0xff] }
 0x5f6   : > { %3254 = vmatprep.subr.bf16.mxu0 %v4407_v63 }
 0x5f9   : > { %3255 = vmatpush1.bf16.msra.mxu0 %v4405_v0 }
 0x5fa   : > { %3256 = vmatprep.subr.bf16.mxu0 %v4413_v13 }
 0x5fd   : > { %3257 = vmatpush1.bf16.msra.mxu0 %v4411_v40 }
 0x5fe   : > { %3258 = vmatprep.subr.bf16.mxu0 %v4419_v12 }
 0x601   : > { %3259 = vmatpush1.bf16.msra.mxu0 %v4417_v18 }
 0x602   : > { %3260 = vmatprep.subr.bf16.mxu0 %v4425_v5 }
 0x605   : > { %3261 = vmatpush1.bf16.msra.mxu0 %v4423_v45 }
 0x608   : > { %3279 = vmatmul.mubr.bf16.vlgmr.msra.gmra.mrb[4].mxu0 %v2778_v60 }
 0x691   : > { %v3079_v16 = vpop.f32.mrb[0].mxu1 }
 0x692   : > { %v3081_v35 = vpop.f32.mrb[1].mxu1 }
 0x693   : > { %v3083_v20 = vpop.f32.mrb[2].mxu1 }
 0x694   : > { %v3084_v22 = vpop.f32.mrb[3].mxu1 }
 0x6bb   : > { %v3038_v15 = vpop.f32.mrb[0].mxu0 }
 0x6bc   : > { %v3040_v61 = vpop.f32.mrb[1].mxu0 }
 0x6bd   : > { %v3042_v19 = vpop.f32.mrb[2].mxu0 }
 0x6be   : > { %v3043_v21 = vpop.f32.mrb[3].mxu0 }
 0x6c1   : > { %v3321_v39 = vpop.f32.mrb[4].mxu1 }
 0x6c2   : > { %v3322_v27 = vadd.f32 %v3321_v39, %v3079_v16  ;;  %v3323_v30 = vpop.f32.mrb[5].mxu1 }
 0x6c3   : > { %v3324_v23 = vadd.f32 %v3323_v30, %v3081_v35  ;;  %v3325_v3 = vpop.f32.mrb[6].mxu1 }
 0x6c4   : > { %v3326_v10 = vpop.f32.mrb[7].mxu1  ;;  %v3330_v49 = vadd.f32 %v3322_v27, %v6369_v47 }
 0x6c5   : > { %v3331_v52 = vadd.f32 %v3324_v23, %v6370_v57 }
 0x6c6   : > { %v3782_v54 = vmul.f32 -1.442695, %v3330_v49 }
 0x6db   : > { %v3280_v25 = vpop.f32.mrb[4].mxu0 }
 0x6dc   : > { %v3281_v26 = vadd.f32 %v3280_v25, %v3038_v15  ;;  %v3282_v28 = vpop.f32.mrb[5].mxu0 }
 0x6dd   : > { %v3283_v32 = vadd.f32 %v3282_v28, %v3040_v61  ;;  %v3284_v62 = vpop.f32.mrb[6].mxu0 }
 0x6de   : > { %v3328_v31 = vadd.f32 %v3281_v26, %v5539_v2  ;;  %v3285_v34 = vpop.f32.mrb[7].mxu0 }
 0x6df   : > { %v3329_v48 = vadd.f32 %v3283_v32, %v6368_v46 }
 0x6e0   : > { %v3780_v7 = vmul.f32 -1.442695, %v3328_v31 }
 0x6e1   : > { %v3781_v55 = vmul.f32 -1.442695, %v3329_v48 }
 0x6e2   : > { %4429 = vpow2.f32 %v3780_v7 }
 0x6e3   : > { %4431 = vpow2.f32 %v3781_v55 }
 0x6e4   : > { %4433 = vtanh.f32 %v3331_v52 }
 0x6e5   : > { %4435 = vpow2.f32 %v3782_v54 }
 0x6ec   : > { %v4430_v11 = vpop.eup %4429 }
 0x6ed   : > { %v3341_v51 = vadd.f32 1.0, %v4430_v11  ;;  %v4432_v53 = vpop.eup %4431 }
 0x6ee   : > { %v3342_v2 = vadd.f32 1.0, %v4432_v53  ;;  %v4434_v8 = vpop.eup %4433 }
 0x6ef   : > { %4437 = vrcp.f32 %v3341_v51  ;;  %v4436_v44 = vpop.eup %4435 }
 0x6f0   : > { %4439 = vrcp.f32 %v3342_v2  ;;  %v3343_v9 = vadd.f32 1.0, %v4436_v44 }
 0x6f2   : > { %4441 = vrcp.f32 %v3343_v9 }
 0x6f9   : > { %v4438_v4 = vpop.eup %4437 }
 0x6fa   : > { %v3352_v38 = vmul.f32 %v4438_v4, %v4434_v8  ;;  %v4440_v41 = vpop.eup %4439 }
 0x6fb   : > { %v3351_v29 = vmul.f32 %v4440_v41, %v5939_v42 }
 0x6fc   : > { %v4442_v56 = vpop.eup %4441 }
 0x6fd   : > { %v3353_v37 = vadd.f32 %v3352_v38, %v3351_v29 }
 0x6ff   : > { %3361 = vst [vmem:[#allocation21 + $0x8] sm:$0xff] %v3353_v37  ;;  %4443 = vtanh.f32 %v3353_v37 }
 0x709   : > { %v4444_v6 = vpop.eup %4443 }
 0x70a   : > { %v3355_v59 = vmul.f32 %v4444_v6, %v4442_v56 }
 0x70c   : > { %3359 = vst [vmem:[#allocation20 + $0x8] sm:$0xff] %v3355_v59  ;;  %v3369_v63 = vmul.f32 %v3783_v1, %v3355_v59 }
 0x70e   : > { %3370 = vadd.xlane.f32.xlu0 %v3369_v63 }
 0x79b   : > { %v3371_v0 = vpop.xlane.xlu0 %3370 }
 0x79c   : > { %v3379_v43 = vadd.f32 %v3784_v17, %v3371_v0 }
 0x79e   : > { %v3785_v13 = vmul.f32 -1.442695, %v3379_v43 }
 0x7a0   : > { %4445 = vpow2.f32 %v3785_v13 }
 0x7aa   : > { %v4446_v42 = vpop.eup %4445 }
 0x7ab   : > { %v3383_v24 = vadd.f32 1.0, %v4446_v42 }
 0x7ad   : > { %4447 = vrcp.f32 %v3383_v24 }
 0x7b7   : > { %v4448_v40 = vpop.eup %4447 }
 0x7b8   : > { %3387 = vst.msk [vmem:[%s6372_s20] sm:$0xff] %vm3386_vm4, %v4448_v40 }
 0x7b9 PF: > { %p3863_p1 = scmp.eq.s32.totalorder %s4866_s15, 1  ;;  %s4768_s22 = smov [#allocation20]  }
 0x7ba   : > { %s3394_s30 = sshll.u32 %s4768_s22, 4  ;;  %s3395_s30 = int_to_ptr.vmem [resolvable:$true] %s3394_s30 }
 0x7bb   : > { %s4647_s19 = scalar_lea.vmem %s3395_s30, 256  ;;  %p4654_p4 = scmp.lt.s32.totalorder %s3395_s30, %s3395_s30 }
 0x7bc   : > { %p4648_p3 = scmp.ne.s32.totalorder %s3395_s30, %s4647_s19  ;;  %p4655_p13 = scmp.lt.s32.totalorder %s4647_s19, %s4647_s19 }
 0x7be   : > { %p4649_p11 = pnand %p4648_p3, %p3863_p1  ;;  %p4656_p0 = por %p4655_p13, %p4654_p4 }
 0x7c0   : > { %p4650_p6 = pneg %p4649_p11 }
 0x7c2   : > { %p4657_p2 = pnand %p4656_p0, %p4650_p6 }
 0x7c4   : > { %4660 = shalt.err (!%p4657_p2)
}
 0x7c5   : > { %s6373_s9 = sld [smem:[#allocation102_spill]] }
 0x7cb   : > { %s4661_s11 = scalar_lea.hbm %s6373_s9, 256 }
 0x7cc   : > { %p4662_p7 = scmp.ne.s32.totalorder %s6373_s9, %s4661_s11  ;;  %p4667_p10 = scmp.lt.u32.totalorder %s4661_s11, %s6373_s9 }
 0x7ce   : > { %p4663_p5 = pnand %p4662_p7, %p3863_p1 }
 0x7d0   : > { %p4664_p9 = pneg %p4663_p5 }
 0x7d2   : > { %p4669_p12 = pnand %p4667_p10, %p4664_p9 }
 0x7d4   : > { %4672 = shalt.err (!%p4669_p12)
}
 0x7d5   : > { %s4769_s23 = smov 128   ;;  %s4770_s24 = smov 8  }
 0x7d6   : > { %3820 = dma.vmem_to_hbm [thread:$0]  (%p3863_p1), %s3395_s30, 256, %s6373_s9, [#allocation10], %s4769_s23, %s4769_s23, %s4770_s24  }
 0x7d7   : > { %s4771_s21 = smov [#allocation21]  }
 0x7d8   : > { %s3407_s17 = sshll.u32 %s4771_s21, 4  ;;  %s3408_s17 = int_to_ptr.vmem [resolvable:$true] %s3407_s17 }
 0x7d9   : > { %s4673_s20 = scalar_lea.vmem %s3408_s17, 256  ;;  %p4680_p6 = scmp.lt.s32.totalorder %s3408_s17, %s3408_s17 }
 0x7da   : > { %p4674_p8 = scmp.ne.s32.totalorder %s3408_s17, %s4673_s20  ;;  %p4681_p4 = scmp.lt.s32.totalorder %s4673_s20, %s4673_s20 }
 0x7dc   : > { %p4675_p3 = pnand %p4674_p8, %p3863_p1  ;;  %p4682_p13 = por %p4681_p4, %p4680_p6 }
 0x7de   : > { %p4676_p11 = pneg %p4675_p3 }
 0x7e0   : > { %p4683_p0 = pnand %p4682_p13, %p4676_p11 }
 0x7e2   : > { %4686 = shalt.err (!%p4683_p0)
}
 0x7e3   : > { %s6374_s14 = sld [smem:[#allocation103_spill]] }
 0x7e9   : > { %s4687_s1 = scalar_lea.hbm %s6374_s14, 256 }
 0x7ea   : > { %p4688_p2 = scmp.ne.s32.totalorder %s6374_s14, %s4687_s1  ;;  %p4693_p9 = scmp.lt.u32.totalorder %s4687_s1, %s6374_s14 }
 0x7ec   : > { %p4689_p7 = pnand %p4688_p2, %p3863_p1 }
 0x7ee   : > { %p4690_p5 = pneg %p4689_p7 }
 0x7f0   : > { %p4695_p10 = pnand %p4693_p9, %p4690_p5 }
 0x7f2   : > { %4698 = shalt.err (!%p4695_p10)
}
 0x7f3   : > { %3822 = dma.vmem_to_hbm [thread:$0]  (%p3863_p1), %s3408_s17, 256, %s6374_s14, [#allocation22], %s4769_s23, %s4769_s23, %s4770_s24  }
 0x7f4   : > { %4732 = dma.done.wait (%p3863_p1), [#allocation10], 256  }
 0x7f5   : > { %4734 = vsyncadd (%p3863_p1), [#allocation10], 4294967040 }
 0x7f6   : > { %4736 = dma.done.wait (%p3863_p1), [#allocation22], 256  }
 0x7f7   : > { %4738 = vsyncadd (%p3863_p1), [#allocation22], 4294967040 }
 0x7f8 PF: > { %p31_p12 = scmp.ge.s32.totalorder %s5032_s10, 4   ;;  %s6375_s27 = smov %s4745_s28 }
 0x7f9   : > { %s6376_s28 = smov %s4749_s29  ;;  %s6377_s29 = smov %s5044_s12 }
 0x7fa   : > { %s6378_s30 = smov %s5032_s10  ;;  %33 = sbr.rel (!%p31_p12) target bundleno = 14 (0xe), region = 157 }
 0x801   :  { %3433 = vsyncpa [#allocation9], 1 }
 0x802   :  { %3435 = vsyncpa [#allocation9 + $0x1], 1 }
 0x803   :  { %3436 = vsyncpa [#allocation12], 1 }
 0x804   :  { %3437 = vsyncpa [#allocation15], 1 }
 0x805   :  { %3438 = vsyncpa [#allocation18], 1 }
 0x806   :  { %3439 = vsyncpa [#allocation10], 1 }
 0x807   :  { %3441 = vsyncpa [#allocation10 + $0x1], 1 }
 0x808   :  { %3442 = vsyncpa [#allocation22], 1 }

</bundles_post_ra>
